<compile_context>
chip_gen: v6e
topology: v6e:2x2x1
jax: 0.10.0
libtpu: 0.0.40
codegen_flags: <defaults>
</compile_context>

<pallas_src>
import functools

import jax
import jax.numpy as jnp
from jax.experimental import pallas as pl
from jax.experimental.pallas import tpu as pltpu

LANE = 128
ROW_TILE = 512  # >=256 fills the 256-row MXU on v6e/v7x; 512 ~ HBM-roofline tiles


def _round_up(x, m):
    return ((x + m - 1) // m) * m


# ----------------------------------------------------------------------------
# Kernels
# ----------------------------------------------------------------------------
def layer1_kernel(a_ref, xw_ref, b1_ref, w2_ref, hw_ref):
    """hw_tile = relu(A_tile @ XW1 + b1) @ W2  (fused; no cross-tile dependency)."""
    h = jnp.dot(a_ref[...], xw_ref[...], preferred_element_type=jnp.float32)
    h = jnp.maximum(h + b1_ref[...], 0.0)
    # TODO(synk): F.dropout(training=True) would go here via pltpu.prng_seed /
    # pltpu.prng_random_bits; identity in eval mode.
    hw = jnp.dot(h.astype(w2_ref.dtype), w2_ref[...],
                 preferred_element_type=jnp.float32)
    hw_ref[...] = hw.astype(hw_ref.dtype)


def layer2_kernel(a_ref, hw_ref, b2_ref, out_ref, *, num_classes):
    """out_tile = log_softmax(A_tile @ HW2 + b2) over the valid class lanes."""
    logits = jnp.dot(a_ref[...], hw_ref[...], preferred_element_type=jnp.float32)
    logits = logits + b2_ref[...]
    lane = jax.lax.broadcasted_iota(jnp.int32, logits.shape, 1)
    valid = lane < num_classes
    masked = jnp.where(valid, logits, jnp.full_like(logits, -1e30))
    m = jnp.max(masked, axis=1, keepdims=True)
    z = masked - m
    denom = jnp.sum(jnp.where(valid, jnp.exp(z), 0.0), axis=1, keepdims=True)
    out_ref[...] = z - jnp.log(denom)


# ----------------------------------------------------------------------------
# Forward wrapper
# ----------------------------------------------------------------------------
def _invariant_spec(shape):
    """Grid-invariant operand: fetched once, single-buffered (halves its VMEM cost)."""
    return pl.BlockSpec(shape, lambda i: (0,) * len(shape),
                        pipeline_mode=pl.Buffered(1))


def gcn_forward(a_hat, x, w1, b1, w2, b2, *, row_tile=ROW_TILE):
    n_raw, f_raw = x.shape
    hid = w1.shape[1]
    c = w2.shape[1]

    # Tile / pad sizes.  Keep row_tile a multiple of 256 but no bigger than the
    # (256-rounded) node count so small graphs don't over-pad.
    row_tile = min(row_tile, _round_up(n_raw, 256))
    n = _round_up(n_raw, row_tile)   # node axis (rows/cols of A_hat, rows of X)
    f = _round_up(f_raw, LANE)       # input-feature axis
    hp = _round_up(hid, LANE)        # lane-dense hidden axis
    cp = _round_up(c, LANE)          # lane-dense class axis

    # Zero-padding is exact: padded A_hat columns are zero, so padded rows of
    # XW1 / HW2 never contaminate real rows; padded output rows/lanes are
    # sliced off at the end.
    a_p = jnp.zeros((n, n), jnp.float32).at[:n_raw, :n_raw].set(a_hat)
    x_p = jnp.zeros((n, f), jnp.float32).at[:n_raw, :f_raw].set(x)
    w1_p = jnp.zeros((f, hp), jnp.float32).at[:f_raw, :hid].set(w1)
    b1_p = jnp.zeros((1, hp), jnp.float32).at[:, :hid].set(b1.reshape(1, -1))
    w2_p = jnp.zeros((hp, cp), jnp.float32).at[:hid, :c].set(w2)
    b2_p = jnp.zeros((1, cp), jnp.float32).at[:, :c].set(b2.reshape(1, -1))

    # bf16 MXU operands (halves HBM/VMEM traffic; 2x MXU throughput on v6e/v7x);
    # biases stay f32 and all accumulation is f32.
    a_bf = a_p.astype(jnp.bfloat16)
    w2_bf = w2_p.astype(jnp.bfloat16)

    # Feature transform XW1 = X @ W1 is a tiny GEMM: leave it to XLA in the
    # wrapper (no dedicated pallas_call launch, no extra HBM round-trip).
    xw = jnp.dot(x_p, w1_p, preferred_element_type=jnp.float32).astype(jnp.bfloat16)

    grid = (n // row_tile,)

    # Right-sized VMEM budget: double-buffered A slab + single-buffered resident
    # operands + f32 epilogue intermediates, 2x headroom, clamped to [20, 32] MiB
    # (> v5e's 16 MiB scoped default, << v7x's 64 MiB physical VMEM).
    per_step_bytes = (2 * row_tile * n * 2              # A slab, bf16, double-buffered
                      + n * max(hp, cp) * 2             # resident XW1 / HW2, bf16
                      + hp * cp * 2                     # resident W2, bf16
                      + 2 * row_tile * cp * 4           # output tile (f32 worst case)
                      + 4 * row_tile * max(hp, cp) * 4)  # f32 compute intermediates
    vmem_limit = int(min(32 << 20, max(20 << 20, 2 * per_step_bytes)))
    params = pltpu.CompilerParams(
        dimension_semantics=("parallel",),   # shards row tiles across v7x's 2 TCs
        vmem_limit_bytes=vmem_limit,
    )

    # ---- pass 1: HW2 = relu(A @ XW1 + b1) @ W2 -------------------------------
    hw = pl.pallas_call(
        layer1_kernel,
        out_shape=jax.ShapeDtypeStruct((n, cp), jnp.bfloat16),
        grid=grid,
        in_specs=[pl.BlockSpec((row_tile, n), lambda i: (i, 0)),
                  _invariant_spec((n, hp)),
                  _invariant_spec((1, hp)),
                  _invariant_spec((hp, cp))],
        out_specs=pl.BlockSpec((row_tile, cp), lambda i: (i, 0)),
        compiler_params=params,
        cost_estimate=pl.CostEstimate(
            flops=2 * n * n * hp + 2 * n * hp * cp,
            transcendentals=0,
            bytes_accessed=(n * n + n * hp + hp * cp + n * cp) * 2 + hp * 4),
    )(a_bf, xw, b1_p, w2_bf)

    # ---- pass 2: out = log_softmax(A @ HW2 + b2) -----------------------------
    out_p = pl.pallas_call(
        functools.partial(layer2_kernel, num_classes=c),
        out_shape=jax.ShapeDtypeStruct((n, cp), jnp.float32),
        grid=grid,
        in_specs=[pl.BlockSpec((row_tile, n), lambda i: (i, 0)),
                  _invariant_spec((n, cp)),
                  _invariant_spec((1, cp))],
        out_specs=pl.BlockSpec((row_tile, cp), lambda i: (i, 0)),
        compiler_params=params,
        cost_estimate=pl.CostEstimate(
            flops=2 * n * n * cp,
            transcendentals=n * cp,
            bytes_accessed=(n * n + n * cp) * 2 + cp * 4 + n * cp * 4),
    )(a_bf, hw, b2_p)

    return out_p[:n_raw, :c]


# ----------------------------------------------------------------------------
# Glue: normalized adjacency (matches PyG gcn_norm defaults)
# ----------------------------------------------------------------------------
def build_normalized_adjacency(edge_index, num_nodes):
    """A_hat = D^{-1/2} (A + I) D^{-1/2}."""
    src, dst = edge_index[0], edge_index[1]
    adj = jnp.zeros((num_nodes, num_nodes), jnp.float32)
    # scatter-add so duplicate edges accumulate weight (PyG gcn_norm behavior)
    adj = adj.at[dst, src].add(1.0)
    # add_remaining_self_loops: only nodes without a self-loop get a weight-1 loop
    diag = jnp.diagonal(adj)
    adj = adj + jnp.diag(jnp.where(diag > 0, 0.0, 1.0))
    deg = jnp.sum(adj, axis=1)
    d_inv_sqrt = jnp.where(deg > 0, jax.lax.rsqrt(deg), 0.0)
    return adj * d_inv_sqrt[:, None] * d_inv_sqrt[None, :]


def gcn_reference(a_hat, x, w1, b1, w2, b2):
    h = jnp.maximum(a_hat @ (x @ w1) + b1.reshape(1, -1), 0.0)
    logits = a_hat @ (h @ w2) + b2.reshape(1, -1)
    return jax.nn.log_softmax(logits, axis=1)


if __name__ == "__main__":
    # Small synthetic "Cora-like" graph, sized so the row-tile grid has >1 step
    # (N=640 -> padded 1024 nodes, two 512-row tiles) while staying tiny.
    N, F_IN, HID, C = 640, 96, 16, 8
    NUM_EDGES = 2048

    key = jax.random.PRNGKey(0)
    k_x, k_e, k_w1, k_b1, k_w2, k_b2 = jax.random.split(key, 6)

    x = jax.random.normal(k_x, (N, F_IN), dtype=jnp.float32)
    edge_index = jax.random.randint(k_e, (2, NUM_EDGES), 0, N, dtype=jnp.int32)

    # Deterministic parameter init (glorot-ish scale), GCNConv shapes.
    w1 = jax.random.normal(k_w1, (F_IN, HID), jnp.float32) * (1.0 / F_IN ** 0.5)
    b1 = jax.random.normal(k_b1, (HID,), jnp.float32) * 0.01
    w2 = jax.random.normal(k_w2, (HID, C), jnp.float32) * (1.0 / HID ** 0.5)
    b2 = jax.random.normal(k_b2, (C,), jnp.float32) * 0.01

    a_hat = build_normalized_adjacency(edge_index, N)

    out = jax.block_until_ready(gcn_forward(a_hat, x, w1, b1, w2, b2))
    ref = jax.block_until_ready(gcn_reference(a_hat, x, w1, b1, w2, b2))

    assert out.shape == (N, C)
    # log_softmax rows sum (in prob space) to ~1.
    row_prob_sums = jnp.sum(jnp.exp(out), axis=1)
    assert bool(jnp.all(jnp.abs(row_prob_sums - 1.0) < 1e-3))
    # bf16-matmul kernel vs f32 pure-JAX reference (loose tolerance for bf16).
    assert bool(jnp.max(jnp.abs(out - ref)) < 0.1)
    assert not bool(jnp.any(jnp.isnan(out)))

    print("KERNEL_OK")
</pallas_src>

<mosaic_0001>
module attributes {stable_mosaic.version = 11 : i64} {
  func.func @layer1_kernel(%arg0: i32, %arg1: memref<512x1024xbf16, #tpu.memory_space<vmem>>, %arg2: memref<1024x128xbf16, #tpu.memory_space<vmem>>, %arg3: memref<1x128xf32, #tpu.memory_space<vmem>>, %arg4: memref<128x128xbf16, #tpu.memory_space<vmem>>, %arg5: memref<512x128xbf16, #tpu.memory_space<vmem>>) attributes {dimension_semantics = [#tpu.dimension_semantics<parallel>], iteration_bounds = array<i64: 2>, scalar_prefetch = 0 : i64, scratch_operands = 0 : i64, tpu.core_type = #tpu.core_type<tc>, window_params = [{transform_indices = @transform_0, window_bounds = array<i64: 512, 1024>}, {pipeline_mode = #tpu.pipeline_mode<synchronous>, transform_indices = @transform_1, window_bounds = array<i64: 1024, 128>}, {pipeline_mode = #tpu.pipeline_mode<synchronous>, transform_indices = @transform_2, window_bounds = array<i64: 1, 128>}, {pipeline_mode = #tpu.pipeline_mode<synchronous>, transform_indices = @transform_3, window_bounds = array<i64: 128, 128>}, {transform_indices = @transform_4, window_bounds = array<i64: 512, 128>}]} {
    %c0 = arith.constant 0 : index
    %c0_0 = arith.constant 0 : index
    %0 = vector.load %arg1[%c0, %c0_0] : memref<512x1024xbf16, #tpu.memory_space<vmem>>, vector<512x1024xbf16>
    %c0_1 = arith.constant 0 : index
    %c0_2 = arith.constant 0 : index
    %1 = vector.load %arg2[%c0_1, %c0_2] : memref<1024x128xbf16, #tpu.memory_space<vmem>>, vector<1024x128xbf16>
    %cst = arith.constant dense<0.000000e+00> : vector<512x128xf32>
    %2 = tpu.matmul %0, %1, %cst {dimension_numbers = #tpu.dot_dimension_numbers<[1], [0], [0], [1], [0, 0, 1, 1], [], []>} : vector<512x1024xbf16>, vector<1024x128xbf16>, vector<512x128xf32> -> vector<512x128xf32>
    %c0_3 = arith.constant 0 : index
    %c0_4 = arith.constant 0 : index
    %3 = vector.load %arg3[%c0_3, %c0_4] : memref<1x128xf32, #tpu.memory_space<vmem>>, vector<1x128xf32>
    %4 = vector.broadcast %3 : vector<1x128xf32> to vector<512x128xf32>
    %5 = arith.addf %2, %4 : vector<512x128xf32>
    %cst_5 = arith.constant 0.000000e+00 : f32
    %6 = vector.broadcast %cst_5 : f32 to vector<512x128xf32>
    %7 = arith.maximumf %5, %6 : vector<512x128xf32>
    %8 = arith.truncf %7 : vector<512x128xf32> to vector<512x128xbf16>
    %c0_6 = arith.constant 0 : index
    %c0_7 = arith.constant 0 : index
    %9 = vector.load %arg4[%c0_6, %c0_7] : memref<128x128xbf16, #tpu.memory_space<vmem>>, vector<128x128xbf16>
    %cst_8 = arith.constant dense<0.000000e+00> : vector<512x128xf32>
    %10 = tpu.matmul %8, %9, %cst_8 {dimension_numbers = #tpu.dot_dimension_numbers<[1], [0], [0], [1], [0, 0, 1, 1], [], []>} : vector<512x128xbf16>, vector<128x128xbf16>, vector<512x128xf32> -> vector<512x128xf32>
    %11 = arith.truncf %10 : vector<512x128xf32> to vector<512x128xbf16>
    %c0_9 = arith.constant 0 : index
    %c0_10 = arith.constant 0 : index
    %12 = vector.load %arg5[%c0_9, %c0_10] : memref<512x128xbf16, #tpu.memory_space<vmem>>, vector<512x128xbf16>
    tpu.vector_store %arg5[%c0_9, %c0_10], %11 {strides = array<i32>} : memref<512x128xbf16, #tpu.memory_space<vmem>>, vector<512x128xbf16>,
    return
  }
  func.func @transform_0(%arg0: i32) -> (i32, i32) {
    %c0_i32 = arith.constant 0 : i32
    %c0_i32_0 = arith.constant 0 : i32
    return %arg0, %c0_i32 : i32, i32
  }
  func.func @transform_1(%arg0: i32) -> (i32, i32) {
    %c0_i32 = arith.constant 0 : i32
    %c0_i32_0 = arith.constant 0 : i32
    %c0_i32_1 = arith.constant 0 : i32
    return %c0_i32, %c0_i32_0 : i32, i32
  }
  func.func @transform_2(%arg0: i32) -> (i32, i32) {
    %c0_i32 = arith.constant 0 : i32
    %c0_i32_0 = arith.constant 0 : i32
    %c0_i32_1 = arith.constant 0 : i32
    return %c0_i32, %c0_i32_0 : i32, i32
  }
  func.func @transform_3(%arg0: i32) -> (i32, i32) {
    %c0_i32 = arith.constant 0 : i32
    %c0_i32_0 = arith.constant 0 : i32
    %c0_i32_1 = arith.constant 0 : i32
    return %c0_i32, %c0_i32_0 : i32, i32
  }
  func.func @transform_4(%arg0: i32) -> (i32, i32) {
    %c0_i32 = arith.constant 0 : i32
    %c0_i32_0 = arith.constant 0 : i32
    return %arg0, %c0_i32 : i32, i32
  }
}

</mosaic_0001>

<bundles_post_ra>
// kernel: tpu_custom_call.1
= control target key start
LH: loop header
LB: loop body
LE: loop exit
PB: predicated region body
PF: predicated region fallthrough
CT: control target
= control target key end

     0   :  { %9 = vsyncpa [#allocation3], 0  ;;  %s6790_s0 = inlined_call_operand.hbm [shape: bf16[1024,1024], index: 0, kind: input, shape index: {}]   ;;  %s6791_s1 = inlined_call_operand.hbm [shape: bf16[1024,128], index: 1, kind: input, shape index: {}]   ;;  %s6792_s2 = inlined_call_operand.hbm [shape: f32[1,128], index: 2, kind: input, shape index: {}]   ;;  %s6793_s3 = inlined_call_operand.hbm [shape: bf16[128,128], index: 3, kind: input, shape index: {}]   ;;  %s6794_s4 = inlined_call_operand.hbm [shape: bf16[1024,128], index: 4, kind: output, shape index: {}]  }
   0x1   :  { %11 = vsyncpa [#allocation3 + $0x1], 0 }
   0x2   :  { %12 = vsyncpa [#allocation6], 0 }
   0x3   :  { %13 = vsyncpa [#allocation9], 0 }
   0x4   :  { %14 = vsyncpa [#allocation4], 0 }
   0x5   :  { %16 = vsyncpa [#allocation4 + $0x1], 0  ;;  %s5556_s15 = smov 0   ;;  %s5558_s16 = smov 0  }
   0x6   :  { %s5560_s17 = smov 0   ;;  %s5562_s18 = smov 0  }
   0x7 LB: > { %s5577_s19 = sadd.s32 4294967295, %s5517_s18   ;;  %s4358_s20 = sadd.s32 4294967294, %s5517_s18   ;;  %s5517_s18 = sphi %s5562_s18, %s6902_s18   ;;  %s5513_s17 = sphi %s5560_s17, %s6901_s17   ;;  %s5509_s16 = sphi %s5558_s16, %s6900_s16   ;;  %s5505_s15 = sphi %s5556_s15, %s6899_s15  }
   0x8   : > { %p42_p0 = scmp.ne.s32.totalorder %s5509_s16, %s5505_s15  ;;  %p6795_p1 = scmp.eq.s32.totalorder %s5577_s19, 0 }
   0x9   : > { %p135_p3 = scmp.eq.s32.totalorder %s4358_s20, 1  ;;  %p4359_p5 = scmp.ge.s32.totalorder %s5517_s18, 1 }
   0xa   : > { %p5586_p4 = por %p6795_p1, %p42_p0  ;;  %p142_p7 = scmp.lt.s32.totalorder %s5517_s18, 3 }
   0xb   : > { %p5591_p6 = por %p135_p3, %p42_p0  ;;  %s5519_s24 = smov [#allocation5]  }
   0xc   : > { %s6799_s21 = scalar_select %p5586_p4, 1, 0 }
   0xd   : > { %s6800_s22 = scalar_select %p5591_p6, 1, 0 }
   0xe   : > { %p5596_p8 = pnand %p4359_p5, %p142_p7  ;;  %s154_s25 = sshll.u32 %s5519_s24, 4  ;;  %s155_s25 = int_to_ptr.vmem [resolvable:$true] %s154_s25 }
   0xf   : > { %s5520_s27 = smov [#allocation7]   ;;  %s5521_s29 = smov [#allocation8]  }
  0x10   : > { %s6801_s23 = scalar_select %p5596_p8, 1, 0 }
  0x11   : > { %p5198_p9 = pneg %p5596_p8  ;;  %s168_s28 = sshll.u32 %s5520_s27, 4  ;;  %s169_s28 = int_to_ptr.vmem [resolvable:$true] %s168_s28 }
  0x12   : > { %s178_s30 = sshll.u32 %s5521_s29, 4  ;;  %s5350_s5 = scalar_lea.vmem %s155_s25, 8192  ;;  %s179_s30 = int_to_ptr.vmem [resolvable:$true] %s178_s30 }
  0x13   : > { %p5605_p11 = pnand %p5198_p9, %p6795_p1  ;;  %p5351_p13 = scmp.ne.s32.totalorder %s155_s25, %s5350_s5 }
  0x14   : > { %p5358_p5 = scmp.lt.s32.totalorder %s155_s25, %s155_s25  ;;  %p5359_p7 = scmp.lt.s32.totalorder %s5350_s5, %s5350_s5 }
  0x15   : > { %p5341_p12 = pneg %p5605_p11 }
  0x16   : > { %p5360_p9 = por %p5359_p7, %p5358_p5 }
  0x17   : > { %p5353_p0 = pnand %p5351_p13, %p5341_p12 }
  0x19   : > { %p5354_p3 = pneg %p5353_p0 }
  0x1b   : > { %p5361_p10 = pnand %p5360_p9, %p5354_p3 }
  0x1d   : > { %5364 = shalt.err (!%p5361_p10)
}
  0x1e   : > { %s5522_s6 = smov 64   ;;  %s5523_s7 = smov 4  }
  0x1f   : > { %5201 = dma.hbm_to_vmem [thread:$0]  (!%p5605_p11), %s6791_s1, 8192, %s155_s25, [#allocation6], %s5522_s6, %s5522_s6, %s5523_s7  }
  0x20   : > { %s5376_s10 = scalar_lea.vmem %s169_s28, 16  ;;  %s5383_s11 = scalar_lea.vmem %s169_s28, 32 }
  0x21   : > { %p5377_p1 = scmp.ne.s32.totalorder %s169_s28, %s5376_s10  ;;  %p5384_p2 = scmp.lt.s32.totalorder %s169_s28, %s169_s28 }
  0x22   : > { %p5385_p5 = scmp.lt.s32.totalorder %s5383_s11, %s5376_s10 }
  0x23   : > { %p5379_p13 = pnand %p5377_p1, %p5341_p12 }
  0x24   : > { %p5386_p3 = por %p5385_p5, %p5384_p2 }
  0x25   : > { %p5380_p0 = pneg %p5379_p13 }
  0x27   : > { %p5387_p10 = pnand %p5386_p3, %p5380_p0 }
  0x29   : > { %5390 = shalt.err (!%p5387_p10)
}
  0x2a   : > { %5204 = dma.hbm_to_vmem [thread:$0]  (!%p5605_p11), %s6792_s2, 16, %s169_s28, [#allocation6]  }
  0x2b   : > { %s5402_s14 = scalar_lea.vmem %s179_s30, 1024  ;;  %p5410_p13 = scmp.lt.s32.totalorder %s179_s30, %s179_s30 }
  0x2c   : > { %p5403_p7 = scmp.ne.s32.totalorder %s179_s30, %s5402_s14  ;;  %p5411_p6 = scmp.lt.s32.totalorder %s5402_s14, %s5402_s14 }
  0x2e   : > { %p5405_p1 = pnand %p5403_p7, %p5341_p12  ;;  %p5412_p4 = por %p5411_p6, %p5410_p13 }
  0x30   : > { %p5406_p9 = pneg %p5405_p1 }
  0x32   : > { %p5413_p2 = pnand %p5412_p4, %p5406_p9 }
  0x34   : > { %5416 = shalt.err (!%p5413_p2)
}
  0x35   : > { %5207 = dma.hbm_to_vmem [thread:$0]  (!%p5605_p11), %s6793_s3, 1024, %s179_s30, [#allocation9], %s5522_s6, %s5522_s6, %s5523_s7  }
  0x36   : > { %s5636_s25 = sadd.s32 1, %s5517_s18   ;;  %s29_s26 = sadd.s32 1, %s5513_s17 }
  0x37   : > { %s26_s27 = ssub.s32 %s5517_s18, %s5636_s25  ;;  %p36_p6 = scmp.ne.s32.totalorder %s5513_s17, %s5509_s16 }
  0x38   : > { %p27_p4 = scmp.eq.s32.totalorder %s26_s27, 0  ;;  %p37_p12 = scmp.eq.s32.totalorder %s5517_s18, 0 }
  0x39   : > { %p5219_p0 = scmp.lt.s32.totalorder %s5517_s18, 2  ;;  %p6803_p3 = scmp.eq.s32.totalorder %s5577_s19, 1 }
  0x3a   : > { %s5646_s28 = scalar_select %p27_p4, %s5513_s17, %s29_s26  }
  0x3b   : > { %p38_p5 = por %p37_p12, %p36_p6  ;;  %p5650_p10 = por %p6803_p3, %p36_p6 }
  0x3c   : > { %s192_s5 = sand.u32 1, %s5513_s17   ;;  %s4773_s8 = sshll.u32 %s5517_s18, 15 }
  0x3d   : > { %s6804_s29 = scalar_select %p5650_p10, 1, 0 }
  0x3e   : > { %s4364_s30 = sshll.u32 %s192_s5, 11  ;;  %s5659_s9 = scalar_lea.hbm %s6790_s0, %s4773_s8 }
  0x3f   : > { %s196_s10 = scalar_lea.vmem [#allocation2], %s4364_s30  ;;  %p5661_p11 = pnand %p5219_p0, %p38_p5 }
  0x40   : > { %s204_s11 = sshll.u32 %s196_s10, 4  ;;  %s5667_s13 = scalar_lea.sflag [#allocation3], %s192_s5  ;;  %s5665_s11 = int_to_ptr.vmem [resolvable:$true] %s204_s11 }
  0x41   : > { %s5417_s14 = scalar_lea.hbm %s5659_s9, 32768  ;;  %p5419_p1 = pneg %p5661_p11 }
  0x42   : > { %p5418_p7 = scmp.ne.s32.totalorder %s5659_s9, %s5417_s14  ;;  %s5422_s27 = scalar_lea.hbm %s6790_s0, 65536 }
  0x43   : > { %p5423_p2 = scmp.lt.s32.totalorder %s5659_s9, %s6790_s0  ;;  %p5424_p4 = scmp.lt.s32.totalorder %s5422_s27, %s5417_s14 }
  0x44   : > { %p5420_p9 = pnand %p5419_p1, %p5418_p7 }
  0x45   : > { %p5425_p6 = por %p5424_p4, %p5423_p2 }
  0x46   : > { %p5421_p13 = pneg %p5420_p9 }
  0x48   : > { %p5426_p12 = pnand %p5425_p6, %p5421_p13 }
  0x4a   : > { %5429 = shalt.err (!%p5426_p12)
}
  0x4b   : > { %s5430_s5 = scalar_lea.vmem %s5665_s11, 32768  ;;  %s5524_s30 = smov [#allocation2]  }
  0x4c   : > { %p5431_p0 = scmp.ne.s32.totalorder %s5665_s11, %s5430_s5  ;;  %s5435_s6 = sshll.u32 %s5524_s30, 4  ;;  %s5436_s6 = int_to_ptr.vmem [resolvable:$false] %s5435_s6 }
  0x4d   : > { %s5437_s7 = scalar_lea.vmem %s5436_s6, 65536  ;;  %p5438_p7 = scmp.lt.s32.totalorder %s5665_s11, %s5436_s6 }
  0x4e   : > { %p5433_p5 = pnand %p5431_p0, %p5419_p1  ;;  %p5439_p9 = scmp.lt.s32.totalorder %s5437_s7, %s5430_s5 }
  0x50   : > { %p5434_p3 = pneg %p5433_p5  ;;  %p5440_p10 = por %p5439_p9, %p5438_p7 }
  0x52   : > { %p5441_p8 = pnand %p5440_p10, %p5434_p3 }
  0x54   : > { %5444 = shalt.err (!%p5441_p8)
}
  0x55   : > { %s5525_s10 = smov 512   ;;  %s5526_s14 = smov 32  }
  0x56   : > { %5211 = dma.hbm_to_vmem [thread:$0]  (!%p5661_p11), %s5659_s9, 32768, %s5665_s11, %s5667_s13, %s5525_s10, %s5525_s10, %s5526_s14  }
  0x57   : > { %p6806_p1 = scmp.ne.s32.totalorder %s6801_s23, 0 }
  0x59   : > { %216 = sbr.rel (%p6806_p1) target bundleno = 1155 (0x483), region = 36 }
  0x5e   : > { %s5691_s20 = sand.u32 1, %s5509_s16   ;;  %p6807_p8 = scmp.ne.s32.totalorder %s6799_s21, 0 }
  0x5f   : > { %s4369_s24 = sshll.u32 %s5691_s20, 11  ;;  %s219_s27 = scalar_lea.sflag [#allocation3], %s5691_s20 }
  0x60   : > { %s5695_s26 = scalar_lea.vmem [#allocation2], %s4369_s24 }
  0x61   : > { %5488 = dma.done.wait (%p6807_p8), %s219_s27, 32768  }
  0x62   : > { %5490 = vsyncadd (%p6807_p8), %s219_s27, 4294934528  ;;  %p6808_p10 = scmp.eq.s32.totalorder %s5577_s19, 0 }
  0x64   : > { %5492 = dma.done.wait (%p6808_p10), [#allocation6], 8208   ;;  %p6809_p11 = pmov %p6808_p10 }
  0x65   : > { %p6810_p13 = pmov %p6808_p10 }
  0x66   : > { %5494 = vsyncadd (%p6809_p11), [#allocation6], 4294959088 }
  0x67   : > { %5496 = dma.done.wait (%p6810_p13), [#allocation9], 1024   ;;  %p6811_p2 = pmov %p6808_p10 }
  0x68   : > { %v5527_v0 = vmov 0   ;;  %v5266_v1 = vld [vmem:[#allocation5 + $0x38] sm:$0xff]   ;;  %v5267_v2 = vld [vmem:[#allocation5 + $0x30] sm:$0xff]   ;;  %v5268_v3 = vld [vmem:[#allocation5 + $0x28] sm:$0xff]   ;;  %s4373_s21 = sshll.u32 %s5691_s20, 8  ;;  %s4838_s9 = sshll.u32 %s5577_s19, 12 }
  0x69   : > { %5498 = vsyncadd (%p6811_p2), [#allocation9], 4294966272  ;;  %2317 = vmatprep.subr.bf16.mxu0 %v5527_v0  ;;  %5150 = vmatprep.subr.bf16.mxu1 %v5527_v0  ;;  %v5269_v4 = vld [vmem:[#allocation5 + $0x20] sm:$0xff]   ;;  %v5270_v5 = vld [vmem:[#allocation5 + $0x18] sm:$0xff]   ;;  %s6696_s23 = scalar_lea.vmem [#allocation10], %s4373_s21  ;;  %s6743_s8 = scalar_lea.hbm %s6794_s4, %s4838_s9 }
  0x6a   : > { %2318 = vmatpush1.bf16.msra.mxu0 %v5266_v1  ;;  %5166 = vmatpush1.bf16.msra.mxu1 %v5266_v1  ;;  %v5720_v6 = vld [vmem:[%s5695_s26] sm:$0xff]  ;;  %v5271_v11 = vld [vmem:[#allocation5 + $0x10] sm:$0xff]   ;;  %v5272_v13 = vld [vmem:[#allocation5 + $0x8] sm:$0xff]   ;;  %s4256_s11 = sshll.u32 %s6696_s23, 4  ;;  %s4243_s5 = scalar_lea.sflag [#allocation4], %s5691_s20  ;;  %s6745_s11 = int_to_ptr.vmem [resolvable:$true] %s4256_s11 }
  0x6b   : > { %2319 = vmatprep.subr.bf16.mxu0 %v5527_v0  ;;  %5151 = vmatprep.subr.bf16.mxu1 %v5527_v0  ;;  %v5723_v7 = vld [vmem:[%s5695_s26 + $0x20] sm:$0xff]  ;;  %v5274_v15 = vld [vmem:[#allocation5 + $0x78] sm:$0xff]   ;;  %v5275_v16 = vld [vmem:[#allocation5 + $0x70] sm:$0xff]   ;;  %s5445_s30 = scalar_lea.vmem %s6745_s11, 4096  ;;  %p6896_p6 = scmp.ne.s32.totalorder %s6804_s29, 0 }
  0x6c   : > { %v5726_v8 = vld [vmem:[%s5695_s26 + $0x600] sm:$0xff]  ;;  %v4376_v9 = vcombine.high %v5720_v6, %v5723_v7  ;;  %v5276_v17 = vld [vmem:[#allocation5 + $0x68] sm:$0xff]   ;;  %v5278_v19 = vld [vmem:[#allocation5 + $0x58] sm:$0xff]   ;;  %v4375_v28 = vcombine.low %v5720_v6, %v5723_v7  ;;  %p5446_p4 = scmp.ne.s32.totalorder %s6745_s11, %s5445_s30  ;;  %s5528_s19 = smov [#allocation10]  }
  0x6d   : > { %v5731_v10 = vld [vmem:[%s5695_s26 + $0x620] sm:$0xff]  ;;  %v5279_v20 = vld [vmem:[#allocation5 + $0x50] sm:$0xff]   ;;  %v5280_v21 = vld [vmem:[#allocation5 + $0x48] sm:$0xff]   ;;  %s5449_s6 = sshll.u32 %s5528_s19, 4  ;;  %s5450_s6 = int_to_ptr.vmem [resolvable:$false] %s5449_s6 }
  0x6e   : > { %2320 = vmatpush1.bf16.msra.mxu0 %v5267_v2  ;;  %5167 = vmatpush1.bf16.msra.mxu1 %v5267_v2  ;;  %v4568_v12 = vcombine.high %v5726_v8, %v5731_v10  ;;  %v5273_v14 = vld [vmem:[#allocation5] sm:$0xff]   ;;  %v5282_v27 = vld [vmem:[#allocation5 + $0xb8] sm:$0xff]   ;;  %v4567_v29 = vcombine.low %v5726_v8, %v5731_v10  ;;  %v5283_v33 = vld [vmem:[#allocation5 + $0xb0] sm:$0xff]   ;;  %p5447_p12 = pnand %p5446_p4, %p6896_p6  ;;  %s5451_s7 = scalar_lea.vmem %s5450_s6, 8192 }
  0x6f   : > { %2321 = vmatprep.subr.bf16.mxu0 %v5527_v0  ;;  %5152 = vmatprep.subr.bf16.mxu1 %v5527_v0  ;;  %v5277_v18 = vld [vmem:[#allocation5 + $0x60] sm:$0xff]   ;;  %v5302_v31 = vld [vmem:[#allocation5 + $0x138] sm:$0xff]   ;;  %v5304_v38 = vld [vmem:[#allocation5 + $0x130] sm:$0xff]   ;;  %p5452_p5 = scmp.lt.s32.totalorder %s6745_s11, %s5450_s6  ;;  %p5453_p3 = scmp.lt.s32.totalorder %s5451_s7, %s5445_s30 }
  0x70   : > { %2349 = vmatprep.mubr.bf16.mxu0 %v4376_v9  ;;  %2541 = vmatprep.mubr.bf16.mxu1 %v4568_v12  ;;  %v5281_v22 = vld [vmem:[#allocation5 + $0x40] sm:$0xff]   ;;  %v5284_v39 = vld [vmem:[#allocation5 + $0xa8] sm:$0xff]   ;;  %v5286_v50 = vld [vmem:[#allocation5 + $0x98] sm:$0xff]   ;;  %p5448_p0 = pneg %p5447_p12 }
  0x71   : > { %v270_v23 = vld [vmem:[%s5695_s26 + $0x40] sm:$0xff]  ;;  %v5305_v47 = vld [vmem:[#allocation5 + $0x128] sm:$0xff]   ;;  %v5287_v56 = vld [vmem:[#allocation5 + $0x90] sm:$0xff]   ;;  %p5454_p7 = por %p5453_p3, %p5452_p5 }
  0x72   : > { %2322 = vmatpush1.bf16.msra.mxu0 %v5268_v3  ;;  %5168 = vmatpush1.bf16.msra.mxu1 %v5268_v3  ;;  %v274_v24 = vld [vmem:[%s5695_s26 + $0x60] sm:$0xff]  ;;  %v5307_v61 = vld [vmem:[#allocation5 + $0x118] sm:$0xff]   ;;  %v5288_v62 = vld [vmem:[#allocation5 + $0x88] sm:$0xff]  }
  0x73   : > { %2323 = vmatprep.subr.bf16.mxu0 %v5527_v0  ;;  %5153 = vmatprep.subr.bf16.mxu1 %v5527_v0  ;;  %v462_v25 = vld [vmem:[%s5695_s26 + $0x640] sm:$0xff]  ;;  %v4384_v30 = vcombine.high %v270_v23, %v274_v24  ;;  %v4383_v40 = vcombine.low %v270_v23, %v274_v24  ;;  %v5290_v12 = vld [vmem:[#allocation5 + $0xf8] sm:$0xff]   ;;  %v5292_v24 = vld [vmem:[#allocation5 + $0xe8] sm:$0xff]   ;;  %p5455_p9 = pnand %p5454_p7, %p5448_p0 }
  0x74   : > { %v466_v26 = vld [vmem:[%s5695_s26 + $0x660] sm:$0xff] }
  0x75   : > { %v4576_v32 = vcombine.high %v462_v25, %v466_v26  ;;  %v278_v34 = vld [vmem:[%s5695_s26 + $0x80] sm:$0xff]  ;;  %v4575_v41 = vcombine.low %v462_v25, %v466_v26 }
  0x76   : > { %2324 = vmatpush1.bf16.msra.mxu0 %v5269_v4  ;;  %5169 = vmatpush1.bf16.msra.mxu1 %v5269_v4  ;;  %v282_v35 = vld [vmem:[%s5695_s26 + $0xa0] sm:$0xff]  ;;  %v5309_v4 = vld [vmem:[#allocation5 + $0x110] sm:$0xff]  }
  0x77   : > { %2325 = vmatprep.subr.bf16.mxu0 %v5527_v0  ;;  %5154 = vmatprep.subr.bf16.mxu1 %v5527_v0  ;;  %v470_v36 = vld [vmem:[%s5695_s26 + $0x680] sm:$0xff]  ;;  %v4392_v42 = vcombine.high %v278_v34, %v282_v35  ;;  %v4391_v51 = vcombine.low %v278_v34, %v282_v35  ;;  %v5294_v35 = vld [vmem:[#allocation5 + $0xd8] sm:$0xff]  }
  0x78   : > { %v474_v37 = vld [vmem:[%s5695_s26 + $0x6a0] sm:$0xff] }
  0x79   : > { %v4584_v43 = vcombine.high %v470_v36, %v474_v37  ;;  %v5285_v44 = vld [vmem:[#allocation5 + $0xa0] sm:$0xff]   ;;  %v4583_v52 = vcombine.low %v470_v36, %v474_v37 }
  0x7a   : > { %2326 = vmatpush1.bf16.msra.mxu0 %v5270_v5  ;;  %5170 = vmatpush1.bf16.msra.mxu1 %v5270_v5  ;;  %v286_v45 = vld [vmem:[%s5695_s26 + $0xc0] sm:$0xff] }
  0x7b   : > { %2327 = vmatprep.subr.bf16.mxu0 %v5527_v0  ;;  %5155 = vmatprep.subr.bf16.mxu1 %v5527_v0  ;;  %v290_v46 = vld [vmem:[%s5695_s26 + $0xe0] sm:$0xff] }
  0x7c   : > { %v478_v48 = vld [vmem:[%s5695_s26 + $0x6c0] sm:$0xff]  ;;  %v4400_v53 = vcombine.high %v286_v45, %v290_v46  ;;  %v4399_v63 = vcombine.low %v286_v45, %v290_v46 }
  0x7d   : > { %v482_v49 = vld [vmem:[%s5695_s26 + $0x6e0] sm:$0xff] }
  0x7e   : > { %2328 = vmatpush1.bf16.msra.mxu0 %v5271_v11  ;;  %5171 = vmatpush1.bf16.msra.mxu1 %v5271_v11  ;;  %v4592_v54 = vcombine.high %v478_v48, %v482_v49  ;;  %v5306_v55 = vld [vmem:[#allocation5 + $0x120] sm:$0xff]   ;;  %v4591_v1 = vcombine.low %v478_v48, %v482_v49 }
  0x7f   : > { %2329 = vmatprep.subr.bf16.mxu0 %v5527_v0  ;;  %5156 = vmatprep.subr.bf16.mxu1 %v5527_v0  ;;  %v294_v57 = vld [vmem:[%s5695_s26 + $0x100] sm:$0xff] }
  0x80   : > { %v298_v58 = vld [vmem:[%s5695_s26 + $0x120] sm:$0xff] }
  0x81   : > { %v486_v59 = vld [vmem:[%s5695_s26 + $0x700] sm:$0xff]  ;;  %v4408_v2 = vcombine.high %v294_v57, %v298_v58  ;;  %v4407_v10 = vcombine.low %v294_v57, %v298_v58  ;;  %v5298_v58 = vld [vmem:[#allocation5 + $0x1b8] sm:$0xff]  }
  0x82   : > { %2330 = vmatpush1.bf16.msra.mxu0 %v5272_v13  ;;  %5172 = vmatpush1.bf16.msra.mxu1 %v5272_v13  ;;  %v490_v60 = vld [vmem:[%s5695_s26 + $0x720] sm:$0xff] }
  0x83   : > { %2331 = vmatprep.subr.bf16.mxu0 %v5527_v0  ;;  %5157 = vmatprep.subr.bf16.mxu1 %v5527_v0  ;;  %v4600_v3 = vcombine.high %v486_v59, %v490_v60  ;;  %v5289_v5 = vld [vmem:[#allocation5 + $0x80] sm:$0xff]   ;;  %v4599_v11 = vcombine.low %v486_v59, %v490_v60 }
  0x84   : > { %v302_v6 = vld [vmem:[%s5695_s26 + $0x140] sm:$0xff] }
  0x85   : > { %v306_v7 = vld [vmem:[%s5695_s26 + $0x160] sm:$0xff] }
  0x86   : > { %2332 = vmatpush1.bf16.msra.mxu0 %v5273_v14  ;;  %5173 = vmatpush1.bf16.msra.mxu1 %v5273_v14  ;;  %v494_v8 = vld [vmem:[%s5695_s26 + $0x740] sm:$0xff]  ;;  %v4416_v13 = vcombine.high %v302_v6, %v306_v7 }
  0x87   : > { %2333 = vmatprep.subr.bf16.mxu0 %v5527_v0  ;;  %5158 = vmatprep.subr.bf16.mxu1 %v5527_v0  ;;  %v498_v9 = vld [vmem:[%s5695_s26 + $0x760] sm:$0xff] }
  0x88   : > { %v4608_v14 = vcombine.high %v494_v8, %v498_v9  ;;  %v4607_v23 = vcombine.low %v494_v8, %v498_v9  ;;  %v5300_v9 = vld [vmem:[#allocation5 + $0x1a8] sm:$0xff]  }
  0x8a   : > { %2334 = vmatpush2.bf16.msra.mxu0 %v5274_v15  ;;  %5174 = vmatpush2.bf16.msra.mxu1 %v5274_v15  ;;  %v5310_v15 = vld [vmem:[#allocation5 + $0x108] sm:$0xff]  }
  0x8b   : > { %2335 = vmatprep.subr.bf16.mxu0 %v5527_v0  ;;  %5159 = vmatprep.subr.bf16.mxu1 %v5527_v0 }
  0x8e   : > { %2336 = vmatpush2.bf16.msra.mxu0 %v5275_v16  ;;  %5175 = vmatpush2.bf16.msra.mxu1 %v5275_v16  ;;  %v5291_v16 = vld [vmem:[#allocation5 + $0xf0] sm:$0xff]  }
  0x8f   : > { %2337 = vmatprep.subr.bf16.mxu0 %v5527_v0  ;;  %5160 = vmatprep.subr.bf16.mxu1 %v5527_v0 }
  0x92   : > { %2338 = vmatpush2.bf16.msra.mxu0 %v5276_v17  ;;  %5176 = vmatpush2.bf16.msra.mxu1 %v5276_v17  ;;  %v310_v17 = vld [vmem:[%s5695_s26 + $0x180] sm:$0xff] }
  0x93   : > { %2339 = vmatprep.subr.bf16.mxu0 %v5527_v0  ;;  %5161 = vmatprep.subr.bf16.mxu1 %v5527_v0 }
  0x96   : > { %2340 = vmatpush2.bf16.msra.mxu0 %v5277_v18  ;;  %5177 = vmatpush2.bf16.msra.mxu1 %v5277_v18  ;;  %v314_v18 = vld [vmem:[%s5695_s26 + $0x1a0] sm:$0xff] }
  0x97   : > { %2341 = vmatprep.subr.bf16.mxu0 %v5527_v0  ;;  %5162 = vmatprep.subr.bf16.mxu1 %v5527_v0  ;;  %v4424_v25 = vcombine.high %v310_v17, %v314_v18 }
  0x9a   : > { %2342 = vmatpush2.bf16.msra.mxu0 %v5278_v19  ;;  %5178 = vmatpush2.bf16.msra.mxu1 %v5278_v19  ;;  %v502_v19 = vld [vmem:[%s5695_s26 + $0x780] sm:$0xff] }
  0x9b   : > { %2343 = vmatprep.subr.bf16.mxu0 %v5527_v0  ;;  %5163 = vmatprep.subr.bf16.mxu1 %v5527_v0 }
  0x9e   : > { %2344 = vmatpush2.bf16.msra.mxu0 %v5279_v20  ;;  %5179 = vmatpush2.bf16.msra.mxu1 %v5279_v20  ;;  %v506_v20 = vld [vmem:[%s5695_s26 + $0x7a0] sm:$0xff] }
  0x9f   : > { %2345 = vmatprep.subr.bf16.mxu0 %v5527_v0  ;;  %5164 = vmatprep.subr.bf16.mxu1 %v5527_v0  ;;  %v4616_v26 = vcombine.high %v502_v19, %v506_v20  ;;  %v4615_v34 = vcombine.low %v502_v19, %v506_v20 }
  0xa2   : > { %2346 = vmatpush2.bf16.msra.mxu0 %v5280_v21  ;;  %5180 = vmatpush2.bf16.msra.mxu1 %v5280_v21  ;;  %v5311_v21 = vld [vmem:[#allocation5 + $0x100] sm:$0xff]  }
  0xa3   : > { %2347 = vmatprep.subr.bf16.mxu0 %v5527_v0  ;;  %5165 = vmatprep.subr.bf16.mxu1 %v5527_v0 }
  0xa6   : > { %2348 = vmatpush2.bf16.msra.mxu0 %v5281_v22  ;;  %5181 = vmatpush2.bf16.msra.mxu1 %v5281_v22  ;;  %v4415_v22 = vcombine.low %v302_v6, %v306_v7 }
  0xa7   : > { %2606 = vmatprep.subr.bf16.mxu1 %v5527_v0  ;;  %2895 = vmatprep.subr.bf16.mxu0 %v5527_v0 }
  0xa9   : > { %2350 = vmatmul.mubr.bf16.vlgmr.msra.gmra.mxu0 %v4375_v28  ;;  %2542 = vmatmul.mubr.bf16.vlgmr.msra.gmra.mxu1 %v4567_v29  ;;  %v5293_v28 = vld [vmem:[#allocation5 + $0xe0] sm:$0xff]  }
  0xaa   : > { %2607 = vmatpush1.bf16.msra.mxu1 %v5282_v27  ;;  %2357 = vmatprep.mubr.bf16.mxu0 %v4384_v30  ;;  %v5312_v27 = vld [vmem:[#allocation5 + $0x178] sm:$0xff]   ;;  %v318_v29 = vld [vmem:[%s5695_s26 + $0x1c0] sm:$0xff] }
  0xab   : > { %2608 = vmatprep.subr.bf16.mxu1 %v5527_v0  ;;  %2549 = vmatprep.mubr.bf16.mxu1 %v4576_v32  ;;  %v322_v30 = vld [vmem:[%s5695_s26 + $0x1e0] sm:$0xff] }
  0xac   : > { %2896 = vmatpush1.bf16.msra.mxu0 %v5302_v31  ;;  %v510_v31 = vld [vmem:[%s5695_s26 + $0x7c0] sm:$0xff]  ;;  %v4432_v36 = vcombine.high %v318_v29, %v322_v30  ;;  %v4431_v45 = vcombine.low %v318_v29, %v322_v30 }
  0xad   : > { %2897 = vmatprep.subr.bf16.mxu0 %v5527_v0  ;;  %v514_v32 = vld [vmem:[%s5695_s26 + $0x7e0] sm:$0xff] }
  0xae   : > { %2609 = vmatpush1.bf16.msra.mxu1 %v5283_v33  ;;  %v4423_v33 = vcombine.low %v310_v17, %v314_v18  ;;  %v4624_v37 = vcombine.high %v510_v31, %v514_v32  ;;  %v4623_v46 = vcombine.low %v510_v31, %v514_v32  ;;  %v5313_v31 = vld [vmem:[#allocation5 + $0x188] sm:$0xff]   ;;  %v366_v32 = vld [vmem:[%s5695_s26 + $0x340] sm:$0xff] }
  0xaf   : > { %2610 = vmatprep.subr.bf16.mxu1 %v5527_v0 }
  0xb0   : > { %2898 = vmatpush1.bf16.msra.mxu0 %v5304_v38  ;;  %v5314_v38 = vld [vmem:[#allocation5 + $0x170] sm:$0xff]  }
  0xb1   : > { %2358 = vmatmul.mubr.bf16.gmra.mxu0 %v4383_v40  ;;  %2550 = vmatmul.mubr.bf16.gmra.mxu1 %v4575_v41  ;;  %v326_v40 = vld [vmem:[%s5695_s26 + $0x200] sm:$0xff] }
  0xb2   : > { %2611 = vmatpush1.bf16.msra.mxu1 %v5284_v39  ;;  %2365 = vmatprep.mubr.bf16.mxu0 %v4392_v42  ;;  %v5295_v39 = vld [vmem:[#allocation5 + $0xd0] sm:$0xff]   ;;  %v330_v41 = vld [vmem:[%s5695_s26 + $0x220] sm:$0xff]  ;;  %v263_v42 = vld [vmem:[%s5695_s26 + $0x8] sm:$0xff] }
  0xb3   : > { %2612 = vmatprep.subr.bf16.mxu1 %v5527_v0  ;;  %2557 = vmatprep.mubr.bf16.mxu1 %v4584_v43  ;;  %v267_v43 = vld [vmem:[%s5695_s26 + $0x28] sm:$0xff]  ;;  %v4440_v48 = vcombine.high %v326_v40, %v330_v41  ;;  %v4439_v57 = vcombine.low %v326_v40, %v330_v41  ;;  %v5322_v41 = vld [vmem:[#allocation5 + $0x1f8] sm:$0xff]  }
  0xb4   : > { %2899 = vmatprep.subr.bf16.mxu0 %v5527_v0  ;;  %v4378_v49 = vcombine.high %v263_v42, %v267_v43 }
  0xb5   : > { %2900 = vmatpush1.bf16.msra.mxu0 %v5305_v47  ;;  %v5296_v47 = vld [vmem:[#allocation5 + $0xc8] sm:$0xff]  }
  0xb6   : > { %2613 = vmatpush1.bf16.msra.mxu1 %v5285_v44  ;;  %2901 = vmatprep.subr.bf16.mxu0 %v5527_v0  ;;  %v5315_v44 = vld [vmem:[#allocation5 + $0x168] sm:$0xff]  }
  0xb7   : > { %2614 = vmatprep.subr.bf16.mxu1 %v5527_v0 }
  0xb9   : > { %2366 = vmatmul.mubr.bf16.gmra.mxu0 %v4391_v51  ;;  %2558 = vmatmul.mubr.bf16.gmra.mxu1 %v4583_v52  ;;  %v5297_v51 = vld [vmem:[#allocation5 + $0xc0] sm:$0xff]  }
  0xba   : > { %2615 = vmatpush1.bf16.msra.mxu1 %v5286_v50  ;;  %2373 = vmatprep.mubr.bf16.mxu0 %v4400_v53  ;;  %v5316_v50 = vld [vmem:[#allocation5 + $0x160] sm:$0xff]  }
  0xbb   : > { %2616 = vmatprep.subr.bf16.mxu1 %v5527_v0  ;;  %2565 = vmatprep.mubr.bf16.mxu1 %v4592_v54  ;;  %v334_v52 = vld [vmem:[%s5695_s26 + $0x240] sm:$0xff]  ;;  %v271_v54 = vld [vmem:[%s5695_s26 + $0x48] sm:$0xff] }
  0xbc   : > { %2902 = vmatpush1.bf16.msra.mxu0 %v5306_v55  ;;  %v338_v53 = vld [vmem:[%s5695_s26 + $0x260] sm:$0xff]  ;;  %v275_v55 = vld [vmem:[%s5695_s26 + $0x68] sm:$0xff] }
  0xbd   : > { %2903 = vmatprep.subr.bf16.mxu0 %v5527_v0  ;;  %v4448_v59 = vcombine.high %v334_v52, %v338_v53  ;;  %v4386_v60 = vcombine.high %v271_v54, %v275_v55  ;;  %v4385_v6 = vcombine.low %v271_v54, %v275_v55  ;;  %v319_v54 = vld [vmem:[%s5695_s26 + $0x1c8] sm:$0xff] }
  0xbe   : > { %2617 = vmatpush1.bf16.msra.mxu1 %v5287_v56  ;;  %v4377_v56 = vcombine.low %v263_v42, %v267_v43  ;;  %v374_v42 = vld [vmem:[%s5695_s26 + $0x380] sm:$0xff]  ;;  %v323_v55 = vld [vmem:[%s5695_s26 + $0x1e8] sm:$0xff] }
  0xbf   : > { %2618 = vmatprep.subr.bf16.mxu1 %v5527_v0  ;;  %v378_v43 = vld [vmem:[%s5695_s26 + $0x3a0] sm:$0xff] }
  0xc0   : > { %2904 = vmatpush1.bf16.msra.mxu0 %v5307_v61  ;;  %v5317_v61 = vld [vmem:[#allocation5 + $0x158] sm:$0xff]  }
  0xc1   : > { %2374 = vmatmul.mubr.bf16.gmra.mxu0 %v4399_v63  ;;  %2566 = vmatmul.mubr.bf16.gmra.mxu1 %v4591_v1  ;;  %v5299_v63 = vld [vmem:[#allocation5 + $0x1b0] sm:$0xff]   ;;  %v346_v1 = vld [vmem:[%s5695_s26 + $0x2a0] sm:$0xff] }
  0xc2   : > { %2619 = vmatpush1.bf16.msra.mxu1 %v5288_v62  ;;  %2381 = vmatprep.mubr.bf16.mxu0 %v4408_v2  ;;  %v342_v62 = vld [vmem:[%s5695_s26 + $0x280] sm:$0xff]  ;;  %v279_v2 = vld [vmem:[%s5695_s26 + $0x88] sm:$0xff] }
  0xc3   : > { %2620 = vmatprep.subr.bf16.mxu1 %v5527_v0  ;;  %2573 = vmatprep.mubr.bf16.mxu1 %v4600_v3  ;;  %v283_v3 = vld [vmem:[%s5695_s26 + $0xa8] sm:$0xff]  ;;  %v4456_v7 = vcombine.high %v342_v62, %v346_v1  ;;  %v4455_v17 = vcombine.low %v342_v62, %v346_v1  ;;  %v394_v62 = vld [vmem:[%s5695_s26 + $0x420] sm:$0xff] }
  0xc4   : > { %2905 = vmatprep.subr.bf16.mxu0 %v5527_v0  ;;  %v4394_v8 = vcombine.high %v279_v2, %v283_v3  ;;  %v4393_v18 = vcombine.low %v279_v2, %v283_v3  ;;  %v331_v1 = vld [vmem:[%s5695_s26 + $0x228] sm:$0xff]  ;;  %v4433_v3 = vcombine.low %v319_v54, %v323_v55 }
  0xc5   : > { %2906 = vmatpush1.bf16.msra.mxu0 %v5309_v4  ;;  %v5319_v4 = vld [vmem:[#allocation5 + $0x150] sm:$0xff]  }
  0xc6   : > { %2621 = vmatpush1.bf16.msra.mxu1 %v5289_v5  ;;  %2907 = vmatprep.subr.bf16.mxu0 %v5527_v0  ;;  %v4447_v5 = vcombine.low %v334_v52, %v338_v53  ;;  %v382_v52 = vld [vmem:[%s5695_s26 + $0x3c0] sm:$0xff] }
  0xc7   : > { %2622 = vmatprep.subr.bf16.mxu1 %v5527_v0  ;;  %v386_v53 = vld [vmem:[%s5695_s26 + $0x3e0] sm:$0xff] }
  0xc8   : > { %v4495_v2 = vcombine.low %v382_v52, %v386_v53 }
  0xc9   : > { %2382 = vmatmul.mubr.bf16.gmra.mxu0 %v4407_v10  ;;  %2574 = vmatmul.mubr.bf16.gmra.mxu1 %v4599_v11  ;;  %v5320_v10 = vld [vmem:[#allocation5 + $0x148] sm:$0xff]   ;;  %v350_v11 = vld [vmem:[%s5695_s26 + $0x2c0] sm:$0xff] }
  0xca   : > { %2623 = vmatpush2.bf16.msra.mxu1 %v5290_v12  ;;  %2389 = vmatprep.mubr.bf16.mxu0 %v4416_v13  ;;  %v354_v12 = vld [vmem:[%s5695_s26 + $0x2e0] sm:$0xff]  ;;  %v287_v13 = vld [vmem:[%s5695_s26 + $0xc8] sm:$0xff] }
  0xcb   : > { %2624 = vmatprep.subr.bf16.mxu1 %v5527_v0  ;;  %2581 = vmatprep.mubr.bf16.mxu1 %v4608_v14  ;;  %v291_v14 = vld [vmem:[%s5695_s26 + $0xe8] sm:$0xff]  ;;  %v4464_v19 = vcombine.high %v350_v11, %v354_v12 }
  0xcc   : > { %2908 = vmatpush1.bf16.msra.mxu0 %v5310_v15  ;;  %v5301_v15 = vld [vmem:[#allocation5 + $0x1a0] sm:$0xff]   ;;  %v4402_v20 = vcombine.high %v287_v13, %v291_v14 }
  0xcd   : > { %2909 = vmatprep.subr.bf16.mxu0 %v5527_v0 }
  0xce   : > { %2625 = vmatpush2.bf16.msra.mxu1 %v5291_v16  ;;  %v5321_v16 = vld [vmem:[#allocation5 + $0x140] sm:$0xff]  }
  0xcf   : > { %2626 = vmatprep.subr.bf16.mxu1 %v5527_v0 }
  0xd0   : > { %2910 = vmatpush1.bf16.msra.mxu0 %v5311_v21  ;;  %v5303_v21 = vld [vmem:[#allocation5 + $0x198] sm:$0xff]  }
  0xd1   : > { %2390 = vmatmul.mubr.bf16.gmra.mxu0 %v4415_v22  ;;  %2582 = vmatmul.mubr.bf16.gmra.mxu1 %v4607_v23  ;;  %v358_v22 = vld [vmem:[%s5695_s26 + $0x300] sm:$0xff] }
  0xd2   : > { %2627 = vmatpush2.bf16.msra.mxu1 %v5292_v24  ;;  %2397 = vmatprep.mubr.bf16.mxu0 %v4424_v25  ;;  %v362_v23 = vld [vmem:[%s5695_s26 + $0x320] sm:$0xff]  ;;  %v295_v24 = vld [vmem:[%s5695_s26 + $0x108] sm:$0xff] }
  0xd3   : > { %2628 = vmatprep.subr.bf16.mxu1 %v5527_v0  ;;  %2589 = vmatprep.mubr.bf16.mxu1 %v4616_v26  ;;  %v299_v25 = vld [vmem:[%s5695_s26 + $0x128] sm:$0xff]  ;;  %v5308_v26 = vld [vmem:[#allocation5 + $0x190] sm:$0xff]   ;;  %v4472_v29 = vcombine.high %v358_v22, %v362_v23 }
  0xd4   : > { %2911 = vmatprep.subr.bf16.mxu0 %v5527_v0  ;;  %v4410_v30 = vcombine.high %v295_v24, %v299_v25 }
  0xd5   : > { %2912 = vmatpush2.bf16.msra.mxu0 %v5312_v27  ;;  %v4463_v27 = vcombine.low %v350_v11, %v354_v12 }
  0xd6   : > { %2629 = vmatpush2.bf16.msra.mxu1 %v5293_v28  ;;  %2913 = vmatprep.subr.bf16.mxu0 %v5527_v0  ;;  %v4401_v28 = vcombine.low %v287_v13, %v291_v14  ;;  %v406_v14 = vld [vmem:[%s5695_s26 + $0x480] sm:$0xff] }
  0xd7   : > { %2630 = vmatprep.subr.bf16.mxu1 %v5527_v0 }
  0xd9   : > { %2398 = vmatmul.mubr.bf16.gmra.mxu0 %v4423_v33  ;;  %2590 = vmatmul.mubr.bf16.gmra.mxu1 %v4615_v34  ;;  %v370_v33 = vld [vmem:[%s5695_s26 + $0x360] sm:$0xff]  ;;  %v303_v34 = vld [vmem:[%s5695_s26 + $0x148] sm:$0xff] }
  0xda   : > { %2631 = vmatpush2.bf16.msra.mxu1 %v5294_v35  ;;  %2405 = vmatprep.mubr.bf16.mxu0 %v4432_v36  ;;  %v307_v35 = vld [vmem:[%s5695_s26 + $0x168] sm:$0xff]  ;;  %v5318_v36 = vld [vmem:[#allocation5 + $0x180] sm:$0xff]  }
  0xdb   : > { %2632 = vmatprep.subr.bf16.mxu1 %v5527_v0  ;;  %2597 = vmatprep.mubr.bf16.mxu1 %v4624_v37  ;;  %v4471_v37 = vcombine.low %v358_v22, %v362_v23  ;;  %v4418_v40 = vcombine.high %v303_v34, %v307_v35  ;;  %v414_v23 = vld [vmem:[%s5695_s26 + $0x4c0] sm:$0xff] }
  0xdc   : > { %2914 = vmatpush2.bf16.msra.mxu0 %v5314_v38  ;;  %v4409_v38 = vcombine.low %v295_v24, %v299_v25  ;;  %v418_v24 = vld [vmem:[%s5695_s26 + $0x4e0] sm:$0xff]  ;;  %v351_v25 = vld [vmem:[%s5695_s26 + $0x2c8] sm:$0xff] }
  0xdd   : > { %2915 = vmatprep.subr.bf16.mxu0 %v5527_v0 }
  0xde   : > { %2633 = vmatpush2.bf16.msra.mxu1 %v5295_v39  ;;  %v4480_v39 = vcombine.high %v366_v32, %v370_v33 }
  0xdf   : > { %2634 = vmatprep.subr.bf16.mxu1 %v5527_v0 }
  0xe0   : > { %2916 = vmatpush2.bf16.msra.mxu0 %v5315_v44  ;;  %v311_v44 = vld [vmem:[%s5695_s26 + $0x188] sm:$0xff] }
  0xe1   : > { %2406 = vmatmul.mubr.bf16.gmra.mxu0 %v4431_v45  ;;  %2598 = vmatmul.mubr.bf16.gmra.mxu1 %v4623_v46  ;;  %v315_v45 = vld [vmem:[%s5695_s26 + $0x1a8] sm:$0xff]  ;;  %v5323_v46 = vld [vmem:[#allocation5 + $0x1f0] sm:$0xff]  }
  0xe2   : > { %2635 = vmatpush2.bf16.msra.mxu1 %v5296_v47  ;;  %2413 = vmatprep.mubr.bf16.mxu0 %v4440_v48  ;;  %v4479_v47 = vcombine.low %v366_v32, %v370_v33  ;;  %v4417_v48 = vcombine.low %v303_v34, %v307_v35  ;;  %v5327_v32 = vld [vmem:[#allocation5 + $0x1d0] sm:$0xff]   ;;  %v426_v33 = vld [vmem:[%s5695_s26 + $0x520] sm:$0xff]  ;;  %v359_v34 = vld [vmem:[%s5695_s26 + $0x308] sm:$0xff] }
  0xe3   : > { %2636 = vmatprep.subr.bf16.mxu1 %v5527_v0  ;;  %2638 = vmatprep.mubr.bf16.mxu1 %v4378_v49  ;;  %v4488_v49 = vcombine.high %v374_v42, %v378_v43  ;;  %v363_v35 = vld [vmem:[%s5695_s26 + $0x328] sm:$0xff] }
  0xe4   : > { %2917 = vmatprep.subr.bf16.mxu0 %v5527_v0 }
  0xe5   : > { %2918 = vmatpush2.bf16.msra.mxu0 %v5316_v50  ;;  %v4426_v50 = vcombine.high %v311_v44, %v315_v45 }
  0xe6   : > { %2637 = vmatpush2.bf16.msra.mxu1 %v5297_v51  ;;  %2919 = vmatprep.subr.bf16.mxu0 %v5527_v0  ;;  %v5324_v51 = vld [vmem:[#allocation5 + $0x1e8] sm:$0xff]  }
  0xe7   : > { %3184 = vmatprep.subr.bf16.mxu1 %v5527_v0 }
  0xe9   : > { %2414 = vmatmul.mubr.bf16.gmra.mxu0 %v4439_v57  ;;  %2639 = vmatmul.mubr.bf16.vlgmr.msra.gmra.mxu1 %v4377_v56  ;;  %v4487_v56 = vcombine.low %v374_v42, %v378_v43  ;;  %v4425_v57 = vcombine.low %v311_v44, %v315_v45  ;;  %v367_v42 = vld [vmem:[%s5695_s26 + $0x348] sm:$0xff]  ;;  %v4473_v45 = vcombine.low %v359_v34, %v363_v35 }
  0xea   : > { %3185 = vmatpush1.bf16.msra.mxu1 %v5298_v58  ;;  %2421 = vmatprep.mubr.bf16.mxu0 %v4448_v59  ;;  %v4496_v58 = vcombine.high %v382_v52, %v386_v53  ;;  %v4434_v59 = vcombine.high %v319_v54, %v323_v55  ;;  %v371_v43 = vld [vmem:[%s5695_s26 + $0x368] sm:$0xff] }
  0xeb   : > { %2646 = vmatprep.mubr.bf16.mxu1 %v4386_v60  ;;  %3186 = vmatprep.subr.bf16.mxu1 %v5527_v0  ;;  %v390_v60 = vld [vmem:[%s5695_s26 + $0x400] sm:$0xff]  ;;  %v379_v52 = vld [vmem:[%s5695_s26 + $0x3a8] sm:$0xff]  ;;  %v4481_v54 = vcombine.low %v367_v42, %v371_v43 }
  0xec   : > { %2920 = vmatpush2.bf16.msra.mxu0 %v5317_v61  ;;  %v5325_v61 = vld [vmem:[#allocation5 + $0x1e0] sm:$0xff]  }
  0xed   : > { %2921 = vmatprep.subr.bf16.mxu0 %v5527_v0 }
  0xee   : > { %3187 = vmatpush1.bf16.msra.mxu1 %v5299_v63  ;;  %v327_v63 = vld [vmem:[%s5695_s26 + $0x208] sm:$0xff] }
  0xef   : > { %3188 = vmatprep.subr.bf16.mxu1 %v5527_v0  ;;  %v4441_v11 = vcombine.low %v327_v63, %v331_v1 }
  0xf0   : > { %2922 = vmatpush2.bf16.msra.mxu0 %v5319_v4  ;;  %v4504_v4 = vcombine.high %v390_v60, %v394_v62 }
  0xf1   : > { %2422 = vmatmul.mubr.bf16.gmra.mxu0 %v4447_v5  ;;  %2647 = vmatmul.mubr.bf16.gmra.mxu1 %v4385_v6  ;;  %v4442_v5 = vcombine.high %v327_v63, %v331_v1  ;;  %v398_v6 = vld [vmem:[%s5695_s26 + $0x440] sm:$0xff] }
  0xf2   : > { %2429 = vmatprep.mubr.bf16.mxu0 %v4456_v7  ;;  %2654 = vmatprep.mubr.bf16.mxu1 %v4394_v8  ;;  %v402_v7 = vld [vmem:[%s5695_s26 + $0x460] sm:$0xff]  ;;  %v335_v8 = vld [vmem:[%s5695_s26 + $0x248] sm:$0xff] }
  0xf3   : > { %3189 = vmatpush1.bf16.msra.mxu1 %v5300_v9  ;;  %2923 = vmatprep.subr.bf16.mxu0 %v5527_v0  ;;  %v339_v9 = vld [vmem:[%s5695_s26 + $0x268] sm:$0xff]  ;;  %v4512_v12 = vcombine.high %v398_v6, %v402_v7 }
  0xf4   : > { %3190 = vmatprep.subr.bf16.mxu1 %v5527_v0  ;;  %2924 = vmatpush2.bf16.msra.mxu0 %v5320_v10  ;;  %v4503_v10 = vcombine.low %v390_v60, %v394_v62  ;;  %v4450_v13 = vcombine.high %v335_v8, %v339_v9  ;;  %v387_v60 = vld [vmem:[%s5695_s26 + $0x3e8] sm:$0xff] }
  0xf5   : > { %2925 = vmatprep.subr.bf16.mxu0 %v5527_v0 }
  0xf7   : > { %3191 = vmatpush1.bf16.msra.mxu1 %v5301_v15  ;;  %v5326_v15 = vld [vmem:[#allocation5 + $0x1d8] sm:$0xff]  }
  0xf8   : > { %3192 = vmatprep.subr.bf16.mxu1 %v5527_v0  ;;  %2926 = vmatpush2.bf16.msra.mxu0 %v5321_v16  ;;  %v410_v16 = vld [vmem:[%s5695_s26 + $0x4a0] sm:$0xff] }
  0xf9   : > { %2430 = vmatmul.mubr.bf16.gmra.mxu0 %v4455_v17  ;;  %2655 = vmatmul.mubr.bf16.gmra.mxu1 %v4393_v18  ;;  %v343_v17 = vld [vmem:[%s5695_s26 + $0x288] sm:$0xff] }
  0xfa   : > { %2437 = vmatprep.mubr.bf16.mxu0 %v4464_v19  ;;  %2662 = vmatprep.mubr.bf16.mxu1 %v4402_v20  ;;  %v347_v18 = vld [vmem:[%s5695_s26 + $0x2a8] sm:$0xff]  ;;  %v4511_v19 = vcombine.low %v398_v6, %v402_v7  ;;  %v4449_v20 = vcombine.low %v335_v8, %v339_v9 }
  0xfb   : > { %3193 = vmatpush1.bf16.msra.mxu1 %v5303_v21  ;;  %v4520_v21 = vcombine.high %v406_v14, %v410_v16  ;;  %v4458_v22 = vcombine.high %v343_v17, %v347_v18 }
  0xfc   : > { %3194 = vmatprep.subr.bf16.mxu1 %v5527_v0 }
  0xff   : > { %3195 = vmatpush1.bf16.msra.mxu1 %v5308_v26  ;;  %v355_v26 = vld [vmem:[%s5695_s26 + $0x2e8] sm:$0xff] }
 0x100   : > { %3196 = vmatprep.subr.bf16.mxu1 %v5527_v0 }
 0x101   : > { %2438 = vmatmul.mubr.bf16.gmra.mxu0 %v4463_v27  ;;  %2663 = vmatmul.mubr.bf16.gmra.mxu1 %v4401_v28  ;;  %v4519_v27 = vcombine.low %v406_v14, %v410_v16  ;;  %v4457_v28 = vcombine.low %v343_v17, %v347_v18 }
 0x102   : > { %2445 = vmatprep.mubr.bf16.mxu0 %v4472_v29  ;;  %2670 = vmatprep.mubr.bf16.mxu1 %v4410_v30  ;;  %v4528_v29 = vcombine.high %v414_v23, %v418_v24  ;;  %v4466_v30 = vcombine.high %v351_v25, %v355_v26 }
 0x103   : > { %3197 = vmatpush1.bf16.msra.mxu1 %v5313_v31  ;;  %v422_v31 = vld [vmem:[%s5695_s26 + $0x500] sm:$0xff] }
 0x104   : > { %3198 = vmatprep.subr.bf16.mxu1 %v5527_v0  ;;  %v4535_v44 = vcombine.low %v422_v31, %v426_v33 }
 0x107   : > { %3199 = vmatpush1.bf16.msra.mxu1 %v5318_v36  ;;  %v4527_v36 = vcombine.low %v414_v23, %v418_v24  ;;  %v411_v23 = vld [vmem:[%s5695_s26 + $0x4a8] sm:$0xff]  ;;  %v280_v24 = vld [vmem:[%s5695_s26 + $0x90] sm:$0xff] }
 0x108   : > { %3200 = vmatprep.subr.bf16.mxu1 %v5527_v0 }
 0x109   : > { %2446 = vmatmul.mubr.bf16.gmra.mxu0 %v4471_v37  ;;  %2671 = vmatmul.mubr.bf16.gmra.mxu1 %v4409_v38  ;;  %v4465_v37 = vcombine.low %v351_v25, %v355_v26  ;;  %v4536_v38 = vcombine.high %v422_v31, %v426_v33  ;;  %v284_v25 = vld [vmem:[%s5695_s26 + $0xb0] sm:$0xff] }
 0x10a   : > { %2453 = vmatprep.mubr.bf16.mxu0 %v4480_v39  ;;  %2678 = vmatprep.mubr.bf16.mxu1 %v4418_v40  ;;  %v4474_v39 = vcombine.high %v359_v34, %v363_v35  ;;  %v430_v40 = vld [vmem:[%s5695_s26 + $0x540] sm:$0xff]  ;;  %v4396_v31 = vcombine.high %v280_v24, %v284_v25 }
 0x10b   : > { %3201 = vmatpush2.bf16.msra.mxu1 %v5322_v41  ;;  %v434_v41 = vld [vmem:[%s5695_s26 + $0x560] sm:$0xff] }
 0x10c   : > { %3202 = vmatprep.subr.bf16.mxu1 %v5527_v0  ;;  %v4543_v53 = vcombine.low %v430_v40, %v434_v41 }
 0x10f   : > { %3203 = vmatpush2.bf16.msra.mxu1 %v5323_v46  ;;  %v4544_v46 = vcombine.high %v430_v40, %v434_v41  ;;  %v288_v40 = vld [vmem:[%s5695_s26 + $0xd0] sm:$0xff] }
 0x110   : > { %3204 = vmatprep.subr.bf16.mxu1 %v5527_v0  ;;  %v292_v41 = vld [vmem:[%s5695_s26 + $0xf0] sm:$0xff] }
 0x111   : > { %2454 = vmatmul.mubr.bf16.gmra.mxu0 %v4479_v47  ;;  %2679 = vmatmul.mubr.bf16.gmra.mxu1 %v4417_v48  ;;  %v4482_v47 = vcombine.high %v367_v42, %v371_v43  ;;  %v438_v48 = vld [vmem:[%s5695_s26 + $0x580] sm:$0xff] }
 0x112   : > { %2461 = vmatprep.mubr.bf16.mxu0 %v4488_v49  ;;  %2686 = vmatprep.mubr.bf16.mxu1 %v4426_v50  ;;  %v5328_v49 = vld [vmem:[#allocation5 + $0x1c8] sm:$0xff]   ;;  %v442_v50 = vld [vmem:[%s5695_s26 + $0x5a0] sm:$0xff] }
 0x113   : > { %3205 = vmatpush2.bf16.msra.mxu1 %v5324_v51  ;;  %v375_v51 = vld [vmem:[%s5695_s26 + $0x388] sm:$0xff]  ;;  %v4552_v55 = vcombine.high %v438_v48, %v442_v50 }
 0x114   : > { %3206 = vmatprep.subr.bf16.mxu1 %v5527_v0  ;;  %v4489_v62 = vcombine.low %v375_v51, %v379_v52 }
 0x117   : > { %3207 = vmatpush2.bf16.msra.mxu1 %v5325_v61  ;;  %v4551_v61 = vcombine.low %v438_v48, %v442_v50 }
 0x118   : > { %3208 = vmatprep.subr.bf16.mxu1 %v5527_v0 }
 0x119   : > { %2462 = vmatmul.mubr.bf16.gmra.mxu0 %v4487_v56  ;;  %2687 = vmatmul.mubr.bf16.gmra.mxu1 %v4425_v57  ;;  %v4490_v56 = vcombine.high %v375_v51, %v379_v52  ;;  %v446_v57 = vld [vmem:[%s5695_s26 + $0x5c0] sm:$0xff]  ;;  %v423_v52 = vld [vmem:[%s5695_s26 + $0x508] sm:$0xff] }
 0x11a   : > { %2469 = vmatprep.mubr.bf16.mxu0 %v4496_v58  ;;  %2694 = vmatprep.mubr.bf16.mxu1 %v4434_v59  ;;  %v450_v58 = vld [vmem:[%s5695_s26 + $0x5e0] sm:$0xff]  ;;  %v383_v59 = vld [vmem:[%s5695_s26 + $0x3c8] sm:$0xff] }
 0x11b   : > { %3209 = vmatpush2.bf16.msra.mxu1 %v5326_v15  ;;  %v4560_v63 = vcombine.high %v446_v57, %v450_v58  ;;  %v4498_v1 = vcombine.high %v383_v59, %v387_v60  ;;  %v4559_v6 = vcombine.low %v446_v57, %v450_v58  ;;  %v4497_v7 = vcombine.low %v383_v59, %v387_v60  ;;  %v300_v57 = vld [vmem:[%s5695_s26 + $0x130] sm:$0xff] }
 0x11c   : > { %3210 = vmatprep.subr.bf16.mxu1 %v5527_v0 }
 0x11f   : > { %3211 = vmatpush2.bf16.msra.mxu1 %v5327_v32 }
 0x120   : > { %3212 = vmatprep.subr.bf16.mxu1 %v5527_v0 }
 0x121   : > { %2470 = vmatmul.mubr.bf16.gmra.mxu0 %v4495_v2  ;;  %2695 = vmatmul.mubr.bf16.gmra.mxu1 %v4433_v3  ;;  %v5329_v2 = vld [vmem:[#allocation5 + $0x1c0] sm:$0xff]   ;;  %v395_v3 = vld [vmem:[%s5695_s26 + $0x428] sm:$0xff] }
 0x122   : > { %2477 = vmatprep.mubr.bf16.mxu0 %v4504_v4  ;;  %2702 = vmatprep.mubr.bf16.mxu1 %v4442_v5  ;;  %v264_v4 = vld [vmem:[%s5695_s26 + $0x10] sm:$0xff] }
 0x123   : > { %3213 = vmatpush2.bf16.msra.mxu1 %v5328_v49  ;;  %v268_v5 = vld [vmem:[%s5695_s26 + $0x30] sm:$0xff] }
 0x124   : > { %3214 = vmatprep.subr.bf16.mxu1 %v5527_v0  ;;  %v391_v0 = vld [vmem:[%s5695_s26 + $0x408] sm:$0xff]  ;;  %v4380_v9 = vcombine.high %v264_v4, %v268_v5  ;;  %v4379_v14 = vcombine.low %v264_v4, %v268_v5 }
 0x125   : > { %v4506_v8 = vcombine.high %v391_v0, %v395_v3  ;;  %v4505_v15 = vcombine.low %v391_v0, %v395_v3  ;;  %v431_v4 = vld [vmem:[%s5695_s26 + $0x548] sm:$0xff] }
 0x127   : > { %3215 = vmatpush2.bf16.msra.mxu1 %v5329_v2 }
 0x129   : > { %2478 = vmatmul.mubr.bf16.gmra.mxu0 %v4503_v10  ;;  %2703 = vmatmul.mubr.bf16.gmra.mxu1 %v4441_v11  ;;  %v399_v10 = vld [vmem:[%s5695_s26 + $0x448] sm:$0xff] }
 0x12a   : > { %2485 = vmatprep.mubr.bf16.mxu0 %v4512_v12  ;;  %2710 = vmatprep.mubr.bf16.mxu1 %v4450_v13  ;;  %v403_v11 = vld [vmem:[%s5695_s26 + $0x468] sm:$0xff]  ;;  %v272_v12 = vld [vmem:[%s5695_s26 + $0x50] sm:$0xff] }
 0x12b   : > { %v276_v13 = vld [vmem:[%s5695_s26 + $0x70] sm:$0xff]  ;;  %v4514_v16 = vcombine.high %v399_v10, %v403_v11 }
 0x12c   : > { %v4388_v17 = vcombine.high %v272_v12, %v276_v13 }
 0x131   : > { %2486 = vmatmul.mubr.bf16.gmra.mxu0 %v4511_v19  ;;  %2711 = vmatmul.mubr.bf16.gmra.mxu1 %v4449_v20  ;;  %v407_v20 = vld [vmem:[%s5695_s26 + $0x488] sm:$0xff] }
 0x132   : > { %2493 = vmatprep.mubr.bf16.mxu0 %v4520_v21  ;;  %2718 = vmatprep.mubr.bf16.mxu1 %v4458_v22 }
 0x139   : > { %2494 = vmatmul.mubr.bf16.gmra.mxu0 %v4519_v27  ;;  %2719 = vmatmul.mubr.bf16.gmra.mxu1 %v4457_v28  ;;  %v4513_v28 = vcombine.low %v399_v10, %v403_v11 }
 0x13a   : > { %2501 = vmatprep.mubr.bf16.mxu0 %v4528_v29  ;;  %2726 = vmatprep.mubr.bf16.mxu1 %v4466_v30  ;;  %v4387_v29 = vcombine.low %v272_v12, %v276_v13  ;;  %v4522_v30 = vcombine.high %v407_v20, %v411_v23 }
 0x141   : > { %2502 = vmatmul.mubr.bf16.gmra.mxu0 %v4527_v36  ;;  %2727 = vmatmul.mubr.bf16.gmra.mxu1 %v4465_v37  ;;  %v415_v36 = vld [vmem:[%s5695_s26 + $0x4c8] sm:$0xff] }
 0x142   : > { %2509 = vmatprep.mubr.bf16.mxu0 %v4536_v38  ;;  %2734 = vmatprep.mubr.bf16.mxu1 %v4474_v39  ;;  %v419_v39 = vld [vmem:[%s5695_s26 + $0x4e8] sm:$0xff] }
 0x143   : > { %v4529_v60 = vcombine.low %v415_v36, %v419_v39 }
 0x149   : > { %2510 = vmatmul.mubr.bf16.gmra.mxu0 %v4535_v44  ;;  %2735 = vmatmul.mubr.bf16.gmra.mxu1 %v4473_v45  ;;  %v4521_v44 = vcombine.low %v407_v20, %v411_v23  ;;  %v4395_v45 = vcombine.low %v280_v24, %v284_v25  ;;  %v443_v25 = vld [vmem:[%s5695_s26 + $0x5a8] sm:$0xff] }
 0x14a   : > { %2517 = vmatprep.mubr.bf16.mxu0 %v4544_v46  ;;  %2742 = vmatprep.mubr.bf16.mxu1 %v4482_v47  ;;  %v4530_v46 = vcombine.high %v415_v36, %v419_v39  ;;  %v4404_v47 = vcombine.high %v288_v40, %v292_v41 }
 0x151   : > { %2518 = vmatmul.mubr.bf16.gmra.mxu0 %v4543_v53  ;;  %2743 = vmatmul.mubr.bf16.gmra.mxu1 %v4481_v54 }
 0x152   : > { %2525 = vmatprep.mubr.bf16.mxu0 %v4552_v55  ;;  %2750 = vmatprep.mubr.bf16.mxu1 %v4490_v56  ;;  %v427_v55 = vld [vmem:[%s5695_s26 + $0x528] sm:$0xff]  ;;  %v296_v56 = vld [vmem:[%s5695_s26 + $0x110] sm:$0xff] }
 0x153   : > { %v4537_v12 = vcombine.low %v423_v52, %v427_v55  ;;  %v4411_v13 = vcombine.low %v296_v56, %v300_v57 }
 0x159   : > { %2526 = vmatmul.mubr.bf16.gmra.mxu0 %v4551_v61  ;;  %2751 = vmatmul.mubr.bf16.gmra.mxu1 %v4489_v62  ;;  %v4403_v61 = vcombine.low %v288_v40, %v292_v41  ;;  %v4538_v62 = vcombine.high %v423_v52, %v427_v55 }
 0x15a   : > { %2533 = vmatprep.mubr.bf16.mxu0 %v4560_v63  ;;  %2758 = vmatprep.mubr.bf16.mxu1 %v4498_v1  ;;  %v4412_v63 = vcombine.high %v296_v56, %v300_v57 }
 0x161   : > { %2534 = vmatmul.mubr.bf16.gmra.mxu0 %v4559_v6  ;;  %2759 = vmatmul.mubr.bf16.gmra.mxu1 %v4497_v7  ;;  %v435_v7 = vld [vmem:[%s5695_s26 + $0x568] sm:$0xff] }
 0x162   : > { %2766 = vmatprep.mubr.bf16.mxu1 %v4506_v8  ;;  %2927 = vmatprep.mubr.bf16.mxu0 %v4380_v9  ;;  %v304_v8 = vld [vmem:[%s5695_s26 + $0x150] sm:$0xff] }
 0x163   : > { %v308_v9 = vld [vmem:[%s5695_s26 + $0x170] sm:$0xff] }
 0x169   : > { %v5909_v18 = vpop.f32.mrf.mxu0  ;;  %v5911_v19 = vpop.f32.mrf.mxu1  ;;  %2767 = vmatmul.mubr.bf16.gmra.mxu1 %v4505_v15  ;;  %2928 = vmatmul.mubr.bf16.vlgmr.msra.gmra.mxu0 %v4379_v14  ;;  %v4546_v14 = vcombine.high %v431_v4, %v435_v7  ;;  %v4420_v15 = vcombine.high %v304_v8, %v308_v9 }
 0x16a   : > { %2774 = vmatprep.mubr.bf16.mxu1 %v4514_v16  ;;  %2935 = vmatprep.mubr.bf16.mxu0 %v4388_v17 }
 0x16b   : > { %v2353_v21 = vpop.f32.mrf.mxu0  ;;  %v2545_v22 = vpop.f32.mrf.mxu1 }
 0x16c   : > { %v439_v22 = vld [vmem:[%s5695_s26 + $0x588] sm:$0xff] }
 0x16d   : > { %v5917_v26 = vpop.f32.mrf.mxu0  ;;  %v5919_v27 = vpop.f32.mrf.mxu1  ;;  %v4554_v36 = vcombine.high %v439_v22, %v443_v25 }
 0x16f   : > { %v2356_v32 = vpop.f32.mrf.mxu0  ;;  %v2548_v33 = vpop.f32.mrf.mxu1 }
 0x170   : > { %v4545_v32 = vcombine.low %v431_v4, %v435_v7  ;;  %v4419_v33 = vcombine.low %v304_v8, %v308_v9  ;;  %v332_v7 = vld [vmem:[%s5695_s26 + $0x230] sm:$0xff] }
 0x171   : > { %v5921_v34 = vpop.f32.mrf.mxu0  ;;  %v5923_v35 = vpop.f32.mrf.mxu1  ;;  %2775 = vmatmul.mubr.bf16.gmra.mxu1 %v4513_v28  ;;  %2936 = vmatmul.mubr.bf16.gmra.mxu0 %v4387_v29  ;;  %v312_v28 = vld [vmem:[%s5695_s26 + $0x190] sm:$0xff] }
 0x172   : > { %2782 = vmatprep.mubr.bf16.mxu1 %v4522_v30  ;;  %2943 = vmatprep.mubr.bf16.mxu0 %v4396_v31  ;;  %v316_v29 = vld [vmem:[%s5695_s26 + $0x1b0] sm:$0xff] }
 0x173   : > { %v2361_v37 = vpop.f32.mrf.mxu0  ;;  %v2553_v38 = vpop.f32.mrf.mxu1  ;;  %v4427_v55 = vcombine.low %v312_v28, %v316_v29 }
 0x174   : > { %v4428_v37 = vcombine.high %v312_v28, %v316_v29  ;;  %v467_v29 = vld [vmem:[%s5695_s26 + $0x668] sm:$0xff] }
 0x175   : > { %v5929_v42 = vpop.f32.mrf.mxu0  ;;  %v5931_v43 = vpop.f32.mrf.mxu1 }
 0x177   : > { %v2364_v48 = vpop.f32.mrf.mxu0  ;;  %v2556_v49 = vpop.f32.mrf.mxu1 }
 0x178   : > { %v320_v48 = vld [vmem:[%s5695_s26 + $0x1d0] sm:$0xff] }
 0x179   : > { %v5933_v50 = vpop.f32.mrf.mxu0  ;;  %v5935_v51 = vpop.f32.mrf.mxu1  ;;  %2783 = vmatmul.mubr.bf16.gmra.mxu1 %v4521_v44  ;;  %2944 = vmatmul.mubr.bf16.gmra.mxu0 %v4395_v45  ;;  %v447_v44 = vld [vmem:[%s5695_s26 + $0x5c8] sm:$0xff]  ;;  %v324_v49 = vld [vmem:[%s5695_s26 + $0x1f0] sm:$0xff] }
 0x17a   : > { %2790 = vmatprep.mubr.bf16.mxu1 %v4530_v46  ;;  %2951 = vmatprep.mubr.bf16.mxu0 %v4404_v47  ;;  %v451_v47 = vld [vmem:[%s5695_s26 + $0x5e8] sm:$0xff]  ;;  %v4436_v57 = vcombine.high %v320_v48, %v324_v49 }
 0x17b   : > { %v2369_v53 = vpop.f32.mrf.mxu0  ;;  %v2561_v54 = vpop.f32.mrf.mxu1  ;;  %v4562_v56 = vcombine.high %v447_v44, %v451_v47 }
 0x17c   : > { %v4553_v54 = vcombine.low %v439_v22, %v443_v25 }
 0x17d   : > { %v5941_v58 = vpop.f32.mrf.mxu0  ;;  %v5943_v59 = vpop.f32.mrf.mxu1 }
 0x17e   : > { %6812 = vst [vmem:[#allocation15_spill] sm:$0xff] %v5943_v59 }
 0x17f   : > { %v2372_v1 = vpop.f32.mrf.mxu0  ;;  %v2564_v0 = vpop.f32.mrf.mxu1 }
 0x180   : > { %v455_v1 = vld [vmem:[%s5695_s26 + $0x608] sm:$0xff] }
 0x181   : > { %v5945_v2 = vpop.f32.mrf.mxu0  ;;  %v5947_v3 = vpop.f32.mrf.mxu1  ;;  %2791 = vmatmul.mubr.bf16.gmra.mxu1 %v4529_v60  ;;  %2952 = vmatmul.mubr.bf16.gmra.mxu0 %v4403_v61 }
 0x182   : > { %6813 = vst [vmem:[#allocation16_spill] sm:$0xff] %v5947_v3  ;;  %2798 = vmatprep.mubr.bf16.mxu1 %v4538_v62  ;;  %2959 = vmatprep.mubr.bf16.mxu0 %v4412_v63 }
 0x183   : > { %v2377_v5 = vpop.f32.mrf.mxu0  ;;  %v2569_v6 = vpop.f32.mrf.mxu1 }
 0x184   : > { %v459_v5 = vld [vmem:[%s5695_s26 + $0x628] sm:$0xff]  ;;  %v328_v6 = vld [vmem:[%s5695_s26 + $0x210] sm:$0xff] }
 0x185   : > { %v5953_v10 = vpop.f32.mrf.mxu0  ;;  %v5955_v11 = vpop.f32.mrf.mxu1 }
 0x186   : > { %6814 = vst [vmem:[#allocation17_spill] sm:$0xff] %v5955_v11 }
 0x187   : > { %v2380_v16 = vpop.f32.mrf.mxu0  ;;  %v2572_v17 = vpop.f32.mrf.mxu1 }
 0x189   : > { %v5957_v20 = vpop.f32.mrf.mxu0  ;;  %v5959_v21 = vpop.f32.mrf.mxu1  ;;  %2799 = vmatmul.mubr.bf16.gmra.mxu1 %v4537_v12  ;;  %2960 = vmatmul.mubr.bf16.gmra.mxu0 %v4411_v13  ;;  %v4561_v12 = vcombine.low %v447_v44, %v451_v47  ;;  %v4435_v13 = vcombine.low %v320_v48, %v324_v49  ;;  %v4443_v44 = vcombine.low %v328_v6, %v332_v7 }
 0x18a   : > { %6815 = vst [vmem:[#allocation18_spill] sm:$0xff] %v5959_v21  ;;  %2806 = vmatprep.mubr.bf16.mxu1 %v4546_v14  ;;  %2967 = vmatprep.mubr.bf16.mxu0 %v4420_v15  ;;  %v4570_v14 = vcombine.high %v455_v1, %v459_v5  ;;  %v4444_v15 = vcombine.high %v328_v6, %v332_v7 }
 0x18b   : > { %v2385_v23 = vpop.f32.mrf.mxu0  ;;  %v2577_v24 = vpop.f32.mrf.mxu1 }
 0x18c   : > { %v463_v24 = vld [vmem:[%s5695_s26 + $0x648] sm:$0xff] }
 0x18d   : > { %v5965_v30 = vpop.f32.mrf.mxu0  ;;  %v5967_v31 = vpop.f32.mrf.mxu1  ;;  %v4577_v7 = vcombine.low %v463_v24, %v467_v29 }
 0x18e   : > { %6816 = vst [vmem:[#allocation19_spill] sm:$0xff] %v5967_v31  ;;  %v293_v31 = vld [vmem:[%s5695_s26 + $0xf8] sm:$0xff] }
 0x18f   : > { %v2388_v38 = vpop.f32.mrf.mxu0  ;;  %v2580_v39 = vpop.f32.mrf.mxu1 }
 0x190   : > { %v4569_v39 = vcombine.low %v455_v1, %v459_v5  ;;  %v475_v1 = vld [vmem:[%s5695_s26 + $0x6a8] sm:$0xff] }
 0x191   : > { %v5969_v40 = vpop.f32.mrf.mxu0  ;;  %v5971_v41 = vpop.f32.mrf.mxu1  ;;  %2807 = vmatmul.mubr.bf16.gmra.mxu1 %v4545_v32  ;;  %2968 = vmatmul.mubr.bf16.gmra.mxu0 %v4419_v33  ;;  %v336_v32 = vld [vmem:[%s5695_s26 + $0x250] sm:$0xff] }
 0x192   : > { %6817 = vst [vmem:[#allocation20_spill] sm:$0xff] %v5971_v41  ;;  %2814 = vmatprep.mubr.bf16.mxu1 %v4554_v36  ;;  %2975 = vmatprep.mubr.bf16.mxu0 %v4428_v37  ;;  %v340_v33 = vld [vmem:[%s5695_s26 + $0x270] sm:$0xff]  ;;  %v6001_v36 = vld [vmem:[#allocation7] ss:$0 sm:$0xff] }
 0x193   : > { %v2393_v45 = vpop.f32.mrf.mxu0  ;;  %v2585_v46 = vpop.f32.mrf.mxu1  ;;  %v4452_v47 = vcombine.high %v336_v32, %v340_v33 }
 0x194   : > { %v2352_v45 = vadd.f32 %v6001_v36, %v5909_v18  ;;  %v4578_v46 = vcombine.high %v463_v24, %v467_v29  ;;  %v471_v18 = vld [vmem:[%s5695_s26 + $0x688] sm:$0xff]  ;;  %v2363_v24 = vadd.f32 %v6001_v36, %v5929_v42  ;;  %v2368_v42 = vadd.f32 %v6001_v36, %v5933_v50 }
 0x195   : > { %v5977_v52 = vpop.f32.mrf.mxu0  ;;  %v5979_v53 = vpop.f32.mrf.mxu1  ;;  %v487_v50 = vld [vmem:[%s5695_s26 + $0x708] sm:$0xff] }
 0x196   : > { %6818 = vst [vmem:[#allocation21_spill] sm:$0xff] %v5979_v53  ;;  %v285_v53 = vld [vmem:[%s5695_s26 + $0xb8] sm:$0xff] }
 0x197   : > { %v2396_v60 = vpop.f32.mrf.mxu0  ;;  %v2588_v61 = vpop.f32.mrf.mxu1 }
 0x199   : > { %v5981_v62 = vpop.f32.mrf.mxu0  ;;  %v5983_v63 = vpop.f32.mrf.mxu1  ;;  %2815 = vmatmul.mubr.bf16.gmra.mxu1 %v4553_v54  ;;  %2976 = vmatmul.mubr.bf16.gmra.mxu0 %v4427_v55 }
 0x19a   : > { %6819 = vst [vmem:[#allocation22_spill] sm:$0xff] %v5983_v63  ;;  %2822 = vmatprep.mubr.bf16.mxu1 %v4562_v56  ;;  %2983 = vmatprep.mubr.bf16.mxu0 %v4436_v57  ;;  %v2355_v56 = vadd.f32 %v6001_v36, %v5917_v26  ;;  %v2360_v26 = vadd.f32 %v6001_v36, %v5921_v34  ;;  %v479_v34 = vld [vmem:[%s5695_s26 + $0x6c8] sm:$0xff] }
 0x19b   : > { %v2401_v0 = vpop.f32.mrf.mxu0  ;;  %v2593_v4 = vpop.f32.mrf.mxu1 }
 0x19c   : > { %v344_v0 = vld [vmem:[%s5695_s26 + $0x290] sm:$0xff] }
 0x19d   : > { %v5989_v8 = vpop.f32.mrf.mxu0  ;;  %v5991_v9 = vpop.f32.mrf.mxu1  ;;  %v348_v4 = vld [vmem:[%s5695_s26 + $0x2b0] sm:$0xff] }
 0x19e   : > { %6820 = vst [vmem:[#allocation23_spill] sm:$0xff] %v5991_v9  ;;  %v277_v9 = vld [vmem:[%s5695_s26 + $0x78] sm:$0xff] }
 0x19f   : > { %v2404_v16 = vpop.f32.mrf.mxu0  ;;  %v2596_v17 = vpop.f32.mrf.mxu1 }
 0x1a1   : > { %v5993_v22 = vpop.f32.mrf.mxu0  ;;  %v5995_v23 = vpop.f32.mrf.mxu1  ;;  %2823 = vmatmul.mubr.bf16.gmra.mxu1 %v4561_v12  ;;  %2984 = vmatmul.mubr.bf16.gmra.mxu0 %v4435_v13  ;;  %v4451_v12 = vcombine.low %v336_v32, %v340_v33  ;;  %v483_v32 = vld [vmem:[%s5695_s26 + $0x6e8] sm:$0xff] }
 0x1a2   : > { %6821 = vst [vmem:[#allocation24_spill] sm:$0xff] %v5995_v23  ;;  %2830 = vmatprep.mubr.bf16.mxu1 %v4570_v14  ;;  %2991 = vmatprep.mubr.bf16.mxu0 %v4444_v15  ;;  %v4586_v14 = vcombine.high %v471_v18, %v475_v1  ;;  %v4460_v15 = vcombine.high %v344_v0, %v348_v4 }
 0x1a3   : > { %v2409_v25 = vpop.f32.mrf.mxu0  ;;  %v2601_v28 = vpop.f32.mrf.mxu1 }
 0x1a5   : > { %v6003_v37 = vpop.f32.mrf.mxu0  ;;  %v6005_v38 = vpop.f32.mrf.mxu1 }
 0x1a6   : > { %6822 = vst [vmem:[#allocation25_spill] sm:$0xff] %v6005_v38 }
 0x1a7   : > { %v2412_v48 = vpop.f32.mrf.mxu0  ;;  %v2604_v49 = vpop.f32.mrf.mxu1 }
 0x1a8   : > { %v4585_v49 = vcombine.low %v471_v18, %v475_v1  ;;  %v2371_v18 = vadd.f32 %v6001_v36, %v5941_v58 }
 0x1a9   : > { %v6009_v54 = vpop.f32.mrf.mxu0  ;;  %v2640_v55 = vpop.f32.mrf.mxu1  ;;  %2831 = vmatmul.mubr.bf16.gmra.mxu1 %v4569_v39  ;;  %2992 = vmatmul.mubr.bf16.gmra.mxu0 %v4443_v44  ;;  %v352_v44 = vld [vmem:[%s5695_s26 + $0x2d0] sm:$0xff] }
 0x1aa   : > { %v6013_v57 = vadd.f32 %v2640_v55, %v2352_v45  ;;  %2838 = vmatprep.mubr.bf16.mxu1 %v4578_v46  ;;  %2999 = vmatprep.mubr.bf16.mxu0 %v4452_v47  ;;  %v356_v45 = vld [vmem:[%s5695_s26 + $0x2f0] sm:$0xff]  ;;  %v5330_v46 = vld [vmem:[#allocation8 + $0x38] sm:$0xff]   ;;  %v4459_v55 = vcombine.low %v344_v0, %v348_v4 }
 0x1ab   : > { %v2417_v60 = vpop.f32.mrf.mxu0  ;;  %v2642_v61 = vpop.f32.mrf.mxu1  ;;  %5070 = vmatprep.subr.bf16.mxu0 %v5330_v46 }
 0x1ac   : > { %v4594_v60 = vcombine.high %v479_v34, %v483_v32  ;;  %v4468_v61 = vcombine.high %v352_v44, %v356_v45  ;;  %5071 = vmatpush3.bf16.msra.mxu0 %v5330_v46 }
 0x1ad   : > { %v6019_v5 = vpop.f32.mrf.mxu0  ;;  %v2643_v6 = vpop.f32.mrf.mxu1 }
 0x1ae   : > { %v6023_v13 = vadd.f32 %v2643_v6, %v2355_v56 }
 0x1af   : > { %v2420_v16 = vpop.f32.mrf.mxu0  ;;  %v2645_v17 = vpop.f32.mrf.mxu1 }
 0x1b0   : > { %v364_v16 = vld [vmem:[%s5695_s26 + $0x330] sm:$0xff] }
 0x1b1   : > { %v6025_v25 = vpop.f32.mrf.mxu0  ;;  %v2648_v28 = vpop.f32.mrf.mxu1  ;;  %2839 = vmatmul.mubr.bf16.gmra.mxu1 %v4577_v7  ;;  %3000 = vmatmul.mubr.bf16.gmra.mxu0 %v4451_v12 }
 0x1b2   : > { %v6029_v29 = vadd.f32 %v2648_v28, %v2360_v26  ;;  %2846 = vmatprep.mubr.bf16.mxu1 %v4586_v14  ;;  %3007 = vmatprep.mubr.bf16.mxu0 %v4460_v15  ;;  %v491_v14 = vld [vmem:[%s5695_s26 + $0x728] sm:$0xff]  ;;  %v360_v15 = vld [vmem:[%s5695_s26 + $0x310] sm:$0xff] }
 0x1b3   : > { %v2425_v33 = vpop.f32.mrf.mxu0  ;;  %v2650_v39 = vpop.f32.mrf.mxu1  ;;  %v4602_v46 = vcombine.high %v487_v50, %v491_v14 }
 0x1b4   : > { %v4467_v33 = vcombine.low %v352_v44, %v356_v45  ;;  %v2376_v39 = vadd.f32 %v6001_v36, %v5945_v2  ;;  %v495_v2 = vld [vmem:[%s5695_s26 + $0x748] sm:$0xff] }
 0x1b5   : > { %v6035_v47 = vpop.f32.mrf.mxu0  ;;  %v2651_v48 = vpop.f32.mrf.mxu1 }
 0x1b6   : > { %v6039_v56 = vadd.f32 %v2651_v48, %v2363_v24  ;;  %v4593_v24 = vcombine.low %v479_v34, %v483_v32  ;;  %v4476_v48 = vcombine.high %v360_v15, %v364_v16  ;;  %v2379_v34 = vadd.f32 %v6001_v36, %v5953_v10 }
 0x1b7   : > { %v2428_v6 = vpop.f32.mrf.mxu0  ;;  %v2653_v7 = vpop.f32.mrf.mxu1 }
 0x1b8   : > { %v368_v6 = vld [vmem:[%s5695_s26 + $0x350] sm:$0xff] }
 0x1b9   : > { %v6041_v12 = vpop.f32.mrf.mxu0  ;;  %v2656_v26 = vpop.f32.mrf.mxu1  ;;  %2847 = vmatmul.mubr.bf16.gmra.mxu1 %v4585_v49  ;;  %3008 = vmatmul.mubr.bf16.gmra.mxu0 %v4459_v55  ;;  %v372_v7 = vld [vmem:[%s5695_s26 + $0x370] sm:$0xff] }
 0x1ba   : > { %v6045_v1 = vadd.f32 %v2656_v26, %v2368_v42  ;;  %2854 = vmatprep.mubr.bf16.mxu1 %v4594_v60  ;;  %3015 = vmatprep.mubr.bf16.mxu0 %v4468_v61  ;;  %v499_v61 = vld [vmem:[%s5695_s26 + $0x768] sm:$0xff] }
 0x1bb   : > { %v2433_v0 = vpop.f32.mrf.mxu0  ;;  %v2658_v4 = vpop.f32.mrf.mxu1 }
 0x1bc   : > { %v4601_v0 = vcombine.low %v487_v50, %v491_v14  ;;  %v4475_v4 = vcombine.low %v360_v15, %v364_v16  ;;  %v2387_v50 = vadd.f32 %v6001_v36, %v5965_v30  ;;  %v2392_v30 = vadd.f32 %v6001_v36, %v5969_v40  ;;  %v511_v40 = vld [vmem:[%s5695_s26 + $0x7c8] sm:$0xff] }
 0x1bd   : > { %v6051_v17 = vpop.f32.mrf.mxu0  ;;  %v2659_v28 = vpop.f32.mrf.mxu1 }
 0x1be   : > { %v6055_v58 = vadd.f32 %v2659_v28, %v2371_v18  ;;  %v2384_v28 = vadd.f32 %v6001_v36, %v5957_v20  ;;  %v503_v20 = vld [vmem:[%s5695_s26 + $0x788] sm:$0xff] }
 0x1bf   : > { %v2436_v49 = vpop.f32.mrf.mxu0  ;;  %v2661_v55 = vpop.f32.mrf.mxu1 }
 0x1c0   : > { %v507_v55 = vld [vmem:[%s5695_s26 + $0x7a8] sm:$0xff] }
 0x1c1   : > { %v6057_v42 = vpop.f32.mrf.mxu0  ;;  %v2664_v60 = vpop.f32.mrf.mxu1  ;;  %2855 = vmatmul.mubr.bf16.gmra.mxu1 %v4593_v24  ;;  %3016 = vmatmul.mubr.bf16.gmra.mxu0 %v4467_v33  ;;  %v4610_v24 = vcombine.high %v495_v2, %v499_v61  ;;  %v4484_v33 = vcombine.high %v368_v6, %v372_v7  ;;  %v4617_v38 = vcombine.low %v503_v20, %v507_v55 }
 0x1c2   : > { %v6061_v32 = vadd.f32 %v2664_v60, %v2376_v39  ;;  %2862 = vmatprep.mubr.bf16.mxu1 %v4602_v46  ;;  %3023 = vmatprep.mubr.bf16.mxu0 %v4476_v48  ;;  %v376_v60 = vld [vmem:[%s5695_s26 + $0x390] sm:$0xff] }
 0x1c3   : > { %v2441_v44 = vpop.f32.mrf.mxu0  ;;  %v2666_v45 = vpop.f32.mrf.mxu1 }
 0x1c5   : > { %v6067_v26 = vpop.f32.mrf.mxu0  ;;  %v2667_v18 = vpop.f32.mrf.mxu1 }
 0x1c6   : > { %v6071_v10 = vadd.f32 %v2667_v18, %v2379_v34  ;;  %v380_v34 = vld [vmem:[%s5695_s26 + $0x3b0] sm:$0xff]  ;;  %v4609_v18 = vcombine.low %v495_v2, %v499_v61  ;;  %v2395_v2 = vadd.f32 %v6001_v36, %v5977_v52  ;;  %v2400_v52 = vadd.f32 %v6001_v36, %v5981_v62 }
 0x1c7   : > { %v2444_v39 = vpop.f32.mrf.mxu0  ;;  %v2669_v46 = vpop.f32.mrf.mxu1  ;;  %v392_v62 = vld [vmem:[%s5695_s26 + $0x410] sm:$0xff] }
 0x1c9   : > { %v6073_v48 = vpop.f32.mrf.mxu0  ;;  %v2672_v49 = vpop.f32.mrf.mxu1  ;;  %2863 = vmatmul.mubr.bf16.gmra.mxu1 %v4601_v0  ;;  %3024 = vmatmul.mubr.bf16.gmra.mxu0 %v4475_v4  ;;  %v4483_v0 = vcombine.low %v368_v6, %v372_v7  ;;  %v515_v6 = vld [vmem:[%s5695_s26 + $0x7e8] sm:$0xff] }
 0x1ca   : > { %v6077_v14 = vadd.f32 %v2672_v49, %v2384_v28  ;;  %2870 = vmatprep.mubr.bf16.mxu1 %v4610_v24  ;;  %3031 = vmatprep.mubr.bf16.mxu0 %v4484_v33  ;;  %v4618_v28 = vcombine.high %v503_v20, %v507_v55  ;;  %v4492_v24 = vcombine.high %v376_v60, %v380_v34 }
 0x1cb   : > { %v2449_v15 = vpop.f32.mrf.mxu0  ;;  %v2674_v16 = vpop.f32.mrf.mxu1  ;;  %v2403_v20 = vadd.f32 %v6001_v36, %v5989_v8  ;;  %v4625_v23 = vcombine.low %v511_v40, %v515_v6 }
 0x1cc   : > { %v384_v15 = vld [vmem:[%s5695_s26 + $0x3d0] sm:$0xff] }
 0x1cd   : > { %v6083_v44 = vpop.f32.mrf.mxu0  ;;  %v2675_v45 = vpop.f32.mrf.mxu1  ;;  %v388_v16 = vld [vmem:[%s5695_s26 + $0x3f0] sm:$0xff] }
 0x1ce   : > { %v6087_v4 = vadd.f32 %v2675_v45, %v2387_v50  ;;  %v5331_v45 = vld [vmem:[#allocation8 + $0x30] sm:$0xff]  }
 0x1cf   : > { %v2452_v33 = vpop.f32.mrf.mxu0  ;;  %v2677_v39 = vpop.f32.mrf.mxu1  ;;  %5072 = vmatprep.subr.bf16.mxu0 %v5331_v45 }
 0x1d0   : > { %5073 = vmatpush3.bf16.msra.mxu0 %v5331_v45  ;;  %v265_v45 = vld [vmem:[%s5695_s26 + $0x18] sm:$0xff] }
 0x1d1   : > { %v6089_v46 = vpop.f32.mrf.mxu0  ;;  %v2680_v49 = vpop.f32.mrf.mxu1  ;;  %2871 = vmatmul.mubr.bf16.gmra.mxu1 %v4609_v18  ;;  %3032 = vmatmul.mubr.bf16.gmra.mxu0 %v4483_v0  ;;  %v4491_v18 = vcombine.low %v376_v60, %v380_v34 }
 0x1d2   : > { %v6093_v61 = vadd.f32 %v2680_v49, %v2392_v30  ;;  %2878 = vmatprep.mubr.bf16.mxu1 %v4618_v28  ;;  %3039 = vmatprep.mubr.bf16.mxu0 %v4492_v24  ;;  %v4626_v30 = vcombine.high %v511_v40, %v515_v6  ;;  %v4500_v28 = vcombine.high %v384_v15, %v388_v16 }
 0x1d3   : > { %v2457_v7 = vpop.f32.mrf.mxu0  ;;  %v2682_v50 = vpop.f32.mrf.mxu1  ;;  %v2411_v40 = vadd.f32 %v6001_v36, %v6003_v37 }
 0x1d5   : > { %v6099_v33 = vpop.f32.mrf.mxu0  ;;  %v2683_v39 = vpop.f32.mrf.mxu1 }
 0x1d6   : > { %v6103_v0 = vadd.f32 %v2683_v39, %v2395_v2  ;;  %v396_v2 = vld [vmem:[%s5695_s26 + $0x430] sm:$0xff]  ;;  %v269_v39 = vld [vmem:[%s5695_s26 + $0x38] sm:$0xff] }
 0x1d7   : > { %v2460_v24 = vpop.f32.mrf.mxu0  ;;  %v2685_v49 = vpop.f32.mrf.mxu1  ;;  %v4507_v63 = vcombine.low %v392_v62, %v396_v2 }
 0x1d9   : > { %v6105_v7 = vpop.f32.mrf.mxu0  ;;  %v2688_v50 = vpop.f32.mrf.mxu1  ;;  %2879 = vmatmul.mubr.bf16.gmra.mxu1 %v4617_v38  ;;  %3040 = vmatmul.mubr.bf16.gmra.mxu0 %v4491_v18  ;;  %v4499_v38 = vcombine.low %v384_v15, %v388_v16  ;;  %v2408_v18 = vadd.f32 %v6001_v36, %v5993_v22  ;;  %v400_v22 = vld [vmem:[%s5695_s26 + $0x450] sm:$0xff] }
 0x1da   : > { %v6109_v55 = vadd.f32 %v2688_v50, %v2400_v52  ;;  %2886 = vmatprep.mubr.bf16.mxu1 %v4626_v30  ;;  %3047 = vmatprep.mubr.bf16.mxu0 %v4500_v28  ;;  %v4508_v52 = vcombine.high %v392_v62, %v396_v2  ;;  %v4382_v30 = vcombine.high %v265_v45, %v269_v39 }
 0x1db   : > { %v2465_v60 = vpop.f32.mrf.mxu0  ;;  %v2690_v34 = vpop.f32.mrf.mxu1  ;;  %v2419_v62 = vadd.f32 %v6001_v36, %v6019_v5  ;;  %v2424_v5 = vadd.f32 %v6001_v36, %v6025_v25  ;;  %v416_v25 = vld [vmem:[%s5695_s26 + $0x4d0] sm:$0xff] }
 0x1dd   : > { %v6115_v24 = vpop.f32.mrf.mxu0  ;;  %v2691_v49 = vpop.f32.mrf.mxu1 }
 0x1de   : > { %v6119_v8 = vadd.f32 %v2691_v49, %v2403_v20  ;;  %v404_v20 = vld [vmem:[%s5695_s26 + $0x470] sm:$0xff]  ;;  %v273_v49 = vld [vmem:[%s5695_s26 + $0x58] sm:$0xff] }
 0x1df   : > { %v2468_v28 = vpop.f32.mrf.mxu0  ;;  %v2693_v50 = vpop.f32.mrf.mxu1  ;;  %v4515_v41 = vcombine.low %v400_v22, %v404_v20 }
 0x1e1   : > { %v6121_v60 = vpop.f32.mrf.mxu0  ;;  %v2696_v34 = vpop.f32.mrf.mxu1  ;;  %2887 = vmatmul.mubr.bf16.gmra.mxu1 %v4625_v23  ;;  %3048 = vmatmul.mubr.bf16.gmra.mxu0 %v4499_v38  ;;  %v4381_v23 = vcombine.low %v265_v45, %v269_v39  ;;  %v2416_v38 = vadd.f32 %v6001_v36, %v6009_v54  ;;  %v408_v54 = vld [vmem:[%s5695_s26 + $0x490] sm:$0xff] }
 0x1e2   : > { %v6125_v6 = vadd.f32 %v2696_v34, %v2408_v18  ;;  %3055 = vmatprep.mubr.bf16.mxu0 %v4508_v52  ;;  %3216 = vmatprep.mubr.bf16.mxu1 %v4382_v30  ;;  %v4516_v18 = vcombine.high %v400_v22, %v404_v20  ;;  %v4390_v52 = vcombine.high %v273_v49, %v277_v9  ;;  %v420_v20 = vld [vmem:[%s5695_s26 + $0x4f0] sm:$0xff] }
 0x1e3   : > { %v2473_v15 = vpop.f32.mrf.mxu0  ;;  %v2698_v16 = vpop.f32.mrf.mxu1  ;;  %v4531_v3 = vcombine.low %v416_v25, %v420_v20 }
 0x1e5   : > { %v6131_v28 = vpop.f32.mrf.mxu0  ;;  %v2699_v50 = vpop.f32.mrf.mxu1 }
 0x1e6   : > { %v6135_v37 = vadd.f32 %v2699_v50, %v2411_v40  ;;  %v412_v40 = vld [vmem:[%s5695_s26 + $0x4b0] sm:$0xff]  ;;  %v281_v50 = vld [vmem:[%s5695_s26 + $0x98] sm:$0xff] }
 0x1e7   : > { %v2476_v30 = vpop.f32.mrf.mxu0  ;;  %v2701_v34 = vpop.f32.mrf.mxu1  ;;  %v4523_v11 = vcombine.low %v408_v54, %v412_v40 }
 0x1e9   : > { %v6137_v15 = vpop.f32.mrf.mxu0  ;;  %v2704_v16 = vpop.f32.mrf.mxu1  ;;  %3056 = vmatmul.mubr.bf16.gmra.mxu0 %v4507_v63  ;;  %3217 = vmatmul.mubr.bf16.vlgmr.msra.gmra.mxu1 %v4381_v23  ;;  %v4389_v63 = vcombine.low %v273_v49, %v277_v9  ;;  %v2427_v9 = vadd.f32 %v6001_v36, %v6035_v47  ;;  %v2432_v47 = vadd.f32 %v6001_v36, %v6041_v12 }
 0x1ea   : > { %v6141_v2 = vadd.f32 %v2704_v16, %v2416_v38  ;;  %3063 = vmatprep.mubr.bf16.mxu0 %v4516_v18  ;;  %3224 = vmatprep.mubr.bf16.mxu1 %v4390_v52  ;;  %v4524_v38 = vcombine.high %v408_v54, %v412_v40  ;;  %v4398_v18 = vcombine.high %v281_v50, %v285_v53 }
 0x1eb   : > { %v2481_v45 = vpop.f32.mrf.mxu0  ;;  %v2706_v39 = vpop.f32.mrf.mxu1 }
 0x1ed   : > { %v6147_v30 = vpop.f32.mrf.mxu0  ;;  %v2707_v34 = vpop.f32.mrf.mxu1 }
 0x1ee   : > { %v6151_v23 = vadd.f32 %v2707_v34, %v2419_v62  ;;  %v289_v34 = vld [vmem:[%s5695_s26 + $0xd8] sm:$0xff] }
 0x1ef   : > { %v2484_v52 = vpop.f32.mrf.mxu0  ;;  %v2709_v16 = vpop.f32.mrf.mxu1 }
 0x1f0   : > { %v5332_v52 = vld [vmem:[#allocation8 + $0x28] sm:$0xff]  }
 0x1f1   : > { %v6153_v45 = vpop.f32.mrf.mxu0  ;;  %v2712_v39 = vpop.f32.mrf.mxu1  ;;  %3064 = vmatmul.mubr.bf16.gmra.mxu0 %v4515_v41  ;;  %3225 = vmatmul.mubr.bf16.gmra.mxu1 %v4389_v63  ;;  %v4397_v41 = vcombine.low %v281_v50, %v285_v53  ;;  %v2435_v53 = vadd.f32 %v6001_v36, %v6051_v17  ;;  %v428_v50 = vld [vmem:[%s5695_s26 + $0x530] sm:$0xff] }
 0x1f2   : > { %v6157_v22 = vadd.f32 %v2712_v39, %v2424_v5  ;;  %3071 = vmatprep.mubr.bf16.mxu0 %v4524_v38  ;;  %3232 = vmatprep.mubr.bf16.mxu1 %v4398_v18  ;;  %v4532_v5 = vcombine.high %v416_v25, %v420_v20  ;;  %v4406_v38 = vcombine.high %v289_v34, %v293_v31 }
 0x1f3   : > { %v2489_v49 = vpop.f32.mrf.mxu0  ;;  %v2714_v62 = vpop.f32.mrf.mxu1  ;;  %5074 = vmatprep.subr.bf16.mxu0 %v5332_v52 }
 0x1f4   : > { %5075 = vmatpush3.bf16.msra.mxu0 %v5332_v52  ;;  %v301_v52 = vld [vmem:[%s5695_s26 + $0x138] sm:$0xff] }
 0x1f5   : > { %v6163_v16 = vpop.f32.mrf.mxu0  ;;  %v2715_v21 = vpop.f32.mrf.mxu1 }
 0x1f6   : > { %v6167_v63 = vadd.f32 %v2715_v21, %v2427_v9  ;;  %v424_v21 = vld [vmem:[%s5695_s26 + $0x510] sm:$0xff]  ;;  %v297_v9 = vld [vmem:[%s5695_s26 + $0x118] sm:$0xff] }
 0x1f7   : > { %v2492_v18 = vpop.f32.mrf.mxu0  ;;  %v2717_v39 = vpop.f32.mrf.mxu1  ;;  %v4539_v59 = vcombine.low %v424_v21, %v428_v50 }
 0x1f9   : > { %v6169_v49 = vpop.f32.mrf.mxu0  ;;  %v2720_v62 = vpop.f32.mrf.mxu1  ;;  %3072 = vmatmul.mubr.bf16.gmra.mxu0 %v4523_v11  ;;  %3233 = vmatmul.mubr.bf16.gmra.mxu1 %v4397_v41  ;;  %v4405_v11 = vcombine.low %v289_v34, %v293_v31  ;;  %v2440_v41 = vadd.f32 %v6001_v36, %v6057_v42  ;;  %v2443_v31 = vadd.f32 %v6001_v36, %v6067_v26  ;;  %v432_v42 = vld [vmem:[%s5695_s26 + $0x550] sm:$0xff] }
 0x1fa   : > { %v6173_v54 = vadd.f32 %v2720_v62, %v2432_v47  ;;  %3079 = vmatprep.mubr.bf16.mxu0 %v4532_v5  ;;  %3240 = vmatprep.mubr.bf16.mxu1 %v4406_v38  ;;  %v4540_v47 = vcombine.high %v424_v21, %v428_v50  ;;  %v4414_v5 = vcombine.high %v297_v9, %v301_v52 }
 0x1fb   : > { %v2497_v12 = vpop.f32.mrf.mxu0  ;;  %v2722_v40 = vpop.f32.mrf.mxu1  ;;  %v2451_v21 = vadd.f32 %v6001_v36, %v6083_v44  ;;  %v2456_v44 = vadd.f32 %v6001_v36, %v6089_v46  ;;  %v448_v46 = vld [vmem:[%s5695_s26 + $0x5d0] sm:$0xff] }
 0x1fc   : > { %6823 = vst [vmem:[#allocation26_spill] sm:$0xff] %v6173_v54 }
 0x1fd   : > { %v6179_v18 = vpop.f32.mrf.mxu0  ;;  %v2723_v39 = vpop.f32.mrf.mxu1 }
 0x1fe   : > { %v6183_v17 = vadd.f32 %v2723_v39, %v2435_v53  ;;  %v436_v53 = vld [vmem:[%s5695_s26 + $0x570] sm:$0xff]  ;;  %v305_v39 = vld [vmem:[%s5695_s26 + $0x158] sm:$0xff] }
 0x1ff   : > { %v2500_v38 = vpop.f32.mrf.mxu0  ;;  %v2725_v62 = vpop.f32.mrf.mxu1 }
 0x200   : > { %6824 = vst [vmem:[#allocation27_spill] sm:$0xff] %v6183_v17  ;;  %v309_v17 = vld [vmem:[%s5695_s26 + $0x178] sm:$0xff] }
 0x201   : > { %v6185_v12 = vpop.f32.mrf.mxu0  ;;  %v2728_v40 = vpop.f32.mrf.mxu1  ;;  %3080 = vmatmul.mubr.bf16.gmra.mxu0 %v4531_v3  ;;  %3241 = vmatmul.mubr.bf16.gmra.mxu1 %v4405_v11  ;;  %v4413_v3 = vcombine.low %v297_v9, %v301_v52  ;;  %v2448_v11 = vadd.f32 %v6001_v36, %v6073_v48  ;;  %v440_v48 = vld [vmem:[%s5695_s26 + $0x590] sm:$0xff] }
 0x202   : > { %v6189_v25 = vadd.f32 %v2728_v40, %v2440_v41  ;;  %3087 = vmatprep.mubr.bf16.mxu0 %v4540_v47  ;;  %3248 = vmatprep.mubr.bf16.mxu1 %v4414_v5  ;;  %v4548_v41 = vcombine.high %v432_v42, %v436_v53  ;;  %v4422_v47 = vcombine.high %v305_v39, %v309_v17 }
 0x203   : > { %v2505_v20 = vpop.f32.mrf.mxu0  ;;  %v2730_v34 = vpop.f32.mrf.mxu1 }
 0x204   : > { %6825 = vst [vmem:[#allocation28_spill] sm:$0xff] %v6189_v25  ;;  %v4547_v25 = vcombine.low %v432_v42, %v436_v53  ;;  %v452_v53 = vld [vmem:[%s5695_s26 + $0x5f0] sm:$0xff] }
 0x205   : > { %v6195_v38 = vpop.f32.mrf.mxu0  ;;  %v2731_v62 = vpop.f32.mrf.mxu1 }
 0x206   : > { %v6199_v26 = vadd.f32 %v2731_v62, %v2443_v31  ;;  %v444_v31 = vld [vmem:[%s5695_s26 + $0x5b0] sm:$0xff]  ;;  %v313_v62 = vld [vmem:[%s5695_s26 + $0x198] sm:$0xff] }
 0x207   : > { %v2508_v5 = vpop.f32.mrf.mxu0  ;;  %v2733_v40 = vpop.f32.mrf.mxu1  ;;  %v4555_v54 = vcombine.low %v440_v48, %v444_v31 }
 0x208   : > { %6826 = vst [vmem:[#allocation29_spill] sm:$0xff] %v6199_v26  ;;  %v317_v26 = vld [vmem:[%s5695_s26 + $0x1b8] sm:$0xff] }
 0x209   : > { %v6201_v20 = vpop.f32.mrf.mxu0  ;;  %v2736_v34 = vpop.f32.mrf.mxu1  ;;  %3088 = vmatmul.mubr.bf16.gmra.mxu0 %v4539_v59  ;;  %3249 = vmatmul.mubr.bf16.gmra.mxu1 %v4413_v3  ;;  %v4421_v59 = vcombine.low %v305_v39, %v309_v17  ;;  %v2459_v17 = vadd.f32 %v6001_v36, %v6099_v33  ;;  %v2464_v33 = vadd.f32 %v6001_v36, %v6105_v7  ;;  %v456_v7 = vld [vmem:[%s5695_s26 + $0x610] sm:$0xff] }
 0x20a   : > { %v6205_v50 = vadd.f32 %v2736_v34, %v2448_v11  ;;  %3095 = vmatprep.mubr.bf16.mxu0 %v4548_v41  ;;  %3256 = vmatprep.mubr.bf16.mxu1 %v4422_v47  ;;  %v4556_v11 = vcombine.high %v440_v48, %v444_v31  ;;  %v4430_v41 = vcombine.high %v313_v62, %v317_v26 }
 0x20b   : > { %v2513_v9 = vpop.f32.mrf.mxu0  ;;  %v2738_v52 = vpop.f32.mrf.mxu1 }
 0x20c   : > { %6827 = vst [vmem:[#allocation30_spill] sm:$0xff] %v6205_v50 }
 0x20d   : > { %v6211_v5 = vpop.f32.mrf.mxu0  ;;  %v2739_v40 = vpop.f32.mrf.mxu1 }
 0x20e   : > { %v6215_v3 = vadd.f32 %v2739_v40, %v2451_v21  ;;  %v321_v40 = vld [vmem:[%s5695_s26 + $0x1d8] sm:$0xff] }
 0x20f   : > { %v2516_v47 = vpop.f32.mrf.mxu0  ;;  %v2741_v34 = vpop.f32.mrf.mxu1 }
 0x210   : > { %6828 = vst [vmem:[#allocation31_spill] sm:$0xff] %v6215_v3  ;;  %v325_v3 = vld [vmem:[%s5695_s26 + $0x1f8] sm:$0xff]  ;;  %v5333_v47 = vld [vmem:[#allocation8 + $0x20] sm:$0xff]  }
 0x211   : > { %v6217_v9 = vpop.f32.mrf.mxu0  ;;  %v2744_v52 = vpop.f32.mrf.mxu1  ;;  %3096 = vmatmul.mubr.bf16.gmra.mxu0 %v4547_v25  ;;  %3257 = vmatmul.mubr.bf16.gmra.mxu1 %v4421_v59  ;;  %v4429_v25 = vcombine.low %v313_v62, %v317_v26  ;;  %v2467_v26 = vadd.f32 %v6001_v36, %v6115_v24  ;;  %v460_v62 = vld [vmem:[%s5695_s26 + $0x630] sm:$0xff] }
 0x212   : > { %v6221_v42 = vadd.f32 %v2744_v52, %v2456_v44  ;;  %3103 = vmatprep.mubr.bf16.mxu0 %v4556_v11  ;;  %3264 = vmatprep.mubr.bf16.mxu1 %v4430_v41  ;;  %v4564_v44 = vcombine.high %v448_v46, %v452_v53  ;;  %v4438_v11 = vcombine.high %v321_v40, %v325_v3 }
 0x213   : > { %v2521_v39 = vpop.f32.mrf.mxu0  ;;  %v2746_v21 = vpop.f32.mrf.mxu1  ;;  %5076 = vmatprep.subr.bf16.mxu0 %v5333_v47 }
 0x214   : > { %6829 = vst [vmem:[#allocation32_spill] sm:$0xff] %v6221_v42  ;;  %5077 = vmatpush3.bf16.msra.mxu0 %v5333_v47  ;;  %v333_v47 = vld [vmem:[%s5695_s26 + $0x238] sm:$0xff] }
 0x215   : > { %v6227_v34 = vpop.f32.mrf.mxu0  ;;  %v2747_v50 = vpop.f32.mrf.mxu1 }
 0x216   : > { %v6231_v59 = vadd.f32 %v2747_v50, %v2459_v17  ;;  %v329_v17 = vld [vmem:[%s5695_s26 + $0x218] sm:$0xff] }
 0x217   : > { %v2524_v41 = vpop.f32.mrf.mxu0  ;;  %v2749_v52 = vpop.f32.mrf.mxu1  ;;  %v4445_v42 = vcombine.low %v329_v17, %v333_v47 }
 0x218   : > { %6830 = vst [vmem:[#allocation33_spill] sm:$0xff] %v6231_v59  ;;  %v4563_v59 = vcombine.low %v448_v46, %v452_v53 }
 0x219   : > { %v6233_v39 = vpop.f32.mrf.mxu0  ;;  %v2752_v21 = vpop.f32.mrf.mxu1  ;;  %3104 = vmatmul.mubr.bf16.gmra.mxu0 %v4555_v54  ;;  %3265 = vmatmul.mubr.bf16.gmra.mxu1 %v4429_v25  ;;  %v4437_v54 = vcombine.low %v321_v40, %v325_v3  ;;  %v2472_v25 = vadd.f32 %v6001_v36, %v6121_v60  ;;  %v2475_v3 = vadd.f32 %v6001_v36, %v6131_v28  ;;  %v464_v60 = vld [vmem:[%s5695_s26 + $0x650] sm:$0xff] }
 0x21a   : > { %v6237_v48 = vadd.f32 %v2752_v21, %v2464_v33  ;;  %3111 = vmatprep.mubr.bf16.mxu0 %v4564_v44  ;;  %3272 = vmatprep.mubr.bf16.mxu1 %v4438_v11  ;;  %v4572_v33 = vcombine.high %v456_v7, %v460_v62  ;;  %v4446_v44 = vcombine.high %v329_v17, %v333_v47  ;;  %v472_v17 = vld [vmem:[%s5695_s26 + $0x690] sm:$0xff] }
 0x21b   : > { %v2529_v50 = vpop.f32.mrf.mxu0  ;;  %v2754_v31 = vpop.f32.mrf.mxu1  ;;  %v476_v47 = vld [vmem:[%s5695_s26 + $0x6b0] sm:$0xff] }
 0x21c   : > { %6831 = vst [vmem:[#allocation34_spill] sm:$0xff] %v6237_v48  ;;  %v4571_v48 = vcombine.low %v456_v7, %v460_v62  ;;  %v2483_v7 = vadd.f32 %v6001_v36, %v6147_v30  ;;  %v4588_v30 = vcombine.high %v472_v17, %v476_v47 }
 0x21d   : > { %v6243_v41 = vpop.f32.mrf.mxu0  ;;  %v2755_v52 = vpop.f32.mrf.mxu1 }
 0x21e   : > { %v6247_v24 = vadd.f32 %v2755_v52, %v2467_v26  ;;  %v468_v26 = vld [vmem:[%s5695_s26 + $0x670] sm:$0xff]  ;;  %v337_v52 = vld [vmem:[%s5695_s26 + $0x258] sm:$0xff] }
 0x21f   : > { %v2532_v11 = vpop.f32.mrf.mxu0  ;;  %v2757_v21 = vpop.f32.mrf.mxu1 }
 0x220   : > { %6832 = vst [vmem:[#allocation35_spill] sm:$0xff] %v6247_v24  ;;  %v341_v24 = vld [vmem:[%s5695_s26 + $0x278] sm:$0xff] }
 0x221   : > { %v6249_v50 = vpop.f32.mrf.mxu0  ;;  %v2760_v31 = vpop.f32.mrf.mxu1  ;;  %3112 = vmatmul.mubr.bf16.gmra.mxu0 %v4563_v59  ;;  %3273 = vmatmul.mubr.bf16.gmra.mxu1 %v4437_v54  ;;  %v2480_v59 = vadd.f32 %v6001_v36, %v6137_v15  ;;  %v4580_v54 = vcombine.high %v464_v60, %v468_v26 }
 0x222   : > { %v6253_v46 = vadd.f32 %v2760_v31, %v2472_v25  ;;  %3119 = vmatprep.mubr.bf16.mxu0 %v4572_v33  ;;  %3280 = vmatprep.mubr.bf16.mxu1 %v4446_v44  ;;  %v4454_v25 = vcombine.high %v337_v52, %v341_v24 }
 0x223   : > { %v2537_v53 = vpop.f32.mrf.mxu0  ;;  %v2762_v40 = vpop.f32.mrf.mxu1 }
 0x224   : > { %6833 = vst [vmem:[#allocation36_spill] sm:$0xff] %v6253_v46  ;;  %v4453_v46 = vcombine.low %v337_v52, %v341_v24  ;;  %v480_v52 = vld [vmem:[%s5695_s26 + $0x6d0] sm:$0xff] }
 0x225   : > { %v6259_v11 = vpop.f32.mrf.mxu0  ;;  %v2763_v21 = vpop.f32.mrf.mxu1 }
 0x226   : > { %v6263_v28 = vadd.f32 %v2763_v21, %v2475_v3  ;;  %v5334_v3 = vld [vmem:[#allocation8 + $0x18] sm:$0xff]  }
 0x227   : > { %v2540_v33 = vpop.f32.mrf.mxu0  ;;  %v2765_v44 = vpop.f32.mrf.mxu1  ;;  %5078 = vmatprep.subr.bf16.mxu0 %v5334_v3 }
 0x228   : > { %6834 = vst [vmem:[#allocation37_spill] sm:$0xff] %v6263_v28  ;;  %v345_v33 = vld [vmem:[%s5695_s26 + $0x298] sm:$0xff]  ;;  %v4579_v28 = vcombine.low %v464_v60, %v468_v26  ;;  %5079 = vmatpush3.bf16.msra.mxu0 %v5334_v3  ;;  %v5336_v3 = vld [vmem:[#allocation8 + $0x8] sm:$0xff]  }
 0x229   : > { %v2768_v31 = vpop.f32.mrf.mxu1  ;;  %v2929_v53 = vpop.f32.mrf.mxu0  ;;  %3120 = vmatmul.mubr.bf16.gmra.mxu0 %v4571_v48  ;;  %3281 = vmatmul.mubr.bf16.gmra.mxu1 %v4445_v42  ;;  %v349_v44 = vld [vmem:[%s5695_s26 + $0x2b8] sm:$0xff] }
 0x22a   : > { %v6267_v62 = vadd.f32 %v2768_v31, %v2480_v59  ;;  %v6270_v15 = vadd.f32 %v2929_v53, %v6013_v57  ;;  %3127 = vmatprep.mubr.bf16.mxu0 %v4580_v54  ;;  %3288 = vmatprep.mubr.bf16.mxu1 %v4454_v25  ;;  %v2488_v57 = vadd.f32 %v6001_v36, %v6153_v45  ;;  %v5335_v31 = vld [vmem:[#allocation8 + $0x10] sm:$0xff]  }
 0x22b   : > { %v2770_v40 = vpop.f32.mrf.mxu1  ;;  %v2931_v21 = vpop.f32.mrf.mxu0  ;;  %v4462_v25 = vcombine.high %v345_v33, %v349_v44  ;;  %5080 = vmatprep.subr.bf16.mxu0 %v5335_v31  ;;  %v2491_v45 = vadd.f32 %v6001_v36, %v6163_v16  ;;  %v4461_v16 = vcombine.low %v345_v33, %v349_v44  ;;  %v488_v44 = vld [vmem:[%s5695_s26 + $0x710] sm:$0xff] }
 0x22c   : > { %5081 = vmatpush3.bf16.msra.mxu0 %v5335_v31 }
 0x22d   : > { %v2771_v48 = vpop.f32.mrf.mxu1  ;;  %v2932_v42 = vpop.f32.mrf.mxu0  ;;  %5082 = vmatprep.subr.bf16.mxu0 %v5336_v3 }
 0x22e   : > { %v6278_v59 = vadd.f32 %v2771_v48, %v2483_v7  ;;  %v6281_v54 = vadd.f32 %v2932_v42, %v6023_v13  ;;  %v484_v7 = vld [vmem:[%s5695_s26 + $0x6f0] sm:$0xff]  ;;  %v353_v42 = vld [vmem:[%s5695_s26 + $0x2d8] sm:$0xff] }
 0x22f   : > { %v2773_v53 = vpop.f32.mrf.mxu1  ;;  %v2934_v40 = vpop.f32.mrf.mxu0 }
 0x230   : > { %v357_v53 = vld [vmem:[%s5695_s26 + $0x2f8] sm:$0xff]  ;;  %v4587_v40 = vcombine.low %v472_v17, %v476_v47  ;;  %5083 = vmatpush3.bf16.msra.mxu0 %v5336_v3 }
 0x231   : > { %v2776_v24 = vpop.f32.mrf.mxu1  ;;  %v2937_v60 = vpop.f32.mrf.mxu0  ;;  %3128 = vmatmul.mubr.bf16.gmra.mxu0 %v4579_v28  ;;  %3289 = vmatmul.mubr.bf16.gmra.mxu1 %v4453_v46 }
 0x232   : > { %v6285_v26 = vadd.f32 %v2776_v24, %v2488_v57  ;;  %v6288_v13 = vadd.f32 %v2937_v60, %v6029_v29  ;;  %3135 = vmatprep.mubr.bf16.mxu0 %v4588_v30  ;;  %3296 = vmatprep.mubr.bf16.mxu1 %v4462_v25  ;;  %v4596_v57 = vcombine.high %v480_v52, %v484_v7  ;;  %v5337_v60 = vld [vmem:[#allocation8] sm:$0xff]  }
 0x233   : > { %v2778_v21 = vpop.f32.mrf.mxu1  ;;  %v2939_v48 = vpop.f32.mrf.mxu0  ;;  %v2496_v29 = vadd.f32 %v6001_v36, %v6169_v49  ;;  %v4470_v25 = vcombine.high %v353_v42, %v357_v53  ;;  %5084 = vmatprep.subr.bf16.mxu0 %v5337_v60  ;;  %v2499_v49 = vadd.f32 %v6001_v36, %v6179_v18  ;;  %v2504_v18 = vadd.f32 %v6001_v36, %v6185_v12 }
 0x234   : > { %5085 = vmatpush3.bf16.msra.mxu0 %v5337_v60 }
 0x235   : > { %v2779_v46 = vpop.f32.mrf.mxu1  ;;  %v2940_v28 = vpop.f32.mrf.mxu0 }
 0x236   : > { %v6296_v24 = vadd.f32 %v2779_v46, %v2491_v45  ;;  %v6299_v30 = vadd.f32 %v2940_v28, %v6039_v56  ;;  %v492_v45 = vld [vmem:[%s5695_s26 + $0x730] sm:$0xff]  ;;  %v361_v46 = vld [vmem:[%s5695_s26 + $0x318] sm:$0xff] }
 0x237   : > { %v2781_v21 = vpop.f32.mrf.mxu1  ;;  %v2942_v31 = vpop.f32.mrf.mxu0  ;;  %v365_v28 = vld [vmem:[%s5695_s26 + $0x338] sm:$0xff] }
 0x238   : > { %6835 = vst [vmem:[#allocation38_spill] sm:$0xff] %v6299_v30  ;;  %v4469_v31 = vcombine.low %v353_v42, %v357_v53  ;;  %v4604_v30 = vcombine.high %v488_v44, %v492_v45  ;;  %v500_v42 = vld [vmem:[%s5695_s26 + $0x770] sm:$0xff] }
 0x239   : > { %v2784_v17 = vpop.f32.mrf.mxu1  ;;  %v2945_v47 = vpop.f32.mrf.mxu0  ;;  %3136 = vmatmul.mubr.bf16.gmra.mxu0 %v4587_v40  ;;  %3297 = vmatmul.mubr.bf16.gmra.mxu1 %v4461_v16  ;;  %v4595_v16 = vcombine.low %v480_v52, %v484_v7  ;;  %v2507_v52 = vadd.f32 %v6001_v36, %v6195_v38 }
 0x23a   : > { %v6303_v33 = vadd.f32 %v2784_v17, %v2496_v29  ;;  %v6306_v56 = vadd.f32 %v2945_v47, %v6045_v1  ;;  %3143 = vmatprep.mubr.bf16.mxu0 %v4596_v57  ;;  %3304 = vmatprep.mubr.bf16.mxu1 %v4470_v25  ;;  %v4478_v29 = vcombine.high %v361_v46, %v365_v28 }
 0x23b   : > { %v2786_v48 = vpop.f32.mrf.mxu1  ;;  %v2947_v3 = vpop.f32.mrf.mxu0 }
 0x23c   : > { %v369_v48 = vld [vmem:[%s5695_s26 + $0x358] sm:$0xff] }
 0x23d   : > { %v2787_v21 = vpop.f32.mrf.mxu1  ;;  %v2948_v40 = vpop.f32.mrf.mxu0  ;;  %v373_v3 = vld [vmem:[%s5695_s26 + $0x378] sm:$0xff] }
 0x23e   : > { %v6314_v1 = vadd.f32 %v2787_v21, %v2499_v49  ;;  %v6317_v57 = vadd.f32 %v2948_v40, %v6055_v58  ;;  %v496_v58 = vld [vmem:[%s5695_s26 + $0x750] sm:$0xff] }
 0x23f   : > { %v2789_v25 = vpop.f32.mrf.mxu1  ;;  %v2950_v60 = vpop.f32.mrf.mxu0 }
 0x240   : > { %v4612_v25 = vcombine.high %v496_v58, %v500_v42  ;;  %v6330_v60 = vld [vmem:[#allocation7] ss:$0 sm:$0xff] }
 0x241   : > { %v2792_v17 = vpop.f32.mrf.mxu1  ;;  %v2953_v47 = vpop.f32.mrf.mxu0  ;;  %3144 = vmatmul.mubr.bf16.gmra.mxu0 %v4595_v16  ;;  %3305 = vmatmul.mubr.bf16.gmra.mxu1 %v4469_v31  ;;  %v4603_v16 = vcombine.low %v488_v44, %v492_v45  ;;  %v4477_v31 = vcombine.low %v361_v46, %v365_v28  ;;  %v2512_v36 = vadd.f32 %v6330_v60, %v6201_v20 }
 0x242   : > { %v6321_v7 = vadd.f32 %v2792_v17, %v2504_v18  ;;  %v6324_v12 = vadd.f32 %v2953_v47, %v6061_v32  ;;  %3151 = vmatprep.mubr.bf16.mxu0 %v4604_v30  ;;  %3312 = vmatprep.mubr.bf16.mxu1 %v4478_v29  ;;  %v4486_v30 = vcombine.high %v369_v48, %v373_v3  ;;  %v508_v17 = vld [vmem:[%s5695_s26 + $0x7b0] sm:$0xff] }
 0x243   : > { %v2794_v53 = vpop.f32.mrf.mxu1  ;;  %v2955_v49 = vpop.f32.mrf.mxu0  ;;  %v2515_v46 = vadd.f32 %v6330_v60, %v6211_v5  ;;  %v2520_v5 = vadd.f32 %v6330_v60, %v6217_v9 }
 0x244   : > { %v377_v53 = vld [vmem:[%s5695_s26 + $0x398] sm:$0xff] }
 0x245   : > { %v2795_v21 = vpop.f32.mrf.mxu1  ;;  %v2956_v40 = vpop.f32.mrf.mxu0  ;;  %v381_v49 = vld [vmem:[%s5695_s26 + $0x3b8] sm:$0xff] }
 0x246   : > { %v6334_v32 = vadd.f32 %v2795_v21, %v2507_v52  ;;  %v6337_v38 = vadd.f32 %v2956_v40, %v6071_v10  ;;  %v504_v10 = vld [vmem:[%s5695_s26 + $0x790] sm:$0xff] }
 0x247   : > { %v2797_v18 = vpop.f32.mrf.mxu1  ;;  %v2958_v29 = vpop.f32.mrf.mxu0 }
 0x248   : > { %v4620_v18 = vcombine.high %v504_v10, %v508_v17 }
 0x249   : > { %v2800_v44 = vpop.f32.mrf.mxu1  ;;  %v2961_v45 = vpop.f32.mrf.mxu0  ;;  %3152 = vmatmul.mubr.bf16.gmra.mxu0 %v4603_v16  ;;  %3313 = vmatmul.mubr.bf16.gmra.mxu1 %v4477_v31  ;;  %v4611_v16 = vcombine.low %v496_v58, %v500_v42  ;;  %v4485_v31 = vcombine.low %v369_v48, %v373_v3  ;;  %v2523_v58 = vadd.f32 %v6330_v60, %v6227_v34  ;;  %v516_v48 = vld [vmem:[%s5695_s26 + $0x7f0] sm:$0xff] }
 0x24a   : > { %v6341_v28 = vadd.f32 %v2800_v44, %v2512_v36  ;;  %v6344_v20 = vadd.f32 %v2961_v45, %v6077_v14  ;;  %3159 = vmatprep.mubr.bf16.mxu0 %v4612_v25  ;;  %3320 = vmatprep.mubr.bf16.mxu1 %v4486_v30  ;;  %v4494_v36 = vcombine.high %v377_v53, %v381_v49 }
 0x24b   : > { %v2802_v47 = vpop.f32.mrf.mxu1  ;;  %v2963_v52 = vpop.f32.mrf.mxu0  ;;  %v2528_v34 = vadd.f32 %v6330_v60, %v6233_v39 }
 0x24c   : > { %v385_v47 = vld [vmem:[%s5695_s26 + $0x3d8] sm:$0xff] }
 0x24d   : > { %v2803_v21 = vpop.f32.mrf.mxu1  ;;  %v2964_v40 = vpop.f32.mrf.mxu0  ;;  %v389_v52 = vld [vmem:[%s5695_s26 + $0x3f8] sm:$0xff] }
 0x24e   : > { %v6352_v14 = vadd.f32 %v2803_v21, %v2515_v46  ;;  %v6355_v25 = vadd.f32 %v2964_v40, %v6087_v4  ;;  %v512_v4 = vld [vmem:[%s5695_s26 + $0x7d0] sm:$0xff] }
 0x24f   : > { %v2805_v30 = vpop.f32.mrf.mxu1  ;;  %v2966_v29 = vpop.f32.mrf.mxu0 }
 0x250   : > { %v4628_v30 = vcombine.high %v512_v4, %v516_v48 }
 0x251   : > { %v2808_v44 = vpop.f32.mrf.mxu1  ;;  %v2969_v45 = vpop.f32.mrf.mxu0  ;;  %3160 = vmatmul.mubr.bf16.gmra.mxu0 %v4611_v16  ;;  %3321 = vmatmul.mubr.bf16.gmra.mxu1 %v4485_v31  ;;  %v4619_v16 = vcombine.low %v504_v10, %v508_v17  ;;  %v4493_v31 = vcombine.low %v377_v53, %v381_v49  ;;  %v2531_v10 = vadd.f32 %v6330_v60, %v6243_v41  ;;  %v393_v49 = vld [vmem:[%s5695_s26 + $0x418] sm:$0xff] }
 0x252   : > { %v6359_v42 = vadd.f32 %v2808_v44, %v2520_v5  ;;  %v6362_v9 = vadd.f32 %v2969_v45, %v6093_v61  ;;  %3167 = vmatprep.mubr.bf16.mxu0 %v4620_v18  ;;  %3328 = vmatprep.mubr.bf16.mxu1 %v4494_v36  ;;  %v4502_v18 = vcombine.high %v385_v47, %v389_v52 }
 0x253   : > { %v2810_v3 = vpop.f32.mrf.mxu1  ;;  %v2971_v46 = vpop.f32.mrf.mxu0 }
 0x255   : > { %v2811_v21 = vpop.f32.mrf.mxu1  ;;  %v2972_v40 = vpop.f32.mrf.mxu0 }
 0x256   : > { %v6370_v5 = vadd.f32 %v2811_v21, %v2523_v58  ;;  %v6373_v61 = vadd.f32 %v2972_v40, %v6103_v0  ;;  %v397_v58 = vld [vmem:[%s5695_s26 + $0x438] sm:$0xff]  ;;  %v4627_v21 = vcombine.low %v512_v4, %v516_v48  ;;  %v4501_v40 = vcombine.low %v385_v47, %v389_v52 }
 0x257   : > { %v2813_v36 = vpop.f32.mrf.mxu1  ;;  %v2974_v29 = vpop.f32.mrf.mxu0  ;;  %v2539_v4 = vadd.f32 %v6330_v60, %v6259_v11 }
 0x258   : > { %v405_v29 = vld [vmem:[%s5695_s26 + $0x478] sm:$0xff] }
 0x259   : > { %v2816_v44 = vpop.f32.mrf.mxu1  ;;  %v2977_v45 = vpop.f32.mrf.mxu0  ;;  %3168 = vmatmul.mubr.bf16.gmra.mxu0 %v4619_v16  ;;  %3329 = vmatmul.mubr.bf16.gmra.mxu1 %v4493_v31  ;;  %v2536_v16 = vadd.f32 %v6330_v60, %v6249_v50  ;;  %v4510_v31 = vcombine.high %v393_v49, %v397_v58 }
 0x25a   : > { %v6377_v17 = vadd.f32 %v2816_v44, %v2528_v34  ;;  %v6380_v39 = vadd.f32 %v2977_v45, %v6109_v55  ;;  %3175 = vmatprep.mubr.bf16.mxu0 %v4628_v30  ;;  %3336 = vmatprep.mubr.bf16.mxu1 %v4502_v18 }
 0x25b   : > { %v2818_v0 = vpop.f32.mrf.mxu1  ;;  %v2979_v53 = vpop.f32.mrf.mxu0 }
 0x25d   : > { %v2819_v3 = vpop.f32.mrf.mxu1  ;;  %v2980_v46 = vpop.f32.mrf.mxu0 }
 0x25e   : > { %v6386_v41 = vadd.f32 %v2819_v3, %v2531_v10  ;;  %v6389_v55 = vadd.f32 %v2980_v46, %v6119_v8  ;;  %v401_v8 = vld [vmem:[%s5695_s26 + $0x458] sm:$0xff]  ;;  %v4509_v10 = vcombine.low %v393_v49, %v397_v58 }
 0x25f   : > { %v2821_v30 = vpop.f32.mrf.mxu1  ;;  %v2982_v34 = vpop.f32.mrf.mxu0  ;;  %v4518_v11 = vcombine.high %v401_v8, %v405_v29 }
 0x260   : > { %v409_v30 = vld [vmem:[%s5695_s26 + $0x498] sm:$0xff]  ;;  %v2547_v34 = vadd.f32 %v6330_v60, %v5919_v27 }
 0x261   : > { %v2824_v18 = vpop.f32.mrf.mxu1  ;;  %v2985_v36 = vpop.f32.mrf.mxu0  ;;  %3176 = vmatmul.mubr.bf16.gmra.mxu0 %v4627_v21  ;;  %3337 = vmatmul.mubr.bf16.gmra.mxu1 %v4501_v40 }
 0x262   : > { %v6393_v48 = vadd.f32 %v2824_v18, %v2536_v16  ;;  %v6396_v50 = vadd.f32 %v2985_v36, %v6125_v6  ;;  %3344 = vmatprep.mubr.bf16.mxu1 %v4510_v31  ;;  %v2544_v6 = vadd.f32 %v6330_v60, %v5911_v19  ;;  %v4517_v19 = vcombine.low %v401_v8, %v405_v29 }
 0x263   : > { %v2826_v47 = vpop.f32.mrf.mxu1  ;;  %v2987_v52 = vpop.f32.mrf.mxu0 }
 0x265   : > { %v2827_v44 = vpop.f32.mrf.mxu1  ;;  %v2988_v45 = vpop.f32.mrf.mxu0 }
 0x266   : > { %v6400_v0 = vadd.f32 %v2827_v44, %v2539_v4  ;;  %v6403_v53 = vadd.f32 %v2988_v45, %v6135_v37  ;;  %v413_v37 = vld [vmem:[%s5695_s26 + $0x4b8] sm:$0xff]  ;;  %v2552_v45 = vadd.f32 %v6330_v60, %v5923_v35 }
 0x267   : > { %v2829_v3 = vpop.f32.mrf.mxu1  ;;  %v2990_v46 = vpop.f32.mrf.mxu0  ;;  %v4525_v35 = vcombine.low %v409_v30, %v413_v37 }
 0x268   : > { %v417_v46 = vld [vmem:[%s5695_s26 + $0x4d8] sm:$0xff] }
 0x269   : > { %v2832_v21 = vpop.f32.mrf.mxu1  ;;  %v2993_v40 = vpop.f32.mrf.mxu0  ;;  %3345 = vmatmul.mubr.bf16.gmra.mxu1 %v4509_v10 }
 0x26a   : > { %v6407_v16 = vadd.f32 %v2832_v21, %v2544_v6  ;;  %v6410_v31 = vadd.f32 %v2993_v40, %v6141_v2  ;;  %3352 = vmatprep.mubr.bf16.mxu1 %v4518_v11  ;;  %v4526_v2 = vcombine.high %v409_v30, %v413_v37  ;;  %v2555_v6 = vadd.f32 %v6330_v60, %v5931_v43 }
 0x26b   : > { %v2834_v49 = vpop.f32.mrf.mxu1  ;;  %v2995_v58 = vpop.f32.mrf.mxu0 }
 0x26d   : > { %v2835_v18 = vpop.f32.mrf.mxu1  ;;  %v2996_v36 = vpop.f32.mrf.mxu0 }
 0x26e   : > { %v6416_v4 = vadd.f32 %v2835_v18, %v2547_v34  ;;  %v6419_v47 = vadd.f32 %v2996_v36, %v6151_v23  ;;  %v421_v23 = vld [vmem:[%s5695_s26 + $0x4f8] sm:$0xff]  ;;  %v2560_v36 = vadd.f32 %v6330_v60, %v5935_v51 }
 0x26f   : > { %v2837_v52 = vpop.f32.mrf.mxu1  ;;  %v2998_v44 = vpop.f32.mrf.mxu0  ;;  %v4533_v51 = vcombine.low %v417_v46, %v421_v23 }
 0x270   : > { %v6836_v52 = vld [vmem:[#allocation26_spill] sm:$0xff] }
 0x271   : > { %v2840_v10 = vpop.f32.mrf.mxu1  ;;  %v3001_v11 = vpop.f32.mrf.mxu0  ;;  %3353 = vmatmul.mubr.bf16.gmra.mxu1 %v4517_v19 }
 0x272   : > { %v6423_v27 = vadd.f32 %v2840_v10, %v2552_v45  ;;  %v6426_v3 = vadd.f32 %v3001_v11, %v6157_v22  ;;  %3360 = vmatprep.mubr.bf16.mxu1 %v4526_v2  ;;  %v4534_v22 = vcombine.high %v417_v46, %v421_v23  ;;  %v425_v45 = vld [vmem:[%s5695_s26 + $0x518] sm:$0xff]  ;;  %v6837_v10 = vld [vmem:[#allocation15_spill] sm:$0xff] }
 0x273   : > { %v2842_v8 = vpop.f32.mrf.mxu1  ;;  %v3003_v29 = vpop.f32.mrf.mxu0  ;;  %v2563_v11 = vadd.f32 %v6330_v60, %v6837_v10  ;;  %v433_v10 = vld [vmem:[%s5695_s26 + $0x558] sm:$0xff] }
 0x275   : > { %v2843_v21 = vpop.f32.mrf.mxu1  ;;  %v3004_v40 = vpop.f32.mrf.mxu0 }
 0x276   : > { %v6432_v49 = vadd.f32 %v2843_v21, %v2555_v6  ;;  %v6435_v58 = vadd.f32 %v3004_v40, %v6167_v63  ;;  %v429_v63 = vld [vmem:[%s5695_s26 + $0x538] sm:$0xff]  ;;  %v6838_v21 = vld [vmem:[#allocation27_spill] sm:$0xff] }
 0x277   : > { %v2845_v34 = vpop.f32.mrf.mxu1  ;;  %v3006_v18 = vpop.f32.mrf.mxu0 }
 0x278   : > { %v6840_v18 = vld [vmem:[#allocation16_spill] sm:$0xff] }
 0x279   : > { %v2848_v19 = vpop.f32.mrf.mxu1  ;;  %v3009_v2 = vpop.f32.mrf.mxu0  ;;  %3361 = vmatmul.mubr.bf16.gmra.mxu1 %v4525_v35  ;;  %v4542_v35 = vcombine.high %v425_v45, %v429_v63 }
 0x27a   : > { %v6439_v43 = vadd.f32 %v2848_v19, %v2560_v36  ;;  %v6442_v44 = vadd.f32 %v3009_v2, %v6836_v52  ;;  %3368 = vmatprep.mubr.bf16.mxu1 %v4534_v22  ;;  %v2568_v36 = vadd.f32 %v6330_v60, %v6840_v18 }
 0x27b   : > { %v2850_v30 = vpop.f32.mrf.mxu1  ;;  %v3011_v37 = vpop.f32.mrf.mxu0 }
 0x27c   : > { %v6842_v30 = vld [vmem:[#allocation28_spill] sm:$0xff] }
 0x27d   : > { %v2851_v8 = vpop.f32.mrf.mxu1  ;;  %v3012_v29 = vpop.f32.mrf.mxu0 }
 0x27e   : > { %v6448_v6 = vadd.f32 %v2851_v8, %v2563_v11  ;;  %v6451_v40 = vadd.f32 %v3012_v29, %v6838_v21  ;;  %v437_v11 = vld [vmem:[%s5695_s26 + $0x578] sm:$0xff] }
 0x27f   : > { %v2853_v34 = vpop.f32.mrf.mxu1  ;;  %v3014_v22 = vpop.f32.mrf.mxu0  ;;  %v6844_v8 = vld [vmem:[#allocation17_spill] sm:$0xff] }
 0x280   : > { %6839 = vst [vmem:[#allocation26_spill] sm:$0xff] %v6451_v40  ;;  %v2571_v29 = vadd.f32 %v6330_v60, %v6844_v8  ;;  %v4541_v22 = vcombine.low %v425_v45, %v429_v63 }
 0x281   : > { %v2856_v19 = vpop.f32.mrf.mxu1  ;;  %v3017_v2 = vpop.f32.mrf.mxu0  ;;  %3369 = vmatmul.mubr.bf16.gmra.mxu1 %v4533_v51  ;;  %v6846_v51 = vld [vmem:[#allocation29_spill] sm:$0xff] }
 0x282   : > { %v6455_v52 = vadd.f32 %v2856_v19, %v2568_v36  ;;  %v6458_v37 = vadd.f32 %v3017_v2, %v6842_v30  ;;  %3376 = vmatprep.mubr.bf16.mxu1 %v4542_v35  ;;  %v4550_v19 = vcombine.high %v433_v10, %v437_v11  ;;  %v6848_v30 = vld [vmem:[#allocation18_spill] sm:$0xff] }
 0x283   : > { %v2858_v46 = vpop.f32.mrf.mxu1  ;;  %v3019_v23 = vpop.f32.mrf.mxu0 }
 0x284   : > { %6841 = vst [vmem:[#allocation15_spill] sm:$0xff] %v6455_v52  ;;  %6843 = vst [vmem:[#allocation27_spill] sm:$0xff] %v6458_v37  ;;  %v2576_v46 = vadd.f32 %v6330_v60, %v6848_v30  ;;  %v6850_v52 = vld [vmem:[#allocation30_spill] sm:$0xff]  ;;  %v4549_v30 = vcombine.low %v433_v10, %v437_v11 }
 0x285   : > { %v2859_v21 = vpop.f32.mrf.mxu1  ;;  %v3020_v34 = vpop.f32.mrf.mxu0 }
 0x286   : > { %v6464_v18 = vadd.f32 %v2859_v21, %v2571_v29  ;;  %v6467_v36 = vadd.f32 %v3020_v34, %v6846_v51  ;;  %v441_v29 = vld [vmem:[%s5695_s26 + $0x598] sm:$0xff]  ;;  %v6852_v34 = vld [vmem:[#allocation19_spill] sm:$0xff] }
 0x287   : > { %v2861_v2 = vpop.f32.mrf.mxu1  ;;  %v3022_v35 = vpop.f32.mrf.mxu0  ;;  %v445_v21 = vld [vmem:[%s5695_s26 + $0x5b8] sm:$0xff]  ;;  %v2579_v51 = vadd.f32 %v6330_v60, %v6852_v34 }
 0x288   : > { %6845 = vst [vmem:[#allocation16_spill] sm:$0xff] %v6464_v18  ;;  %6847 = vst [vmem:[#allocation28_spill] sm:$0xff] %v6467_v36 }
 0x289   : > { %v2864_v23 = vpop.f32.mrf.mxu1  ;;  %v3025_v37 = vpop.f32.mrf.mxu0  ;;  %3377 = vmatmul.mubr.bf16.gmra.mxu1 %v4541_v22  ;;  %v6854_v22 = vld [vmem:[#allocation31_spill] sm:$0xff] }
 0x28a   : > { %v6471_v8 = vadd.f32 %v2864_v23, %v2576_v46  ;;  %v6474_v40 = vadd.f32 %v3025_v37, %v6850_v52  ;;  %3384 = vmatprep.mubr.bf16.mxu1 %v4550_v19  ;;  %v4558_v52 = vcombine.high %v441_v29, %v445_v21  ;;  %v6856_v23 = vld [vmem:[#allocation20_spill] sm:$0xff] }
 0x28b   : > { %v2866_v45 = vpop.f32.mrf.mxu1  ;;  %v3027_v63 = vpop.f32.mrf.mxu0 }
 0x28c   : > { %6849 = vst [vmem:[#allocation17_spill] sm:$0xff] %v6471_v8  ;;  %6851 = vst [vmem:[#allocation29_spill] sm:$0xff] %v6474_v40  ;;  %v2584_v45 = vadd.f32 %v6330_v60, %v6856_v23  ;;  %v6858_v8 = vld [vmem:[#allocation32_spill] sm:$0xff]  ;;  %v4557_v23 = vcombine.low %v441_v29, %v445_v21 }
 0x28d   : > { %v2867_v2 = vpop.f32.mrf.mxu1  ;;  %v3028_v35 = vpop.f32.mrf.mxu0 }
 0x28e   : > { %v6480_v36 = vadd.f32 %v2867_v2, %v2579_v51  ;;  %v6483_v46 = vadd.f32 %v3028_v35, %v6854_v22  ;;  %v449_v51 = vld [vmem:[%s5695_s26 + $0x5d8] sm:$0xff] }
 0x28f   : > { %v2869_v37 = vpop.f32.mrf.mxu1  ;;  %v3030_v19 = vpop.f32.mrf.mxu0  ;;  %v453_v2 = vld [vmem:[%s5695_s26 + $0x5f8] sm:$0xff] }
 0x290   : > { %6853 = vst [vmem:[#allocation18_spill] sm:$0xff] %v6480_v36  ;;  %6855 = vst [vmem:[#allocation30_spill] sm:$0xff] %v6483_v46  ;;  %v6860_v35 = vld [vmem:[#allocation21_spill] sm:$0xff] }
 0x291   : > { %v2872_v63 = vpop.f32.mrf.mxu1  ;;  %v3033_v40 = vpop.f32.mrf.mxu0  ;;  %3385 = vmatmul.mubr.bf16.gmra.mxu1 %v4549_v30  ;;  %v2587_v22 = vadd.f32 %v6330_v60, %v6860_v35  ;;  %v6862_v30 = vld [vmem:[#allocation33_spill] sm:$0xff] }
 0x292   : > { %v6487_v34 = vadd.f32 %v2872_v63, %v2584_v45  ;;  %v6490_v18 = vadd.f32 %v3033_v40, %v6858_v8  ;;  %3392 = vmatprep.mubr.bf16.mxu1 %v4558_v52  ;;  %v4566_v40 = vcombine.high %v449_v51, %v453_v2  ;;  %v6864_v63 = vld [vmem:[#allocation22_spill] sm:$0xff] }
 0x293   : > { %v2874_v10 = vpop.f32.mrf.mxu1  ;;  %v3035_v11 = vpop.f32.mrf.mxu0 }
 0x294   : > { %6857 = vst [vmem:[#allocation19_spill] sm:$0xff] %v6487_v34  ;;  %6859 = vst [vmem:[#allocation31_spill] sm:$0xff] %v6490_v18  ;;  %v2592_v10 = vadd.f32 %v6330_v60, %v6864_v63  ;;  %v6866_v34 = vld [vmem:[#allocation34_spill] sm:$0xff]  ;;  %v4565_v63 = vcombine.low %v449_v51, %v453_v2 }
 0x295   : > { %v2875_v37 = vpop.f32.mrf.mxu1  ;;  %v3036_v19 = vpop.f32.mrf.mxu0 }
 0x296   : > { %v6496_v46 = vadd.f32 %v2875_v37, %v2587_v22  ;;  %v6499_v45 = vadd.f32 %v3036_v19, %v6862_v30  ;;  %v457_v22 = vld [vmem:[%s5695_s26 + $0x618] sm:$0xff]  ;;  %v6868_v19 = vld [vmem:[#allocation23_spill] sm:$0xff] }
 0x297   : > { %v2877_v8 = vpop.f32.mrf.mxu1  ;;  %v3038_v52 = vpop.f32.mrf.mxu0  ;;  %v461_v37 = vld [vmem:[%s5695_s26 + $0x638] sm:$0xff]  ;;  %v2595_v30 = vadd.f32 %v6330_v60, %v6868_v19 }
 0x298   : > { %6861 = vst [vmem:[#allocation20_spill] sm:$0xff] %v6496_v46  ;;  %6863 = vst [vmem:[#allocation32_spill] sm:$0xff] %v6499_v45 }
 0x299   : > { %v2880_v11 = vpop.f32.mrf.mxu1  ;;  %v3041_v18 = vpop.f32.mrf.mxu0  ;;  %3393 = vmatmul.mubr.bf16.gmra.mxu1 %v4557_v23  ;;  %v6869_v23 = vld [vmem:[#allocation35_spill] sm:$0xff] }
 0x29a   : > { %v6503_v35 = vadd.f32 %v2880_v11, %v2592_v10  ;;  %v6506_v36 = vadd.f32 %v3041_v18, %v6866_v34  ;;  %3400 = vmatprep.mubr.bf16.mxu1 %v4566_v40  ;;  %v4574_v18 = vcombine.high %v457_v22, %v461_v37  ;;  %v6871_v11 = vld [vmem:[#allocation24_spill] sm:$0xff] }
 0x29b   : > { %v2882_v29 = vpop.f32.mrf.mxu1  ;;  %v3043_v21 = vpop.f32.mrf.mxu0 }
 0x29c   : > { %6865 = vst [vmem:[#allocation21_spill] sm:$0xff] %v6503_v35  ;;  %6867 = vst [vmem:[#allocation33_spill] sm:$0xff] %v6506_v36  ;;  %v2600_v29 = vadd.f32 %v6330_v60, %v6871_v11  ;;  %v6873_v35 = vld [vmem:[#allocation36_spill] sm:$0xff]  ;;  %v4573_v11 = vcombine.low %v457_v22, %v461_v37 }
 0x29d   : > { %v2883_v8 = vpop.f32.mrf.mxu1  ;;  %v3044_v52 = vpop.f32.mrf.mxu0 }
 0x29e   : > { %v6512_v45 = vadd.f32 %v2883_v8, %v2595_v30  ;;  %v6515_v10 = vadd.f32 %v3044_v52, %v6869_v23  ;;  %v465_v30 = vld [vmem:[%s5695_s26 + $0x658] sm:$0xff] }
 0x29f   : > { %v2885_v34 = vpop.f32.mrf.mxu1  ;;  %v3046_v40 = vpop.f32.mrf.mxu0  ;;  %v469_v8 = vld [vmem:[%s5695_s26 + $0x678] sm:$0xff] }
 0x2a0   : > { %6870 = vst [vmem:[#allocation22_spill] sm:$0xff] %v6515_v10  ;;  %v6875_v52 = vld [vmem:[#allocation25_spill] sm:$0xff] }
 0x2a1   : > { %v2888_v21 = vpop.f32.mrf.mxu1  ;;  %v3049_v36 = vpop.f32.mrf.mxu0  ;;  %3401 = vmatmul.mubr.bf16.gmra.mxu1 %v4565_v63  ;;  %v2603_v23 = vadd.f32 %v6330_v60, %v6875_v52  ;;  %v6876_v63 = vld [vmem:[#allocation37_spill] sm:$0xff] }
 0x2a2   : > { %v6519_v19 = vadd.f32 %v2888_v21, %v2600_v29  ;;  %v6522_v46 = vadd.f32 %v3049_v36, %v6873_v35  ;;  %3408 = vmatprep.mubr.bf16.mxu1 %v4574_v18  ;;  %v4582_v36 = vcombine.high %v465_v30, %v469_v8 }
 0x2a3   : > { %v2890_v51 = vpop.f32.mrf.mxu1  ;;  %v3051_v2 = vpop.f32.mrf.mxu0 }
 0x2a4   : > { %6872 = vst [vmem:[#allocation34_spill] sm:$0xff] %v6519_v19  ;;  %6874 = vst [vmem:[#allocation23_spill] sm:$0xff] %v6522_v46  ;;  %v473_v46 = vld [vmem:[%s5695_s26 + $0x698] sm:$0xff] }
 0x2a5   : > { %v2891_v34 = vpop.f32.mrf.mxu1  ;;  %v3052_v40 = vpop.f32.mrf.mxu0  ;;  %v477_v19 = vld [vmem:[%s5695_s26 + $0x6b8] sm:$0xff] }
 0x2a6   : > { %v6528_v10 = vadd.f32 %v2891_v34, %v2603_v23  ;;  %v6531_v29 = vadd.f32 %v3052_v40, %v6876_v63  ;;  %v4581_v34 = vcombine.low %v465_v30, %v469_v8  ;;  %v4590_v63 = vcombine.high %v473_v46, %v477_v19 }
 0x2a7   : > { %v2893_v35 = vpop.f32.mrf.mxu1  ;;  %v3054_v18 = vpop.f32.mrf.mxu0 }
 0x2a9   : > { %v3057_v21 = vpop.f32.mrf.mxu0  ;;  %v3218_v51 = vpop.f32.mrf.mxu1  ;;  %3409 = vmatmul.mubr.bf16.gmra.mxu1 %v4573_v11 }
 0x2aa   : > { %v6534_v2 = vadd.f32 %v3057_v21, %v6267_v62  ;;  %3416 = vmatprep.mubr.bf16.mxu1 %v4582_v36  ;;  %v3219_v22 = vadd.f32 %v3218_v51, %v6270_v15  ;;  %v485_v51 = vld [vmem:[%s5695_s26 + $0x6f8] sm:$0xff] }
 0x2ab   : > { %v3059_v60 = vpop.f32.mrf.mxu0  ;;  %v3220_v52 = vpop.f32.mrf.mxu1 }
 0x2ac   : > { %v3473_v36 = vmax.f32 %v3219_v22, 0.0 }
 0x2ad   : > { %v3060_v37 = vpop.f32.mrf.mxu0  ;;  %v3221_v23 = vpop.f32.mrf.mxu1 }
 0x2ae   : > { %v6540_v40 = vadd.f32 %v3060_v37, %v6278_v59  ;;  %v3222_v11 = vadd.f32 %v3221_v23, %v6281_v54  ;;  %v481_v59 = vld [vmem:[%s5695_s26 + $0x6d8] sm:$0xff] }
 0x2af   : > { %v3062_v62 = vpop.f32.mrf.mxu0  ;;  %v3223_v35 = vpop.f32.mrf.mxu1 }
 0x2b0   : > { %v3474_v18 = vmax.f32 %v3222_v11, 0.0  ;;  %v4589_v62 = vcombine.low %v473_v46, %v477_v19 }
 0x2b1   : > { %v3065_v21 = vpop.f32.mrf.mxu0  ;;  %v3226_v60 = vpop.f32.mrf.mxu1  ;;  %3417 = vmatmul.mubr.bf16.gmra.mxu1 %v4581_v34  ;;  %v6877_v34 = vld [vmem:[#allocation38_spill] sm:$0xff] }
 0x2b2   : > { %v3537_v52 = vpack.c.bf16 %v3474_v18, %v3473_v36  ;;  %v6544_v15 = vadd.f32 %v3065_v21, %v6285_v26  ;;  %3424 = vmatprep.mubr.bf16.mxu1 %v4590_v63  ;;  %v3227_v37 = vadd.f32 %v3226_v60, %v6288_v13  ;;  %v4598_v26 = vcombine.high %v481_v59, %v485_v51 }
 0x2b3   : > { %v3067_v30 = vpop.f32.mrf.mxu0  ;;  %v3228_v8 = vpop.f32.mrf.mxu1 }
 0x2b4   : > { %5086 = vmatprep.mubr.bf16.mxu0 %v3537_v52  ;;  %v3475_v36 = vmax.f32 %v3227_v37, 0.0  ;;  %v493_v52 = vld [vmem:[%s5695_s26 + $0x738] sm:$0xff] }
 0x2b5   : > { %v3068_v54 = vpop.f32.mrf.mxu0  ;;  %v3229_v23 = vpop.f32.mrf.mxu1 }
 0x2b6   : > { %v6550_v22 = vadd.f32 %v3068_v54, %v6296_v24  ;;  %v3230_v11 = vadd.f32 %v3229_v23, %v6877_v34  ;;  %v489_v24 = vld [vmem:[%s5695_s26 + $0x718] sm:$0xff]  ;;  %v4597_v34 = vcombine.low %v481_v59, %v485_v51 }
 0x2b7   : > { %v3070_v35 = vpop.f32.mrf.mxu0  ;;  %v3231_v63 = vpop.f32.mrf.mxu1 }
 0x2b8   : > { %v3476_v18 = vmax.f32 %v3230_v11, 0.0 }
 0x2b9   : > { %v3073_v21 = vpop.f32.mrf.mxu0  ;;  %v3234_v30 = vpop.f32.mrf.mxu1  ;;  %3425 = vmatmul.mubr.bf16.gmra.mxu1 %v4589_v62 }
 0x2ba   : > { %v3538_v13 = vpack.c.bf16 %v3476_v18, %v3475_v36  ;;  %v6554_v60 = vadd.f32 %v3073_v21, %v6303_v33  ;;  %3432 = vmatprep.mubr.bf16.mxu1 %v4598_v26  ;;  %v3235_v8 = vadd.f32 %v3234_v30, %v6306_v56  ;;  %v4606_v33 = vcombine.high %v489_v24, %v493_v52  ;;  %v501_v30 = vld [vmem:[%s5695_s26 + $0x778] sm:$0xff] }
 0x2bb   : > { %v3075_v46 = vpop.f32.mrf.mxu0  ;;  %v3236_v19 = vpop.f32.mrf.mxu1 }
 0x2bc   : > { %5087 = vmatmul.mubr.bf16.vlgmr.msra.gmra.mxu0 %v3538_v13  ;;  %v3477_v35 = vmax.f32 %v3235_v8, 0.0  ;;  %v4605_v19 = vcombine.low %v489_v24, %v493_v52 }
 0x2bd   : > { %v3076_v54 = vpop.f32.mrf.mxu0  ;;  %v3237_v23 = vpop.f32.mrf.mxu1 }
 0x2be   : > { %v6560_v37 = vadd.f32 %v3076_v54, %v6314_v1  ;;  %v3238_v62 = vadd.f32 %v3237_v23, %v6317_v57  ;;  %v497_v1 = vld [vmem:[%s5695_s26 + $0x758] sm:$0xff] }
 0x2bf   : > { %v3078_v11 = vpop.f32.mrf.mxu0  ;;  %v3239_v26 = vpop.f32.mrf.mxu1 }
 0x2c0   : > { %v3478_v63 = vmax.f32 %v3238_v62, 0.0 }
 0x2c1   : > { %v3081_v36 = vpop.f32.mrf.mxu0  ;;  %v3242_v18 = vpop.f32.mrf.mxu1  ;;  %3433 = vmatmul.mubr.bf16.gmra.mxu1 %v4597_v34 }
 0x2c2   : > { %v3539_v56 = vpack.c.bf16 %v3478_v63, %v3477_v35  ;;  %v6564_v21 = vadd.f32 %v3081_v36, %v6321_v7  ;;  %3440 = vmatprep.mubr.bf16.mxu1 %v4606_v33  ;;  %v3243_v13 = vadd.f32 %v3242_v18, %v6324_v12  ;;  %v4614_v7 = vcombine.high %v497_v1, %v501_v30  ;;  %v509_v63 = vld [vmem:[%s5695_s26 + $0x7b8] sm:$0xff] }
 0x2c3   : > { %v3083_v59 = vpop.f32.mrf.mxu0  ;;  %v3244_v51 = vpop.f32.mrf.mxu1 }
 0x2c4   : > { %5090 = vmatprep.mubr.bf16.mxu0 %v3539_v56  ;;  %v3479_v62 = vmax.f32 %v3243_v13, 0.0  ;;  %v4613_v56 = vcombine.low %v497_v1, %v501_v30 }
 0x2c5   : > { %v3084_v57 = vpop.f32.mrf.mxu0  ;;  %v3245_v46 = vpop.f32.mrf.mxu1 }
 0x2c6   : > { %v6570_v8 = vadd.f32 %v3084_v57, %v6334_v32  ;;  %v3246_v54 = vadd.f32 %v3245_v46, %v6337_v38  ;;  %v505_v32 = vld [vmem:[%s5695_s26 + $0x798] sm:$0xff] }
 0x2c7   : > { %v3086_v23 = vpop.f32.mrf.mxu0  ;;  %v3247_v34 = vpop.f32.mrf.mxu1 }
 0x2c8   : > { %v3480_v33 = vmax.f32 %v3246_v54, 0.0  ;;  %v517_v34 = vld [vmem:[%s5695_s26 + $0x7f8] sm:$0xff] }
 0x2c9   : > { %v3089_v11 = vpop.f32.mrf.mxu0  ;;  %v3250_v26 = vpop.f32.mrf.mxu1  ;;  %3441 = vmatmul.mubr.bf16.gmra.mxu1 %v4605_v19 }
 0x2ca   : > { %v3540_v12 = vpack.c.bf16 %v3480_v33, %v3479_v62  ;;  %v6574_v35 = vadd.f32 %v3089_v11, %v6341_v28  ;;  %3448 = vmatprep.mubr.bf16.mxu1 %v4614_v7  ;;  %v3251_v36 = vadd.f32 %v3250_v26, %v6344_v20  ;;  %v4622_v28 = vcombine.high %v505_v32, %v509_v63 }
 0x2cb   : > { %v3091_v24 = vpop.f32.mrf.mxu0  ;;  %v3252_v52 = vpop.f32.mrf.mxu1  ;;  %v4621_v11 = vcombine.low %v505_v32, %v509_v63 }
 0x2cc   : > { %5091 = vmatmul.mubr.bf16.gmra.mxu0 %v3540_v12  ;;  %v3481_v46 = vmax.f32 %v3251_v36, 0.0 }
 0x2cd   : > { %v3092_v38 = vpop.f32.mrf.mxu0  ;;  %v3253_v18 = vpop.f32.mrf.mxu1 }
 0x2ce   : > { %v6580_v59 = vadd.f32 %v3092_v38, %v6352_v14  ;;  %v3254_v51 = vadd.f32 %v3253_v18, %v6355_v25  ;;  %v513_v14 = vld [vmem:[%s5695_s26 + $0x7d8] sm:$0xff] }
 0x2cf   : > { %v3094_v13 = vpop.f32.mrf.mxu0  ;;  %v3255_v57 = vpop.f32.mrf.mxu1  ;;  %v4630_v24 = vcombine.high %v513_v14, %v517_v34 }
 0x2d0   : > { %v3482_v19 = vmax.f32 %v3254_v51, 0.0  ;;  %v4629_v13 = vcombine.low %v513_v14, %v517_v34 }
 0x2d1   : > { %v3097_v54 = vpop.f32.mrf.mxu0  ;;  %v3258_v7 = vpop.f32.mrf.mxu1  ;;  %3449 = vmatmul.mubr.bf16.gmra.mxu1 %v4613_v56 }
 0x2d2   : > { %v3541_v20 = vpack.c.bf16 %v3482_v19, %v3481_v46  ;;  %v6584_v23 = vadd.f32 %v3097_v54, %v6359_v42  ;;  %3456 = vmatprep.mubr.bf16.mxu1 %v4622_v28  ;;  %v3259_v62 = vadd.f32 %v3258_v7, %v6362_v9 }
 0x2d3   : > { %v3099_v1 = vpop.f32.mrf.mxu0  ;;  %v3260_v30 = vpop.f32.mrf.mxu1 }
 0x2d4   : > { %5094 = vmatprep.mubr.bf16.mxu0 %v3541_v20  ;;  %v3483_v36 = vmax.f32 %v3259_v62, 0.0 }
 0x2d5   : > { %v3100_v25 = vpop.f32.mrf.mxu0  ;;  %v3261_v33 = vpop.f32.mrf.mxu1 }
 0x2d6   : > { %v6590_v26 = vadd.f32 %v3100_v25, %v6370_v5  ;;  %v3262_v12 = vadd.f32 %v3261_v33, %v6373_v61 }
 0x2d7   : > { %v3102_v52 = vpop.f32.mrf.mxu0  ;;  %v3263_v42 = vpop.f32.mrf.mxu1 }
 0x2d8   : > { %v3484_v38 = vmax.f32 %v3262_v12, 0.0 }
 0x2d9   : > { %v3105_v18 = vpop.f32.mrf.mxu0  ;;  %v3266_v56 = vpop.f32.mrf.mxu1  ;;  %3457 = vmatmul.mubr.bf16.gmra.mxu1 %v4621_v11 }
 0x2da   : > { %v3542_v51 = vpack.c.bf16 %v3484_v38, %v3483_v36  ;;  %v6594_v9 = vadd.f32 %v3105_v18, %v6377_v17  ;;  %3464 = vmatprep.mubr.bf16.mxu1 %v4630_v24  ;;  %v3267_v5 = vadd.f32 %v3266_v56, %v6380_v39 }
 0x2db   : > { %v3107_v28 = vpop.f32.mrf.mxu0  ;;  %v3268_v32 = vpop.f32.mrf.mxu1 }
 0x2dc   : > { %5095 = vmatmul.mubr.bf16.gmra.mxu0 %v3542_v51  ;;  %v3485_v7 = vmax.f32 %v3267_v5, 0.0 }
 0x2dd   : > { %v3108_v63 = vpop.f32.mrf.mxu0  ;;  %v3269_v61 = vpop.f32.mrf.mxu1 }
 0x2de   : > { %v6598_v57 = vadd.f32 %v3108_v63, %v6386_v41  ;;  %v3270_v46 = vadd.f32 %v3269_v61, %v6389_v55 }
 0x2df   : > { %v3110_v19 = vpop.f32.mrf.mxu0  ;;  %v3271_v54 = vpop.f32.mrf.mxu1 }
 0x2e0   : > { %v3486_v20 = vmax.f32 %v3270_v46, 0.0 }
 0x2e1   : > { %v3113_v17 = vpop.f32.mrf.mxu0  ;;  %v3274_v1 = vpop.f32.mrf.mxu1  ;;  %3465 = vmatmul.mubr.bf16.gmra.mxu1 %v4629_v13 }
 0x2e2   : > { %v3543_v30 = vpack.c.bf16 %v3486_v20, %v3485_v7  ;;  %v6602_v62 = vadd.f32 %v3113_v17, %v6393_v48  ;;  %v3275_v14 = vadd.f32 %v3274_v1, %v6396_v50 }
 0x2e3   : > { %v3115_v39 = vpop.f32.mrf.mxu0  ;;  %v3276_v25 = vpop.f32.mrf.mxu1 }
 0x2e4   : > { %5098 = vmatprep.mubr.bf16.mxu0 %v3543_v30  ;;  %v3487_v24 = vmax.f32 %v3275_v14, 0.0 }
 0x2e5   : > { %v3116_v41 = vpop.f32.mrf.mxu0  ;;  %v3277_v34 = vpop.f32.mrf.mxu1 }
 0x2e6   : > { %v6606_v55 = vadd.f32 %v3116_v41, %v6400_v0  ;;  %v3278_v33 = vadd.f32 %v3277_v34, %v6403_v53 }
 0x2e7   : > { %v3118_v11 = vpop.f32.mrf.mxu0  ;;  %v3279_v12 = vpop.f32.mrf.mxu1 }
 0x2e8   : > { %v3488_v52 = vmax.f32 %v3278_v33, 0.0 }
 0x2e9   : > { %v3121_v42 = vpop.f32.mrf.mxu0  ;;  %v3282_v36 = vpop.f32.mrf.mxu1 }
 0x2ea   : > { %v3544_v48 = vpack.c.bf16 %v3488_v52, %v3487_v24  ;;  %v6610_v38 = vadd.f32 %v3121_v42, %v6407_v16  ;;  %v3283_v56 = vadd.f32 %v3282_v36, %v6410_v31 }
 0x2eb   : > { %v3123_v18 = vpop.f32.mrf.mxu0  ;;  %v3284_v50 = vpop.f32.mrf.mxu1 }
 0x2ec   : > { %5099 = vmatmul.mubr.bf16.gmra.mxu0 %v3544_v48  ;;  %v3489_v63 = vmax.f32 %v3283_v56, 0.0 }
 0x2ed   : > { %v3124_v51 = vpop.f32.mrf.mxu0  ;;  %v3285_v0 = vpop.f32.mrf.mxu1 }
 0x2ee   : > { %v6614_v28 = vadd.f32 %v3124_v51, %v6416_v4  ;;  %v3286_v53 = vadd.f32 %v3285_v0, %v6419_v47  ;;  %v6879_v51 = vld [vmem:[#allocation15_spill] sm:$0xff] }
 0x2ef   : > { %v3126_v32 = vpop.f32.mrf.mxu0  ;;  %v3287_v5 = vpop.f32.mrf.mxu1 }
 0x2f0   : > { %v3490_v61 = vmax.f32 %v3286_v53, 0.0  ;;  %v6880_v32 = vld [vmem:[#allocation27_spill] sm:$0xff] }
 0x2f1   : > { %v3129_v13 = vpop.f32.mrf.mxu0  ;;  %v3290_v46 = vpop.f32.mrf.mxu1 }
 0x2f2   : > { %v3545_v16 = vpack.c.bf16 %v3490_v61, %v3489_v63  ;;  %v6618_v19 = vadd.f32 %v3129_v13, %v6423_v27  ;;  %v3291_v7 = vadd.f32 %v3290_v46, %v6426_v3  ;;  %v6881_v61 = vld [vmem:[#allocation16_spill] sm:$0xff] }
 0x2f3   : > { %v3131_v54 = vpop.f32.mrf.mxu0  ;;  %v3292_v31 = vpop.f32.mrf.mxu1  ;;  %v6882_v46 = vld [vmem:[#allocation28_spill] sm:$0xff] }
 0x2f4   : > { %5102 = vmatprep.mubr.bf16.mxu0 %v3545_v16  ;;  %v3491_v39 = vmax.f32 %v3291_v7, 0.0 }
 0x2f5   : > { %v3132_v20 = vpop.f32.mrf.mxu0  ;;  %v3293_v4 = vpop.f32.mrf.mxu1 }
 0x2f6   : > { %v6622_v17 = vadd.f32 %v3132_v20, %v6432_v49  ;;  %v3294_v47 = vadd.f32 %v3293_v4, %v6435_v58  ;;  %v6878_v58 = vld [vmem:[#allocation26_spill] sm:$0xff] }
 0x2f7   : > { %v3134_v1 = vpop.f32.mrf.mxu0  ;;  %v3295_v30 = vpop.f32.mrf.mxu1 }
 0x2f8   : > { %v3492_v25 = vmax.f32 %v3294_v47, 0.0  ;;  %v6883_v30 = vld [vmem:[#allocation17_spill] sm:$0xff] }
 0x2f9   : > { %v3137_v14 = vpop.f32.mrf.mxu0  ;;  %v3298_v41 = vpop.f32.mrf.mxu1 }
 0x2fa   : > { %v3546_v27 = vpack.c.bf16 %v3492_v25, %v3491_v39  ;;  %v6626_v34 = vadd.f32 %v3137_v14, %v6439_v43  ;;  %v3299_v11 = vadd.f32 %v3298_v41, %v6442_v44  ;;  %v6884_v41 = vld [vmem:[#allocation29_spill] sm:$0xff] }
 0x2fb   : > { %v3139_v33 = vpop.f32.mrf.mxu0  ;;  %v3300_v3 = vpop.f32.mrf.mxu1 }
 0x2fc   : > { %5103 = vmatmul.mubr.bf16.gmra.mxu0 %v3546_v27  ;;  %v3493_v48 = vmax.f32 %v3299_v11, 0.0  ;;  %v6885_v11 = vld [vmem:[#allocation18_spill] sm:$0xff] }
 0x2fd   : > { %v3140_v12 = vpop.f32.mrf.mxu0  ;;  %v3301_v49 = vpop.f32.mrf.mxu1 }
 0x2fe   : > { %v6630_v24 = vadd.f32 %v3140_v12, %v6448_v6  ;;  %v3302_v52 = vadd.f32 %v3301_v49, %v6878_v58  ;;  %v6886_v49 = vld [vmem:[#allocation30_spill] sm:$0xff] }
 0x2ff   : > { %v3142_v42 = vpop.f32.mrf.mxu0  ;;  %v3303_v36 = vpop.f32.mrf.mxu1 }
 0x300   : > { %v3494_v18 = vmax.f32 %v3302_v52, 0.0 }
 0x301   : > { %v3145_v50 = vpop.f32.mrf.mxu0  ;;  %v3306_v56 = vpop.f32.mrf.mxu1 }
 0x302   : > { %v3547_v43 = vpack.c.bf16 %v3494_v18, %v3493_v48  ;;  %v6634_v0 = vadd.f32 %v3145_v50, %v6879_v51  ;;  %v3307_v5 = vadd.f32 %v3306_v56, %v6880_v32  ;;  %v6888_v32 = vld [vmem:[#allocation31_spill] sm:$0xff] }
 0x303   : > { %v3147_v53 = vpop.f32.mrf.mxu0  ;;  %v3308_v44 = vpop.f32.mrf.mxu1 }
 0x304   : > { %5106 = vmatprep.mubr.bf16.mxu0 %v3547_v43  ;;  %v3495_v7 = vmax.f32 %v3307_v5, 0.0  ;;  %v6887_v43 = vld [vmem:[#allocation19_spill] sm:$0xff] }
 0x305   : > { %v3148_v63 = vpop.f32.mrf.mxu0  ;;  %v3309_v6 = vpop.f32.mrf.mxu1 }
 0x306   : > { %v6638_v13 = vadd.f32 %v3148_v63, %v6881_v61  ;;  %v3310_v16 = vadd.f32 %v3309_v6, %v6882_v46  ;;  %v6889_v61 = vld [vmem:[#allocation20_spill] sm:$0xff] }
 0x307   : > { %v3150_v54 = vpop.f32.mrf.mxu0  ;;  %v3311_v31 = vpop.f32.mrf.mxu1 }
 0x308   : > { %v3496_v20 = vmax.f32 %v3310_v16, 0.0  ;;  %v6890_v16 = vld [vmem:[#allocation32_spill] sm:$0xff] }
 0x309   : > { %v3153_v4 = vpop.f32.mrf.mxu0  ;;  %v3314_v47 = vpop.f32.mrf.mxu1 }
 0x30a   : > { %v3548_v1 = vpack.c.bf16 %v3496_v20, %v3495_v7  ;;  %v6642_v39 = vadd.f32 %v3153_v4, %v6883_v30  ;;  %v3315_v27 = vadd.f32 %v3314_v47, %v6884_v41 }
 0x30b   : > { %v3155_v25 = vpop.f32.mrf.mxu0  ;;  %v3316_v14 = vpop.f32.mrf.mxu1 }
 0x30c   : > { %5107 = vmatmul.mubr.bf16.gmra.mxu0 %v3548_v1  ;;  %v3497_v36 = vmax.f32 %v3315_v27, 0.0  ;;  %v6891_v25 = vld [vmem:[#allocation21_spill] sm:$0xff] }
 0x30d   : > { %v3156_v33 = vpop.f32.mrf.mxu0  ;;  %v3317_v3 = vpop.f32.mrf.mxu1 }
 0x30e   : > { %v6646_v12 = vadd.f32 %v3156_v33, %v6885_v11  ;;  %v3318_v58 = vadd.f32 %v3317_v3, %v6886_v49  ;;  %v6892_v33 = vld [vmem:[#allocation33_spill] sm:$0xff] }
 0x30f   : > { %v3158_v52 = vpop.f32.mrf.mxu0  ;;  %v3319_v42 = vpop.f32.mrf.mxu1 }
 0x310   : > { %v3498_v48 = vmax.f32 %v3318_v58, 0.0  ;;  %v6893_v52 = vld [vmem:[#allocation22_spill] sm:$0xff] }
 0x311   : > { %v3161_v18 = vpop.f32.mrf.mxu0  ;;  %v3322_v50 = vpop.f32.mrf.mxu1 }
 0x312   : > { %v3549_v56 = vpack.c.bf16 %v3498_v48, %v3497_v36  ;;  %v6650_v51 = vadd.f32 %v3161_v18, %v6887_v43  ;;  %v3323_v5 = vadd.f32 %v3322_v50, %v6888_v32 }
 0x313   : > { %v3163_v53 = vpop.f32.mrf.mxu0  ;;  %v3324_v44 = vpop.f32.mrf.mxu1 }
 0x314   : > { %5110 = vmatprep.mubr.bf16.mxu0 %v3549_v56  ;;  %v3499_v20 = vmax.f32 %v3323_v5, 0.0  ;;  %v6894_v44 = vld [vmem:[#allocation34_spill] sm:$0xff] }
 0x315   : > { %v3164_v63 = vpop.f32.mrf.mxu0  ;;  %v3325_v6 = vpop.f32.mrf.mxu1 }
 0x316   : > { %v6654_v46 = vadd.f32 %v3164_v63, %v6889_v61  ;;  %v3326_v54 = vadd.f32 %v3325_v6, %v6890_v16  ;;  %v6895_v6 = vld [vmem:[#allocation23_spill] sm:$0xff] }
 0x317   : > { %v3166_v31 = vpop.f32.mrf.mxu0  ;;  %v3327_v7 = vpop.f32.mrf.mxu1 }
 0x318   : > { %v3500_v4 = vmax.f32 %v3326_v54, 0.0 }
 0x319   : > { %v3169_v47 = vpop.f32.mrf.mxu0  ;;  %v3330_v1 = vpop.f32.mrf.mxu1 }
 0x31a   : > { %v3550_v30 = vpack.c.bf16 %v3500_v4, %v3499_v20  ;;  %v6658_v14 = vadd.f32 %v3169_v47, %v6891_v25  ;;  %v3331_v3 = vadd.f32 %v3330_v1, %v6892_v33 }
 0x31b   : > { %v3171_v41 = vpop.f32.mrf.mxu0  ;;  %v3332_v27 = vpop.f32.mrf.mxu1 }
 0x31c   : > { %5111 = vmatmul.mubr.bf16.gmra.mxu0 %v3550_v30  ;;  %v3501_v18 = vmax.f32 %v3331_v3, 0.0 }
 0x31d   : > { %v3172_v11 = vpop.f32.mrf.mxu0  ;;  %v3333_v49 = vpop.f32.mrf.mxu1 }
 0x31e   : > { %v6662_v58 = vadd.f32 %v3172_v11, %v6512_v45  ;;  %v3334_v42 = vadd.f32 %v3333_v49, %v6893_v52 }
 0x31f   : > { %v3174_v36 = vpop.f32.mrf.mxu0  ;;  %v3335_v48 = vpop.f32.mrf.mxu1 }
 0x320   : > { %v3502_v50 = vmax.f32 %v3334_v42, 0.0 }
 0x321   : > { %v3177_v56 = vpop.f32.mrf.mxu0  ;;  %v3338_v43 = vpop.f32.mrf.mxu1 }
 0x322   : > { %v3551_v53 = vpack.c.bf16 %v3502_v50, %v3501_v18  ;;  %v6666_v32 = vadd.f32 %v3177_v56, %v6894_v44  ;;  %v3339_v61 = vadd.f32 %v3338_v43, %v6895_v6 }
 0x323   : > { %v3179_v5 = vpop.f32.mrf.mxu0  ;;  %v3340_v63 = vpop.f32.mrf.mxu1 }
 0x324   : > { %5114 = vmatprep.mubr.bf16.mxu0 %v3551_v53  ;;  %v3503_v4 = vmax.f32 %v3339_v61, 0.0 }
 0x325   : > { %v3180_v16 = vpop.f32.mrf.mxu0  ;;  %v3341_v45 = vpop.f32.mrf.mxu1 }
 0x326   : > { %v6670_v54 = vadd.f32 %v3180_v16, %v6528_v10  ;;  %v3342_v31 = vadd.f32 %v3341_v45, %v6531_v29 }
 0x327   : > { %v3343_v7 = vpop.f32.mrf.mxu1  ;;  %v3182_v20 = vpop.f32.mrf.mxu0 }
 0x328   : > { %v3504_v47 = vmax.f32 %v3342_v31, 0.0 }
 0x329   : > { %v3346_v1 = vpop.f32.mrf.mxu1 }
 0x32a   : > { %v3552_v30 = vpack.c.bf16 %v3504_v47, %v3503_v4  ;;  %v3347_v41 = vadd.f32 %v3346_v1, %v6534_v2 }
 0x32b   : > { %v3348_v25 = vpop.f32.mrf.mxu1 }
 0x32c   : > { %5115 = vmatmul.mubr.bf16.gmra.mxu0 %v3552_v30  ;;  %v3505_v11 = vmax.f32 %v3347_v41, 0.0 }
 0x32d   : > { %v3349_v27 = vpop.f32.mrf.mxu1 }
 0x32e   : > { %v3350_v33 = vadd.f32 %v3349_v27, %v6540_v40 }
 0x32f   : > { %v3351_v3 = vpop.f32.mrf.mxu1 }
 0x330   : > { %v3506_v49 = vmax.f32 %v3350_v33, 0.0 }
 0x331   : > { %v3354_v10 = vpop.f32.mrf.mxu1 }
 0x332   : > { %v3553_v52 = vpack.c.bf16 %v3506_v49, %v3505_v11  ;;  %v3355_v29 = vadd.f32 %v3354_v10, %v6544_v15 }
 0x333   : > { %v3356_v42 = vpop.f32.mrf.mxu1 }
 0x334   : > { %5118 = vmatprep.mubr.bf16.mxu0 %v3553_v52  ;;  %v3507_v50 = vmax.f32 %v3355_v29, 0.0 }
 0x335   : > { %v3357_v36 = vpop.f32.mrf.mxu1 }
 0x336   : > { %v3358_v48 = vadd.f32 %v3357_v36, %v6550_v22 }
 0x337   : > { %v3359_v18 = vpop.f32.mrf.mxu1 }
 0x338   : > { %v3508_v56 = vmax.f32 %v3358_v48, 0.0 }
 0x339   : > { %v3362_v2 = vpop.f32.mrf.mxu1 }
 0x33a   : > { %v3554_v43 = vpack.c.bf16 %v3508_v56, %v3507_v50  ;;  %v3363_v40 = vadd.f32 %v3362_v2, %v6554_v60 }
 0x33b   : > { %v3364_v53 = vpop.f32.mrf.mxu1 }
 0x33c   : > { %5119 = vmatmul.mubr.bf16.gmra.mxu0 %v3554_v43  ;;  %v3509_v6 = vmax.f32 %v3363_v40, 0.0 }
 0x33d   : > { %v3365_v44 = vpop.f32.mrf.mxu1 }
 0x33e   : > { %v3366_v5 = vadd.f32 %v3365_v44, %v6560_v37 }
 0x33f   : > { %v3367_v63 = vpop.f32.mrf.mxu1 }
 0x340   : > { %v3510_v61 = vmax.f32 %v3366_v5, 0.0 }
 0x341   : > { %v3370_v15 = vpop.f32.mrf.mxu1 }
 0x342   : > { %v3555_v16 = vpack.c.bf16 %v3510_v61, %v3509_v6  ;;  %v3371_v22 = vadd.f32 %v3370_v15, %v6564_v21 }
 0x343   : > { %v3372_v45 = vpop.f32.mrf.mxu1 }
 0x344   : > { %5122 = vmatprep.mubr.bf16.mxu0 %v3555_v16  ;;  %v3511_v4 = vmax.f32 %v3371_v22, 0.0 }
 0x345   : > { %v3373_v31 = vpop.f32.mrf.mxu1 }
 0x346   : > { %v3374_v7 = vadd.f32 %v3373_v31, %v6570_v8 }
 0x347   : > { %v3375_v20 = vpop.f32.mrf.mxu1 }
 0x348   : > { %v3512_v47 = vmax.f32 %v3374_v7, 0.0 }
 0x349   : > { %v3378_v60 = vpop.f32.mrf.mxu1 }
 0x34a   : > { %v3556_v1 = vpack.c.bf16 %v3512_v47, %v3511_v4  ;;  %v3379_v37 = vadd.f32 %v3378_v60, %v6574_v35 }
 0x34b   : > { %v3380_v30 = vpop.f32.mrf.mxu1 }
 0x34c   : > { %5123 = vmatmul.mubr.bf16.gmra.mxu0 %v3556_v1  ;;  %v3513_v33 = vmax.f32 %v3379_v37, 0.0 }
 0x34d   : > { %v3381_v25 = vpop.f32.mrf.mxu1 }
 0x34e   : > { %v3382_v41 = vadd.f32 %v3381_v25, %v6580_v59 }
 0x34f   : > { %v3383_v27 = vpop.f32.mrf.mxu1 }
 0x350   : > { %v3514_v3 = vmax.f32 %v3382_v41, 0.0 }
 0x351   : > { %v3386_v21 = vpop.f32.mrf.mxu1 }
 0x352   : > { %v3557_v11 = vpack.c.bf16 %v3514_v3, %v3513_v33  ;;  %v3387_v8 = vadd.f32 %v3386_v21, %v6584_v23 }
 0x353   : > { %v3388_v49 = vpop.f32.mrf.mxu1 }
 0x354   : > { %5126 = vmatprep.mubr.bf16.mxu0 %v3557_v11  ;;  %v3515_v29 = vmax.f32 %v3387_v8, 0.0 }
 0x355   : > { %v3389_v10 = vpop.f32.mrf.mxu1 }
 0x356   : > { %v3390_v52 = vadd.f32 %v3389_v10, %v6590_v26 }
 0x357   : > { %v3391_v42 = vpop.f32.mrf.mxu1 }
 0x358   : > { %v3516_v36 = vmax.f32 %v3390_v52, 0.0 }
 0x359   : > { %v3394_v35 = vpop.f32.mrf.mxu1 }
 0x35a   : > { %v3558_v48 = vpack.c.bf16 %v3516_v36, %v3515_v29  ;;  %v3395_v59 = vadd.f32 %v3394_v35, %v6594_v9 }
 0x35b   : > { %v3396_v18 = vpop.f32.mrf.mxu1 }
 0x35c   : > { %5127 = vmatmul.mubr.bf16.gmra.mxu0 %v3558_v48  ;;  %v3517_v43 = vmax.f32 %v3395_v59, 0.0 }
 0x35d   : > { %v3397_v50 = vpop.f32.mrf.mxu1 }
 0x35e   : > { %v3398_v56 = vadd.f32 %v3397_v50, %v6598_v57 }
 0x35f   : > { %v3399_v2 = vpop.f32.mrf.mxu1 }
 0x360   : > { %v3518_v53 = vmax.f32 %v3398_v56, 0.0 }
 0x361   : > { %v3402_v23 = vpop.f32.mrf.mxu1 }
 0x362   : > { %v3559_v40 = vpack.c.bf16 %v3518_v53, %v3517_v43  ;;  %v3403_v26 = vadd.f32 %v3402_v23, %v6602_v62 }
 0x363   : > { %v3404_v44 = vpop.f32.mrf.mxu1 }
 0x364   : > { %5130 = vmatprep.mubr.bf16.mxu0 %v3559_v40  ;;  %v3519_v61 = vmax.f32 %v3403_v26, 0.0 }
 0x365   : > { %v3405_v5 = vpop.f32.mrf.mxu1 }
 0x366   : > { %v3406_v63 = vadd.f32 %v3405_v5, %v6606_v55 }
 0x367   : > { %v3407_v6 = vpop.f32.mrf.mxu1 }
 0x368   : > { %v3520_v15 = vmax.f32 %v3406_v63, 0.0 }
 0x369   : > { %v3410_v9 = vpop.f32.mrf.mxu1 }
 0x36a   : > { %v3560_v16 = vpack.c.bf16 %v3520_v15, %v3519_v61  ;;  %v3411_v57 = vadd.f32 %v3410_v9, %v6610_v38 }
 0x36b   : > { %v3412_v45 = vpop.f32.mrf.mxu1 }
 0x36c   : > { %5131 = vmatmul.mubr.bf16.gmra.mxu0 %v3560_v16  ;;  %v3521_v20 = vmax.f32 %v3411_v57, 0.0 }
 0x36d   : > { %v3413_v22 = vpop.f32.mrf.mxu1 }
 0x36e   : > { %v3414_v31 = vadd.f32 %v3413_v22, %v6614_v28 }
 0x36f   : > { %v3415_v7 = vpop.f32.mrf.mxu1 }
 0x370   : > { %v3522_v4 = vmax.f32 %v3414_v31, 0.0 }
 0x371   : > { %v3418_v62 = vpop.f32.mrf.mxu1 }
 0x372   : > { %v3561_v47 = vpack.c.bf16 %v3522_v4, %v3521_v20  ;;  %v3419_v55 = vadd.f32 %v3418_v62, %v6618_v19 }
 0x373   : > { %v3420_v60 = vpop.f32.mrf.mxu1 }
 0x374   : > { %5134 = vmatprep.mubr.bf16.mxu0 %v3561_v47  ;;  %v3523_v25 = vmax.f32 %v3419_v55, 0.0 }
 0x375   : > { %v3421_v1 = vpop.f32.mrf.mxu1 }
 0x376   : > { %v3422_v30 = vadd.f32 %v3421_v1, %v6622_v17 }
 0x377   : > { %v3423_v37 = vpop.f32.mrf.mxu1 }
 0x378   : > { %v3524_v38 = vmax.f32 %v3422_v30, 0.0 }
 0x379   : > { %v3426_v41 = vpop.f32.mrf.mxu1 }
 0x37a   : > { %v3562_v27 = vpack.c.bf16 %v3524_v38, %v3523_v25  ;;  %v3427_v28 = vadd.f32 %v3426_v41, %v6626_v34 }
 0x37b   : > { %v3428_v33 = vpop.f32.mrf.mxu1 }
 0x37c   : > { %v5088_v3 = vpop.f32.mrf.mxu0  ;;  %5135 = vmatmul.mubr.bf16.gmra.mxu0 %v3562_v27  ;;  %v3525_v8 = vmax.f32 %v3427_v28, 0.0 }
 0x37d   : > { %v3429_v21 = vpop.f32.mrf.mxu1 }
 0x37e   : > { %v3430_v11 = vadd.f32 %v3429_v21, %v6630_v24  ;;  %v3667_v49 = vpop.f32.mrf.mxu0 }
 0x37f   : > { %v3431_v19 = vpop.f32.mrf.mxu1 }
 0x380   : > { %v3526_v10 = vmax.f32 %v3430_v11, 0.0  ;;  %v5089_v52 = vpop.f32.mrf.mxu0 }
 0x381   : > { %v4847_v17 = vpack.c.bf16 %v5089_v52, %v5088_v3  ;;  %v3434_v42 = vpop.f32.mrf.mxu1 }
 0x382   : > { %v3563_v29 = vpack.c.bf16 %v3526_v10, %v3525_v8  ;;  %v3670_v36 = vpop.f32.mrf.mxu0  ;;  %v3435_v48 = vadd.f32 %v3434_v42, %v6634_v0 }
 0x383   : > { %4999 = vst [vmem:[%s6696_s23 + $0x8] sm:$0xff] %v4847_v17   ;;  %v4842_v34 = vpack.c.bf16 %v3670_v36, %v3667_v49  ;;  %v3436_v35 = vpop.f32.mrf.mxu1 }
 0x384   : > { %5138 = vmatprep.mubr.bf16.mxu0 %v3563_v29  ;;  %v3527_v50 = vmax.f32 %v3435_v48, 0.0 }
 0x385   : > { %4843 = vst [vmem:[%s6696_s23] sm:$0xff] %v4842_v34   ;;  %v3437_v24 = vpop.f32.mrf.mxu1 }
 0x386   : > { %v3438_v18 = vadd.f32 %v3437_v24, %v6638_v13 }
 0x387   : > { %v3439_v59 = vpop.f32.mrf.mxu1 }
 0x388   : > { %v3528_v56 = vmax.f32 %v3438_v18, 0.0 }
 0x389   : > { %v3442_v2 = vpop.f32.mrf.mxu1 }
 0x38a   : > { %v3564_v43 = vpack.c.bf16 %v3528_v56, %v3527_v50  ;;  %v3443_v23 = vadd.f32 %v3442_v2, %v6642_v39 }
 0x38b   : > { %v3444_v53 = vpop.f32.mrf.mxu1 }
 0x38c   : > { %v5092_v40 = vpop.f32.mrf.mxu0  ;;  %5139 = vmatmul.mubr.bf16.gmra.mxu0 %v3564_v43  ;;  %v3529_v63 = vmax.f32 %v3443_v23, 0.0 }
 0x38d   : > { %v3445_v44 = vpop.f32.mrf.mxu1 }
 0x38e   : > { %v3446_v0 = vadd.f32 %v3445_v44, %v6646_v12  ;;  %v3683_v26 = vpop.f32.mrf.mxu0 }
 0x38f   : > { %v3447_v5 = vpop.f32.mrf.mxu1 }
 0x390   : > { %v3530_v6 = vmax.f32 %v3446_v0, 0.0  ;;  %v5093_v13 = vpop.f32.mrf.mxu0 }
 0x391   : > { %v4857_v61 = vpack.c.bf16 %v5093_v13, %v5092_v40  ;;  %v3450_v15 = vpop.f32.mrf.mxu1 }
 0x392   : > { %v3565_v9 = vpack.c.bf16 %v3530_v6, %v3529_v63  ;;  %v3686_v16 = vpop.f32.mrf.mxu0  ;;  %v3451_v39 = vadd.f32 %v3450_v15, %v6650_v51 }
 0x393   : > { %5001 = vst [vmem:[%s6696_s23 + $0x18] sm:$0xff] %v4857_v61   ;;  %v4852_v45 = vpack.c.bf16 %v3686_v16, %v3683_v26  ;;  %v3452_v57 = vpop.f32.mrf.mxu1 }
 0x394   : > { %5142 = vmatprep.mubr.bf16.mxu0 %v3565_v9  ;;  %v3531_v7 = vmax.f32 %v3451_v39, 0.0 }
 0x395   : > { %5000 = vst [vmem:[%s6696_s23 + $0x10] sm:$0xff] %v4852_v45   ;;  %v3453_v22 = vpop.f32.mrf.mxu1 }
 0x396   : > { %v3454_v31 = vadd.f32 %v3453_v22, %v6654_v46 }
 0x397   : > { %v3455_v12 = vpop.f32.mrf.mxu1 }
 0x398   : > { %v3532_v20 = vmax.f32 %v3454_v31, 0.0 }
 0x399   : > { %v3458_v4 = vpop.f32.mrf.mxu1 }
 0x39a   : > { %v3566_v62 = vpack.c.bf16 %v3532_v20, %v3531_v7  ;;  %v3459_v60 = vadd.f32 %v3458_v4, %v6658_v14 }
 0x39b   : > { %v3460_v47 = vpop.f32.mrf.mxu1 }
 0x39c   : > { %v5096_v55 = vpop.f32.mrf.mxu0  ;;  %5143 = vmatmul.mubr.bf16.gmra.mxu0 %v3566_v62  ;;  %v3533_v25 = vmax.f32 %v3459_v60, 0.0 }
 0x39d   : > { %v3461_v1 = vpop.f32.mrf.mxu1 }
 0x39e   : > { %v3462_v51 = vadd.f32 %v3461_v1, %v6662_v58  ;;  %v3699_v30 = vpop.f32.mrf.mxu0 }
 0x39f   : > { %v3463_v37 = vpop.f32.mrf.mxu1 }
 0x3a0   : > { %v3534_v38 = vmax.f32 %v3462_v51, 0.0  ;;  %v5097_v46 = vpop.f32.mrf.mxu0 }
 0x3a1   : > { %v4867_v41 = vpack.c.bf16 %v5097_v46, %v5096_v55  ;;  %v3466_v27 = vpop.f32.mrf.mxu1 }
 0x3a2   : > { %v3567_v33 = vpack.c.bf16 %v3534_v38, %v3533_v25  ;;  %v3702_v28 = vpop.f32.mrf.mxu0  ;;  %v3467_v14 = vadd.f32 %v3466_v27, %v6666_v32 }
 0x3a3   : > { %5003 = vst [vmem:[%s6696_s23 + $0x28] sm:$0xff] %v4867_v41   ;;  %v4862_v3 = vpack.c.bf16 %v3702_v28, %v3699_v30  ;;  %v3468_v21 = vpop.f32.mrf.mxu1 }
 0x3a4   : > { %5146 = vmatprep.mubr.bf16.mxu0 %v3567_v33  ;;  %v3535_v19 = vmax.f32 %v3467_v14, 0.0 }
 0x3a5   : > { %5002 = vst [vmem:[%s6696_s23 + $0x20] sm:$0xff] %v4862_v3   ;;  %v3469_v11 = vpop.f32.mrf.mxu1 }
 0x3a6   : > { %v3470_v58 = vadd.f32 %v3469_v11, %v6670_v54 }
 0x3a7   : > { %v3471_v49 = vpop.f32.mrf.mxu1 }
 0x3a8   : > { %v3536_v8 = vmax.f32 %v3470_v58, 0.0 }
 0x3aa   : > { %v3568_v10 = vpack.c.bf16 %v3536_v8, %v3535_v19 }
 0x3ac   : > { %v5100_v52 = vpop.f32.mrf.mxu0  ;;  %5147 = vmatmul.mubr.bf16.gmra.mxu0 %v3568_v10 }
 0x3ae   : > { %v3715_v17 = vpop.f32.mrf.mxu0 }
 0x3b0   : > { %v5101_v42 = vpop.f32.mrf.mxu0 }
 0x3b1   : > { %v4877_v29 = vpack.c.bf16 %v5101_v42, %v5100_v52 }
 0x3b2   : > { %v3718_v36 = vpop.f32.mrf.mxu0 }
 0x3b3   : > { %5005 = vst [vmem:[%s6696_s23 + $0x38] sm:$0xff] %v4877_v29   ;;  %v4872_v32 = vpack.c.bf16 %v3718_v36, %v3715_v17 }
 0x3b5   : > { %5004 = vst [vmem:[%s6696_s23 + $0x30] sm:$0xff] %v4872_v32  }
 0x3bc   : > { %v5104_v34 = vpop.f32.mrf.mxu0 }
 0x3be   : > { %v3731_v35 = vpop.f32.mrf.mxu0 }
 0x3c0   : > { %v5105_v54 = vpop.f32.mrf.mxu0 }
 0x3c1   : > { %v4887_v48 = vpack.c.bf16 %v5105_v54, %v5104_v34 }
 0x3c2   : > { %v3734_v24 = vpop.f32.mrf.mxu0 }
 0x3c3   : > { %5007 = vst [vmem:[%s6696_s23 + $0x48] sm:$0xff] %v4887_v48   ;;  %v4882_v18 = vpack.c.bf16 %v3734_v24, %v3731_v35 }
 0x3c5   : > { %5006 = vst [vmem:[%s6696_s23 + $0x40] sm:$0xff] %v4882_v18  }
 0x3cc   : > { %v5108_v59 = vpop.f32.mrf.mxu0 }
 0x3ce   : > { %v3747_v50 = vpop.f32.mrf.mxu0 }
 0x3d0   : > { %v5109_v56 = vpop.f32.mrf.mxu0 }
 0x3d1   : > { %v4897_v2 = vpack.c.bf16 %v5109_v56, %v5108_v59 }
 0x3d2   : > { %v3750_v43 = vpop.f32.mrf.mxu0 }
 0x3d3   : > { %5009 = vst [vmem:[%s6696_s23 + $0x58] sm:$0xff] %v4897_v2   ;;  %v4892_v53 = vpack.c.bf16 %v3750_v43, %v3747_v50 }
 0x3d5   : > { %5008 = vst [vmem:[%s6696_s23 + $0x50] sm:$0xff] %v4892_v53  }
 0x3dc   : > { %v5112_v23 = vpop.f32.mrf.mxu0 }
 0x3de   : > { %v3763_v40 = vpop.f32.mrf.mxu0 }
 0x3e0   : > { %v5113_v44 = vpop.f32.mrf.mxu0 }
 0x3e1   : > { %v4907_v0 = vpack.c.bf16 %v5113_v44, %v5112_v23 }
 0x3e2   : > { %v3766_v26 = vpop.f32.mrf.mxu0 }
 0x3e3   : > { %5011 = vst [vmem:[%s6696_s23 + $0x68] sm:$0xff] %v4907_v0   ;;  %v4902_v5 = vpack.c.bf16 %v3766_v26, %v3763_v40 }
 0x3e5   : > { %5010 = vst [vmem:[%s6696_s23 + $0x60] sm:$0xff] %v4902_v5  }
 0x3ec   : > { %v5116_v63 = vpop.f32.mrf.mxu0 }
 0x3ee   : > { %v3779_v6 = vpop.f32.mrf.mxu0 }
 0x3f0   : > { %v5117_v13 = vpop.f32.mrf.mxu0 }
 0x3f1   : > { %v4917_v61 = vpack.c.bf16 %v5117_v13, %v5116_v63 }
 0x3f2   : > { %v3782_v15 = vpop.f32.mrf.mxu0 }
 0x3f3   : > { %5013 = vst [vmem:[%s6696_s23 + $0x78] sm:$0xff] %v4917_v61   ;;  %v4912_v9 = vpack.c.bf16 %v3782_v15, %v3779_v6 }
 0x3f5   : > { %5012 = vst [vmem:[%s6696_s23 + $0x70] sm:$0xff] %v4912_v9  }
 0x3fc   : > { %v5120_v16 = vpop.f32.mrf.mxu0 }
 0x3fe   : > { %v3795_v45 = vpop.f32.mrf.mxu0 }
 0x400   : > { %v5121_v57 = vpop.f32.mrf.mxu0 }
 0x401   : > { %v4927_v39 = vpack.c.bf16 %v5121_v57, %v5120_v16 }
 0x402   : > { %v3798_v22 = vpop.f32.mrf.mxu0 }
 0x403   : > { %5015 = vst [vmem:[%s6696_s23 + $0x88] sm:$0xff] %v4927_v39   ;;  %v4922_v31 = vpack.c.bf16 %v3798_v22, %v3795_v45 }
 0x405   : > { %5014 = vst [vmem:[%s6696_s23 + $0x80] sm:$0xff] %v4922_v31  }
 0x40c   : > { %v5124_v12 = vpop.f32.mrf.mxu0 }
 0x40e   : > { %v3811_v7 = vpop.f32.mrf.mxu0 }
 0x410   : > { %v5125_v20 = vpop.f32.mrf.mxu0 }
 0x411   : > { %v4937_v4 = vpack.c.bf16 %v5125_v20, %v5124_v12 }
 0x412   : > { %v3814_v62 = vpop.f32.mrf.mxu0 }
 0x413   : > { %5017 = vst [vmem:[%s6696_s23 + $0x98] sm:$0xff] %v4937_v4   ;;  %v4932_v47 = vpack.c.bf16 %v3814_v62, %v3811_v7 }
 0x415   : > { %5016 = vst [vmem:[%s6696_s23 + $0x90] sm:$0xff] %v4932_v47  }
 0x41c   : > { %v5128_v60 = vpop.f32.mrf.mxu0 }
 0x41e   : > { %v3827_v55 = vpop.f32.mrf.mxu0 }
 0x420   : > { %v5129_v1 = vpop.f32.mrf.mxu0 }
 0x421   : > { %v4947_v51 = vpack.c.bf16 %v5129_v1, %v5128_v60 }
 0x422   : > { %v3830_v30 = vpop.f32.mrf.mxu0 }
 0x423   : > { %5019 = vst [vmem:[%s6696_s23 + $0xa8] sm:$0xff] %v4947_v51   ;;  %v4942_v37 = vpack.c.bf16 %v3830_v30, %v3827_v55 }
 0x425   : > { %5018 = vst [vmem:[%s6696_s23 + $0xa0] sm:$0xff] %v4942_v37  }
 0x42c   : > { %v5132_v25 = vpop.f32.mrf.mxu0 }
 0x42e   : > { %v3843_v38 = vpop.f32.mrf.mxu0 }
 0x430   : > { %v5133_v46 = vpop.f32.mrf.mxu0 }
 0x431   : > { %v4957_v41 = vpack.c.bf16 %v5133_v46, %v5132_v25 }
 0x432   : > { %v3846_v27 = vpop.f32.mrf.mxu0 }
 0x433   : > { %5021 = vst [vmem:[%s6696_s23 + $0xb8] sm:$0xff] %v4957_v41   ;;  %v4952_v33 = vpack.c.bf16 %v3846_v27, %v3843_v38 }
 0x435   : > { %5020 = vst [vmem:[%s6696_s23 + $0xb0] sm:$0xff] %v4952_v33  }
 0x43c   : > { %v5136_v28 = vpop.f32.mrf.mxu0 }
 0x43e   : > { %v3859_v3 = vpop.f32.mrf.mxu0 }
 0x440   : > { %v5137_v21 = vpop.f32.mrf.mxu0 }
 0x441   : > { %v4967_v14 = vpack.c.bf16 %v5137_v21, %v5136_v28 }
 0x442   : > { %v3862_v11 = vpop.f32.mrf.mxu0 }
 0x443   : > { %5023 = vst [vmem:[%s6696_s23 + $0xc8] sm:$0xff] %v4967_v14   ;;  %v4962_v58 = vpack.c.bf16 %v3862_v11, %v3859_v3 }
 0x445   : > { %5022 = vst [vmem:[%s6696_s23 + $0xc0] sm:$0xff] %v4962_v58  }
 0x44c   : > { %v5140_v49 = vpop.f32.mrf.mxu0 }
 0x44e   : > { %v3875_v19 = vpop.f32.mrf.mxu0 }
 0x450   : > { %v5141_v8 = vpop.f32.mrf.mxu0 }
 0x451   : > { %v4977_v10 = vpack.c.bf16 %v5141_v8, %v5140_v49 }
 0x452   : > { %v3878_v52 = vpop.f32.mrf.mxu0 }
 0x453   : > { %5025 = vst [vmem:[%s6696_s23 + $0xd8] sm:$0xff] %v4977_v10   ;;  %v4972_v17 = vpack.c.bf16 %v3878_v52, %v3875_v19 }
 0x455   : > { %5024 = vst [vmem:[%s6696_s23 + $0xd0] sm:$0xff] %v4972_v17  }
 0x45c   : > { %v5144_v42 = vpop.f32.mrf.mxu0 }
 0x45e   : > { %v3891_v29 = vpop.f32.mrf.mxu0 }
 0x460   : > { %v5145_v36 = vpop.f32.mrf.mxu0 }
 0x461   : > { %v4987_v32 = vpack.c.bf16 %v5145_v36, %v5144_v42 }
 0x462   : > { %v3894_v34 = vpop.f32.mrf.mxu0 }
 0x463   : > { %5027 = vst [vmem:[%s6696_s23 + $0xe8] sm:$0xff] %v4987_v32   ;;  %v4982_v35 = vpack.c.bf16 %v3894_v34, %v3891_v29 }
 0x465   : > { %5026 = vst [vmem:[%s6696_s23 + $0xe0] sm:$0xff] %v4982_v35  }
 0x46c   : > { %v5148_v54 = vpop.f32.mrf.mxu0 }
 0x46e   : > { %v3907_v48 = vpop.f32.mrf.mxu0 }
 0x470   : > { %v5149_v24 = vpop.f32.mrf.mxu0 }
 0x471   : > { %v4997_v18 = vpack.c.bf16 %v5149_v24, %v5148_v54 }
 0x472   : > { %v3910_v59 = vpop.f32.mrf.mxu0 }
 0x473   : > { %5029 = vst [vmem:[%s6696_s23 + $0xf8] sm:$0xff] %v4997_v18   ;;  %v4992_v50 = vpack.c.bf16 %v3910_v59, %v3907_v48 }
 0x475   : > { %5028 = vst [vmem:[%s6696_s23 + $0xf0] sm:$0xff] %v4992_v50  }
 0x476   : > { %5458 = shalt.err (!%p5455_p9)
}
 0x477   : > { %s5459_s10 = scalar_lea.hbm %s6743_s8, 4096  ;;  %s5463_s27 = scalar_lea.hbm %s6794_s4, 8192 }
 0x478   : > { %p5460_p1 = scmp.ne.s32.totalorder %s6743_s8, %s5459_s10  ;;  %p5464_p11 = scmp.lt.s32.totalorder %s6743_s8, %s6794_s4 }
 0x479   : > { %p5465_p13 = scmp.lt.s32.totalorder %s5463_s27, %s5459_s10 }
 0x47a   : > { %p5461_p8 = pnand %p5460_p1, %p6896_p6 }
 0x47b   : > { %p5466_p2 = por %p5465_p13, %p5464_p11 }
 0x47c   : > { %p5462_p10 = pneg %p5461_p8 }
 0x47e   : > { %p5467_p4 = pnand %p5466_p2, %p5462_p10 }
 0x480   : > { %5470 = shalt.err (!%p5467_p4)
}
 0x481   : > { %s5529_s23 = smov 64   ;;  %s5530_s9 = smov 4  }
 0x482   : > { %5196 = dma.vmem_to_hbm [thread:$0]  (%p6896_p6), %s6745_s11, 4096, %s6743_s8, %s4243_s5, %s5529_s23, %s5529_s23, %s5530_s9  }
 0x483 PF: > { %s4271_s12 = sand.u32 1, %s5505_s15   ;;  %p6897_p12 = scmp.ne.s32.totalorder %s6800_s22, 0 }
 0x484   : > { %p6898_p0 = scmp.ge.s32.totalorder %s5517_s18, 2  ;;  %s4272_s13 = scalar_lea.sflag [#allocation4], %s4271_s12 }
 0x486   : > { %p5213_p5 = pnand %p6898_p0, %p6897_p12 }
 0x488   : > { %p5214_p3 = pneg %p5213_p5 }
 0x48a   : > { %5500 = dma.done.wait (%p5214_p3), %s4272_s13, 4096  }
 0x48b   : > { %5502 = vsyncadd (%p5214_p3), %s4272_s13, 4294963200  ;;  %p19_p7 = scmp.ge.s32.totalorder %s5636_s25, 4   ;;  %s6899_s15 = smov %s5509_s16 }
 0x48c   : > { %s6900_s16 = smov %s5513_s17  ;;  %s6901_s17 = smov %s5646_s28 }
 0x48d   : > { %s6902_s18 = smov %s5636_s25  ;;  %21 = sbr.rel (!%p19_p7) target bundleno = 7 (0x7), region = 93 }
 0x492   :  { %4277 = vsyncpa [#allocation3], 1 }
 0x493   :  { %4279 = vsyncpa [#allocation3 + $0x1], 1 }
 0x494   :  { %4280 = vsyncpa [#allocation6], 1 }
 0x495   :  { %4281 = vsyncpa [#allocation9], 1 }
 0x496   :  { %4282 = vsyncpa [#allocation4], 1 }
 0x497   :  { %4284 = vsyncpa [#allocation4 + $0x1], 1 }

</bundles_post_ra>
